<compile_context>
chip_gen: v7x
topology: tpu7x:2x2x1
jax: 0.10.0
libtpu: 0.0.40
codegen_flags: <defaults>
</compile_context>

<pallas_src>
import functools
import math

import jax
import jax.numpy as jnp
from jax import lax
from jax.experimental import pallas as pl
from jax.experimental.pallas import tpu as pltpu

LN_EPS = 1e-12
_SQRT_HALF = 0.7071067811865476
_MIB = 1024 * 1024


def _vmem_capacity_bytes():
    try:
        info = pltpu.get_tpu_info()
        cap = getattr(info, "vmem_capacity_bytes", None)
        if cap:
            return int(cap)
    except Exception:
        pass
    return 64 * _MIB  # conservative (v7x-sized) fallback


_VMEM_CAP = _vmem_capacity_bytes()
# ~75% of physical VMEM: ~48 MiB on v7x (64 MiB/TC), ~96 MiB on v5e/v6e (128 MiB).
_VMEM_LIMIT = int(max(min(_VMEM_CAP * 3 // 4, 112 * _MIB), 16 * _MIB))
_ROW_TILE = 1024 if _VMEM_CAP >= 100 * _MIB else 512   # row tile for linear/LN kernels
_Q_TILE = 512                                          # query-row tile for self-attention
_KV_TILE = 256                                         # KV tile for flash cross-attention


def _round_up(x, m):
    return ((x + m - 1) // m) * m


# --------------------------- in-kernel helpers ------------------------------ #

def _ln(x, g, b, eps):
    mu = jnp.mean(x, axis=-1, keepdims=True)
    var = jnp.mean(jnp.square(x - mu), axis=-1, keepdims=True)
    return (x - mu) * jax.lax.rsqrt(var + eps) * g + b


def _erf_approx(x):
    # Abramowitz & Stegun 7.1.26 (|err| < 1.5e-7), built only from VPU/EUP-supported ops so
    # the exact (erf-based) HF 'gelu' can stay fused inside the Output-block kernel.
    p = 0.3275911
    a1, a2, a3, a4, a5 = 0.254829592, -0.284496736, 1.421413741, -1.453152027, 1.061405429
    ax = jnp.abs(x)
    t = 1.0 / (1.0 + p * ax)
    poly = ((((a5 * t + a4) * t + a3) * t + a2) * t + a1) * t
    e = 1.0 - poly * jnp.exp(-ax * ax)
    return jnp.where(x >= 0.0, e, -e)


def _gelu_exact(x):
    return 0.5 * x * (1.0 + _erf_approx(x * _SQRT_HALF))


def _softmax_rows(logits):
    logits = logits - jnp.max(logits, axis=-1, keepdims=True)
    p = jnp.exp(logits)
    return p * pl.reciprocal(jnp.sum(p, axis=-1, keepdims=True), approx=True)


# ------------------------- fused linear / LN kernels ------------------------ #

def _qkv_proj_kernel(x_ref, w_ref, b_ref, q_ref, k_ref, v_ref, *, d):
    # y = x @ [Wq|Wk|Wv] + b ; emitted head-major so attention never lane-slices q/k/v.
    y = jnp.dot(x_ref[...].astype(jnp.bfloat16), w_ref[...],
                preferred_element_type=jnp.float32) + b_ref[...]
    for h in range(3):
        q_ref[h] = y[:, h * d:(h + 1) * d].astype(q_ref.dtype)
        k_ref[h] = y[:, 3 * d + h * d:3 * d + (h + 1) * d].astype(k_ref.dtype)
    for h in range(4):
        v_ref[h] = y[:, 6 * d + h * d:6 * d + (h + 1) * d].astype(v_ref.dtype)


def _q1k1_kernel(x_ref, s_ref, e_ref, g_ref, gb_ref, w_ref, b_ref, q1_ref, k1_ref, *, d, eps):
    # LN(x + Sentence_em + entity_id_em) -> [query1 | key1]
    hn = _ln(x_ref[...] + s_ref[...] + e_ref[...], g_ref[...], gb_ref[...], eps)
    y = jnp.dot(hn.astype(jnp.bfloat16), w_ref[...],
                preferred_element_type=jnp.float32) + b_ref[...]
    q1_ref[...] = y[:, :d].astype(q1_ref.dtype)
    k1_ref[...] = y[:, d:].astype(k1_ref.dtype)


def _gnn_query_kernel(x_ref, w_ref, b_ref, g_ref, gb_ref, wq_ref, bq_ref,
                      gnn_ref, q_ref, *, nh, dqk, eps):
    # GNN_out = LN(ctx @ W + b); also emit the head-major cross-attention query projection.
    hn = _ln(jnp.dot(x_ref[...].astype(jnp.bfloat16), w_ref[...],
                     preferred_element_type=jnp.float32) + b_ref[...],
             g_ref[...], gb_ref[...], eps)
    gnn_ref[...] = hn.astype(gnn_ref.dtype)
    y = jnp.dot(hn.astype(jnp.bfloat16), wq_ref[...],
                preferred_element_type=jnp.float32) + bq_ref[...]
    for h in range(nh):
        q_ref[h] = y[:, h * dqk:(h + 1) * dqk].astype(q_ref.dtype)


def _enc_kv_kernel(x_ref, w_ref, b_ref, k_ref, v_ref, *, nh, dqk, dv):
    # encoder K|V projection, emitted head-major.
    y = jnp.dot(x_ref[...].astype(jnp.bfloat16), w_ref[...],
                preferred_element_type=jnp.float32) + b_ref[...]
    for h in range(nh):
        k_ref[h] = y[:, h * dqk:(h + 1) * dqk].astype(k_ref.dtype)
    off = nh * dqk
    for h in range(nh):
        v_ref[h] = y[:, off + h * dv:off + (h + 1) * dv].astype(v_ref.dtype)


def _cross_gate_kernel(ctx_ref, gnn_ref, wo_ref, bo_ref, wg1_ref, wg2_ref, bg_ref,
                       g_ref, gb_ref, o_ref, *, eps):
    # ca = ctx Wo + bo ; gate = sigmoid([gnn|ca] Wg + bg) ; o = LN(gate*ca + (1-gate)*gnn)
    gnn32 = gnn_ref[...].astype(jnp.float32)
    ca = jnp.dot(ctx_ref[...].astype(jnp.bfloat16), wo_ref[...],
                 preferred_element_type=jnp.float32) + bo_ref[...]
    gate_logit = (jnp.dot(gnn_ref[...].astype(jnp.bfloat16), wg1_ref[...],
                          preferred_element_type=jnp.float32)
                  + jnp.dot(ca.astype(jnp.bfloat16), wg2_ref[...],
                            preferred_element_type=jnp.float32)
                  + bg_ref[...])
    gate = 1.0 / (1.0 + jnp.exp(-gate_logit))
    mixed = gate * ca + (1.0 - gate) * gnn32
    o_ref[...] = _ln(mixed, g_ref[...], gb_ref[...], eps).astype(o_ref.dtype)


def _output_block_kernel(x_ref, res_ref, w1_ref, b1_ref, g1_ref, gb1_ref,
                         w2_ref, b2_ref, w3_ref, b3_ref, g3_ref, gb3_ref, o_ref, *, eps):
    # Whole Output module fused: the (tm, 2H) intermediate never leaves VMEM.
    h1 = _ln(jnp.dot(x_ref[...].astype(jnp.bfloat16), w1_ref[...],
                     preferred_element_type=jnp.float32) + b1_ref[...] + res_ref[...],
             g1_ref[...], gb1_ref[...], eps)
    h2 = _gelu_exact(jnp.dot(h1.astype(jnp.bfloat16), w2_ref[...],
                             preferred_element_type=jnp.float32) + b2_ref[...])
    h3 = jnp.dot(h2.astype(jnp.bfloat16), w3_ref[...],
                 preferred_element_type=jnp.float32) + b3_ref[...]
    o_ref[...] = _ln(h3 + h1, g3_ref[...], gb3_ref[...], eps).astype(o_ref.dtype)


def _row_tiled_call(kernel, row_args, const_args, out_defs, **kwargs):
    """Row-tiled pallas_call.

    row_args: (R, c) activations tiled over rows (grid axis, 'parallel').
    const_args: 2-D parameters kept VMEM-resident (block index constant).
    out_defs: list of (lead, cols, dtype): lead=None -> (R, cols) output, else a head-major
              (lead, R, cols) output written per-head inside the kernel.
    """
    R = row_args[0].shape[0]
    tm = R if R <= _ROW_TILE else _ROW_TILE
    grid = (pl.cdiv(R, tm),)
    in_specs = [pl.BlockSpec((tm, a.shape[1]), lambda i: (i, 0)) for a in row_args]
    in_specs += [pl.BlockSpec(a.shape, lambda i: (0, 0)) for a in const_args]
    out_shape, out_specs = [], []
    for lead, cols, dtype in out_defs:
        if lead is None:
            out_shape.append(jax.ShapeDtypeStruct((R, cols), dtype))
            out_specs.append(pl.BlockSpec((tm, cols), lambda i: (i, 0)))
        else:
            out_shape.append(jax.ShapeDtypeStruct((lead, R, cols), dtype))
            out_specs.append(pl.BlockSpec((lead, tm, cols), lambda i: (0, i, 0)))
    single = len(out_defs) == 1
    fn = functools.partial(kernel, **kwargs) if kwargs else kernel
    return pl.pallas_call(
        fn,
        out_shape=out_shape[0] if single else tuple(out_shape),
        grid=grid,
        in_specs=in_specs,
        out_specs=out_specs[0] if single else tuple(out_specs),
        compiler_params=pltpu.CompilerParams(
            dimension_semantics=("parallel",),
            vmem_limit_bytes=_VMEM_LIMIT),
    )(*row_args, *const_args)


# ---------------------------- attention kernels ----------------------------- #

def _self_attention_kernel(q_ref, k_ref, v_ref, q1_ref, k1_ref, amr_ref, amc_ref, sm_ref,
                           ctx_ref, loss_ref, *, scale, focal_alpha=0.25):
    """Per-(batch, query-tile) fused 4-head self-attention with in-kernel focal loss.

    head 0     : (query1, key1) scores, additive attention_mask.
    heads 1..3 : (query, key) scores, additive structure_mask; their raw scores + attention
                 mask feed the focal loss (partial sums accumulated on loss_ref).
    Context of all 4 heads is concatenated in registers and written lane-dense as (tq, H).
    """
    qi = pl.program_id(1)

    @pl.when(qi == 0)
    def _():
        loss_ref[...] = jnp.zeros_like(loss_ref)

    tq = q1_ref.shape[1]
    n_keys = k1_ref.shape[1]

    am_row = amr_ref[0]                                  # (1, N)
    am_col = amc_ref[0]                                  # (tq, 1)
    add_att = (1.0 - am_row) * -10000.0                  # additive key mask

    # Pair-selection mask for the loss: valid query row (handles padded last q tile),
    # both tokens unmasked, off-diagonal.
    row_ids = qi * tq + lax.broadcasted_iota(jnp.int32, (tq, n_keys), 0)
    col_ids = lax.broadcasted_iota(jnp.int32, (tq, n_keys), 1)
    sel = jnp.logical_and(am_col * am_row > 0.5, row_ids != col_ids)
    sel = jnp.logical_and(sel, row_ids < n_keys)
    sel_f = sel.astype(jnp.float32)

    loss_num = jnp.zeros((1, 1), jnp.float32)
    ctx_heads = []
    for h in range(4):
        if h == 0:
            qh = q1_ref[0]                               # (tq, d)
            kh = k1_ref[0]                               # (N, d)
        else:
            qh = q_ref[h - 1, 0]
            kh = k_ref[h - 1, 0]
        vh = v_ref[h, 0]                                 # (N, d)

        s = lax.dot_general(qh.astype(jnp.bfloat16), kh.astype(jnp.bfloat16),
                            (((1,), (1,)), ((), ())),
                            preferred_element_type=jnp.float32)          # (tq, N)

        if h == 0:
            add_m = add_att
        else:
            # TODO(synk): Focal_loss is not defined in the reference source; substituting a
            # standard binary sigmoid focal loss (gamma=2, alpha=0.25, mean over selection).
            logits = s + add_att                          # raw scores + attention-mask term
            tgt = sm_ref[0, h - 1]                        # (tq, N)
            p = 1.0 / (1.0 + jnp.exp(-logits))
            per = (-focal_alpha * (1.0 - p) * (1.0 - p) * tgt * jnp.log(p + 1e-8)
                   - (1.0 - focal_alpha) * p * p * (1.0 - tgt) * jnp.log(1.0 - p + 1e-8))
            loss_num = loss_num + jnp.sum(jnp.where(sel, per, 0.0), keepdims=True)
            add_m = (1.0 - tgt) * -10000.0

        probs = _softmax_rows(s * scale + add_m)
        ctx_heads.append(jnp.dot(probs.astype(jnp.bfloat16), vh.astype(jnp.bfloat16),
                                 preferred_element_type=jnp.float32))

    # One lane-dense (tq, H) store for the 4 heads.
    ctx_ref[0] = jnp.concatenate(ctx_heads, axis=-1).astype(ctx_ref.dtype)

    loss_den = 3.0 * jnp.sum(sel_f, keepdims=True)       # 3 structure heads share the mask
    loss_ref[0, 0:1, :] = loss_ref[0, 0:1, :] + loss_num
    loss_ref[0, 1:2, :] = loss_ref[0, 1:2, :] + loss_den


def self_attention(q_heads, k_heads, v_heads, q1, k1, att_row, att_col, struct_mask,
                   *, d, scale):
    B, N = q1.shape[0], q1.shape[1]
    H = 4 * d
    tq = N if N <= _Q_TILE else _Q_TILE
    grid = (B, pl.cdiv(N, tq))
    return pl.pallas_call(
        functools.partial(_self_attention_kernel, scale=scale),
        out_shape=(jax.ShapeDtypeStruct((B, N, H), jnp.bfloat16),
                   jax.ShapeDtypeStruct((B, 2, 128), jnp.float32)),
        grid=grid,
        in_specs=[
            pl.BlockSpec((3, 1, tq, d), lambda b, q: (0, b, q, 0)),
            pl.BlockSpec((3, 1, N, d), lambda b, q: (0, b, 0, 0)),
            pl.BlockSpec((4, 1, N, d), lambda b, q: (0, b, 0, 0)),
            pl.BlockSpec((1, tq, d), lambda b, q: (b, q, 0)),
            pl.BlockSpec((1, N, d), lambda b, q: (b, 0, 0)),
            pl.BlockSpec((1, 1, N), lambda b, q: (b, 0, 0)),
            pl.BlockSpec((1, tq, 1), lambda b, q: (b, q, 0)),
            pl.BlockSpec((1, 3, tq, N), lambda b, q: (b, 0, q, 0)),
        ],
        out_specs=(pl.BlockSpec((1, tq, H), lambda b, q: (b, q, 0)),
                   pl.BlockSpec((1, 2, 128), lambda b, q: (b, 0, 0))),
        compiler_params=pltpu.CompilerParams(
            dimension_semantics=("parallel", "arbitrary"),
            vmem_limit_bytes=_VMEM_LIMIT),
    )(q_heads, k_heads, v_heads, q1, k1, att_row, att_col, struct_mask)


def _cross_attention_kernel(q_ref, k_ref, v_ref, cm_ref, o_ref, m_sc, l_sc, acc_sc,
                            *, nh, scale):
    """Flash-style cross-attention: online softmax over KV tiles, all heads per grid step,
    head-major inputs, additive mask built in-kernel from the (padded) cross_struct_mask."""
    j = pl.program_id(1)

    @pl.when(j == 0)
    def _():
        m_sc[...] = jnp.full_like(m_sc, -1e30)
        l_sc[...] = jnp.zeros_like(l_sc)
        acc_sc[...] = jnp.zeros_like(acc_sc)

    add_m = (1.0 - cm_ref[0, 0]) * -10000.0              # (N, tM)

    for h in range(nh):
        qh = q_ref[h, 0]                                  # (N, dqk)
        kh = k_ref[h, 0]                                  # (tM, dqk)
        vh = v_ref[h, 0]                                  # (tM, dv)
        s = lax.dot_general(qh.astype(jnp.bfloat16), kh.astype(jnp.bfloat16),
                            (((1,), (1,)), ((), ())),
                            preferred_element_type=jnp.float32) * scale + add_m
        m_prev = m_sc[h]
        m_new = jnp.maximum(m_prev, jnp.max(s, axis=-1, keepdims=True))
        alpha = jnp.exp(m_prev - m_new)
        p = jnp.exp(s - m_new)
        l_sc[h] = alpha * l_sc[h] + jnp.sum(p, axis=-1, keepdims=True)
        acc_sc[h] = alpha * acc_sc[h] + jnp.dot(p.astype(jnp.bfloat16), vh.astype(jnp.bfloat16),
                                                preferred_element_type=jnp.float32)
        m_sc[h] = m_new

    @pl.when(j == pl.num_programs(1) - 1)
    def _():
        ctx = jnp.concatenate(
            [acc_sc[h] * pl.reciprocal(l_sc[h], approx=True) for h in range(nh)], axis=-1)
        o_ref[0] = ctx.astype(o_ref.dtype)


def cross_attention(q_heads, k_heads, v_heads, cross_mask, *, scale):
    nh, B, N, dqk = q_heads.shape
    Mp = k_heads.shape[2]
    dv = v_heads.shape[3]
    H = nh * dv
    tM = Mp if Mp <= _KV_TILE else _KV_TILE
    grid = (B, pl.cdiv(Mp, tM))
    return pl.pallas_call(
        functools.partial(_cross_attention_kernel, nh=nh, scale=scale),
        out_shape=jax.ShapeDtypeStruct((B, N, H), jnp.bfloat16),
        grid=grid,
        in_specs=[
            pl.BlockSpec((nh, 1, N, dqk), lambda b, j: (0, b, 0, 0)),
            pl.BlockSpec((nh, 1, tM, dqk), lambda b, j: (0, b, j, 0)),
            pl.BlockSpec((nh, 1, tM, dv), lambda b, j: (0, b, j, 0)),
            pl.BlockSpec((1, 1, N, tM), lambda b, j: (b, 0, 0, j)),
        ],
        out_specs=pl.BlockSpec((1, N, H), lambda b, j: (b, 0, 0)),
        scratch_shapes=[pltpu.VMEM((nh, N, 1), jnp.float32),
                        pltpu.VMEM((nh, N, 1), jnp.float32),
                        pltpu.VMEM((nh, N, dv), jnp.float32)],
        compiler_params=pltpu.CompilerParams(
            dimension_semantics=("parallel", "arbitrary"),
            vmem_limit_bytes=_VMEM_LIMIT),
    )(q_heads, k_heads, v_heads, cross_mask)


# ------------------------------ parameters ---------------------------------- #

def init_params(key, H):
    d = H // 4
    ks = list(jax.random.split(key, 16))
    it = iter(ks)

    def w(shape):
        return jax.random.normal(next(it), shape, jnp.float32) * 0.02

    z = lambda n: jnp.zeros((n,), jnp.float32)
    o = lambda n: jnp.ones((n,), jnp.float32)
    return dict(
        # Struct self-attention
        q_w=w((H, 3 * d)), q_b=z(3 * d),
        k_w=w((H, 3 * d)), k_b=z(3 * d),
        v_w=w((H, H)), v_b=z(H),
        q1_w=w((H, d)), q1_b=z(d),
        k1_w=w((H, d)), k1_b=z(d),
        ln_g=o(H), ln_b=z(H),
        gnn_w=w((H, H)), gnn_b=z(H), gnn_ln_g=o(H), gnn_ln_b=z(H),
        # Cross_Attention
        ca_q_w=w((H, H // 4)), ca_q_b=z(H // 4),
        ca_k_w=w((H, H // 4)), ca_k_b=z(H // 4),
        ca_v_w=w((H, H)), ca_v_b=z(H),
        ca_out_w=w((H, H)), ca_out_b=z(H),
        ca_gate_w=w((2 * H, H)), ca_gate_b=jnp.full((H,), -1.0, jnp.float32),  # bias.fill_(-1.)
        ca_ln_g=o(H), ca_ln_b=z(H),
        # Output
        o_d1_w=w((H, H)), o_d1_b=z(H), o_ln1_g=o(H), o_ln1_b=z(H),
        o_d2_w=w((H, 2 * H)), o_d2_b=z(2 * H),
        o_d3_w=w((2 * H, H)), o_d3_b=z(H),
        o_ln3_g=o(H), o_ln3_b=z(H),
    )


def prepare_params(p, H):
    """One-time parameter prep: fuse/concat projection weights, pre-cast MXU weight operands
    to bf16, reshape biases / LN params to (1, n). Biases and LN params stay f32."""
    bf = jnp.bfloat16
    r = lambda v: v.reshape(1, -1)
    return dict(
        w_qkv=jnp.concatenate([p["q_w"], p["k_w"], p["v_w"]], axis=1).astype(bf),
        b_qkv=r(jnp.concatenate([p["q_b"], p["k_b"], p["v_b"]])),
        ln_g=r(p["ln_g"]), ln_b=r(p["ln_b"]),
        w_q1k1=jnp.concatenate([p["q1_w"], p["k1_w"]], axis=1).astype(bf),
        b_q1k1=r(jnp.concatenate([p["q1_b"], p["k1_b"]])),
        gnn_w=p["gnn_w"].astype(bf), gnn_b=r(p["gnn_b"]),
        gnn_ln_g=r(p["gnn_ln_g"]), gnn_ln_b=r(p["gnn_ln_b"]),
        ca_q_w=p["ca_q_w"].astype(bf), ca_q_b=r(p["ca_q_b"]),
        w_kv_enc=jnp.concatenate([p["ca_k_w"], p["ca_v_w"]], axis=1).astype(bf),
        b_kv_enc=r(jnp.concatenate([p["ca_k_b"], p["ca_v_b"]])),
        ca_out_w=p["ca_out_w"].astype(bf), ca_out_b=r(p["ca_out_b"]),
        gate_w1=p["ca_gate_w"][:H].astype(bf), gate_w2=p["ca_gate_w"][H:].astype(bf),
        gate_b=r(p["ca_gate_b"]),
        ca_ln_g=r(p["ca_ln_g"]), ca_ln_b=r(p["ca_ln_b"]),
        o_d1_w=p["o_d1_w"].astype(bf), o_d1_b=r(p["o_d1_b"]),
        o_ln1_g=r(p["o_ln1_g"]), o_ln1_b=r(p["o_ln1_b"]),
        o_d2_w=p["o_d2_w"].astype(bf), o_d2_b=r(p["o_d2_b"]),
        o_d3_w=p["o_d3_w"].astype(bf), o_d3_b=r(p["o_d3_b"]),
        o_ln3_g=r(p["o_ln3_g"]), o_ln3_b=r(p["o_ln3_b"]),
    )


# ------------------------------ forward pass --------------------------------- #

@functools.partial(jax.jit, static_argnames=("num_heads",))
def struct_self_attention_forward(prep, hidden_states, attention_mask, structure_mask,
                                  layer_idx, Sentence_em, entity_id_em, cross_struct_mask,
                                  encoder_hidden_states, encoder_attention_mask,
                                  num_heads=4):
    del encoder_attention_mask  # unused by Cross_Attention.forward (matches reference)
    B, N, H = hidden_states.shape
    d = H // num_heads
    R = B * N
    x2d = hidden_states.reshape(R, H)

    # 1) fused [query|key|value] projection -> head-major q/k/v (single pass over x)
    qh, kh, vh = _row_tiled_call(
        _qkv_proj_kernel, [x2d], [prep["w_qkv"], prep["b_qkv"]],
        [(3, d, jnp.bfloat16), (3, d, jnp.bfloat16), (4, d, jnp.bfloat16)], d=d)
    qh = qh.reshape(3, B, N, d)
    kh = kh.reshape(3, B, N, d)
    vh = vh.reshape(4, B, N, d)

    # 2) fused (x + Sentence_em + entity_id_em) -> LayerNorm -> [query1 | key1]
    q1, k1 = _row_tiled_call(
        _q1k1_kernel,
        [x2d, Sentence_em[layer_idx].reshape(R, H), entity_id_em[layer_idx].reshape(R, H)],
        [prep["ln_g"], prep["ln_b"], prep["w_q1k1"], prep["b_q1k1"]],
        [(None, d, jnp.bfloat16), (None, d, jnp.bfloat16)], d=d, eps=LN_EPS)
    q1 = q1.reshape(B, N, d)
    k1 = k1.reshape(B, N, d)

    # 3) fused 4-head self-attention + in-kernel focal-loss partial sums
    att_row = attention_mask.astype(jnp.float32).reshape(B, 1, N)
    att_col = attention_mask.astype(jnp.float32).reshape(B, N, 1)
    ctx, loss_parts = self_attention(qh, kh, vh, q1, k1, att_row, att_col,
                                     structure_mask.astype(jnp.float32),
                                     d=d, scale=1.0 / math.sqrt(d))
    loss = jnp.sum(loss_parts[:, 0, 0]) / jnp.maximum(jnp.sum(loss_parts[:, 1, 0]), 1.0)

    # 4) fused GNN linear + LayerNorm, also emitting the head-major cross-attn query
    ca_nh = 4
    ca_dqk = (H // 4) // ca_nh
    ca_dv = H // ca_nh
    GNN_out, caq = _row_tiled_call(
        _gnn_query_kernel, [ctx.reshape(R, H)],
        [prep["gnn_w"], prep["gnn_b"], prep["gnn_ln_g"], prep["gnn_ln_b"],
         prep["ca_q_w"], prep["ca_q_b"]],
        [(None, H, jnp.bfloat16), (ca_nh, ca_dqk, jnp.bfloat16)],
        nh=ca_nh, dqk=ca_dqk, eps=LN_EPS)
    caq = caq.reshape(ca_nh, B, N, ca_dqk)

    # 5) fused encoder [key|value] projection -> head-major K/V (M padded to the KV tile)
    enc = encoder_hidden_states[layer_idx]                                # (B, M, H)
    M = enc.shape[1]
    Mp = _round_up(M, 8) if M <= _KV_TILE else _round_up(M, _KV_TILE)
    cmask = cross_struct_mask.astype(jnp.float32)
    if Mp != M:
        enc = jnp.pad(enc, ((0, 0), (0, Mp - M), (0, 0)))
        cmask = jnp.pad(cmask, ((0, 0), (0, 0), (0, 0), (0, Mp - M)))     # padded keys masked
    cak, cav = _row_tiled_call(
        _enc_kv_kernel, [enc.reshape(B * Mp, H)],
        [prep["w_kv_enc"], prep["b_kv_enc"]],
        [(ca_nh, ca_dqk, jnp.bfloat16), (ca_nh, ca_dv, jnp.bfloat16)],
        nh=ca_nh, dqk=ca_dqk, dv=ca_dv)
    cak = cak.reshape(ca_nh, B, Mp, ca_dqk)
    cav = cav.reshape(ca_nh, B, Mp, ca_dv)

    # 6) flash-style cross-attention (online softmax over KV tiles)
    ca_ctx = cross_attention(caq, cak, cav, cmask, scale=1.0 / math.sqrt(ca_dqk))

    # 7) fused cross output linear + gate(sigmoid) + mix + LayerNorm
    Cross_out = _row_tiled_call(
        _cross_gate_kernel, [ca_ctx.reshape(R, H), GNN_out],
        [prep["ca_out_w"], prep["ca_out_b"], prep["gate_w1"], prep["gate_w2"],
         prep["gate_b"], prep["ca_ln_g"], prep["ca_ln_b"]],
        [(None, H, jnp.bfloat16)], eps=LN_EPS)

    # 8) fused Output block: dense1 + residual + LN1 + dense2 + GELU + dense3 + residual + LN3
    out = _row_tiled_call(
        _output_block_kernel, [Cross_out, x2d],
        [prep["o_d1_w"], prep["o_d1_b"], prep["o_ln1_g"], prep["o_ln1_b"],
         prep["o_d2_w"], prep["o_d2_b"], prep["o_d3_w"], prep["o_d3_b"],
         prep["o_ln3_g"], prep["o_ln3_b"]],
        [(None, H, jnp.float32)], eps=LN_EPS)
    return out.reshape(B, N, H), loss


# ----------------------------------- main ------------------------------------ #

if __name__ == "__main__":
    key = jax.random.PRNGKey(0)
    B, N, M, H, L = 2, 8, 16, 32, 2
    kx, km, ks, kse, ken, kcm, kenc, kp = jax.random.split(key, 8)

    hidden_states = jax.random.normal(kx, (B, N, H), jnp.float32)
    attention_mask = (jax.random.uniform(km, (B, N)) > 0.2).astype(jnp.float32)
    structure_mask = (jax.random.uniform(ks, (B, 3, N, N)) > 0.5).astype(jnp.float32)
    Sentence_em = jax.random.normal(kse, (L, B, N, H), jnp.float32) * 0.1
    entity_id_em = jax.random.normal(ken, (L, B, N, H), jnp.float32) * 0.1
    cross_struct_mask = (jax.random.uniform(kcm, (B, 1, N, M)) > 0.3).astype(jnp.float32)
    encoder_hidden_states = jax.random.normal(kenc, (L, B, M, H), jnp.float32)
    encoder_attention_mask = jnp.ones((B, M), jnp.float32)  # unused by Cross_Attention

    params = init_params(kp, H)
    prep = prepare_params(params, H)

    out, loss = struct_self_attention_forward(
        prep, hidden_states, attention_mask, structure_mask, 0,
        Sentence_em, entity_id_em, cross_struct_mask,
        encoder_hidden_states, encoder_attention_mask, num_heads=4)

    jax.block_until_ready((out, loss))
    assert out.shape == (B, N, H)
    assert bool(jnp.isfinite(out).all()) and bool(jnp.isfinite(loss))
    print("KERNEL_OK")
</pallas_src>

<mosaic_0001>
module attributes {stable_mosaic.version = 11 : i64} {
  func.func @_q1k1_kernel(%arg0: i32, %arg1: memref<16x32xf32, #tpu.memory_space<vmem>>, %arg2: memref<16x32xf32, #tpu.memory_space<vmem>>, %arg3: memref<16x32xf32, #tpu.memory_space<vmem>>, %arg4: memref<1x32xf32, #tpu.memory_space<vmem>>, %arg5: memref<1x32xf32, #tpu.memory_space<vmem>>, %arg6: memref<32x16xbf16, #tpu.memory_space<vmem>>, %arg7: memref<1x16xf32, #tpu.memory_space<vmem>>, %arg8: memref<16x8xbf16, #tpu.memory_space<vmem>>, %arg9: memref<16x8xbf16, #tpu.memory_space<vmem>>) attributes {dimension_semantics = [#tpu.dimension_semantics<parallel>], iteration_bounds = array<i64: 1>, scalar_prefetch = 0 : i64, scratch_operands = 0 : i64, tpu.core_type = #tpu.core_type<tc>, window_params = [{transform_indices = @transform_0, window_bounds = array<i64: 16, 32>}, {transform_indices = @transform_1, window_bounds = array<i64: 16, 32>}, {transform_indices = @transform_2, window_bounds = array<i64: 16, 32>}, {pipeline_mode = #tpu.pipeline_mode<synchronous>, transform_indices = @transform_3, window_bounds = array<i64: 1, 32>}, {pipeline_mode = #tpu.pipeline_mode<synchronous>, transform_indices = @transform_4, window_bounds = array<i64: 1, 32>}, {pipeline_mode = #tpu.pipeline_mode<synchronous>, transform_indices = @transform_5, window_bounds = array<i64: 32, 16>}, {pipeline_mode = #tpu.pipeline_mode<synchronous>, transform_indices = @transform_6, window_bounds = array<i64: 1, 16>}, {transform_indices = @transform_7, window_bounds = array<i64: 16, 8>}, {transform_indices = @transform_8, window_bounds = array<i64: 16, 8>}]} {
    %c0 = arith.constant 0 : index
    %c0_0 = arith.constant 0 : index
    %0 = vector.load %arg1[%c0, %c0_0] : memref<16x32xf32, #tpu.memory_space<vmem>>, vector<16x32xf32>
    %c0_1 = arith.constant 0 : index
    %c0_2 = arith.constant 0 : index
    %1 = vector.load %arg2[%c0_1, %c0_2] : memref<16x32xf32, #tpu.memory_space<vmem>>, vector<16x32xf32>
    %2 = arith.addf %0, %1 : vector<16x32xf32>
    %c0_3 = arith.constant 0 : index
    %c0_4 = arith.constant 0 : index
    %3 = vector.load %arg3[%c0_3, %c0_4] : memref<16x32xf32, #tpu.memory_space<vmem>>, vector<16x32xf32>
    %4 = arith.addf %2, %3 : vector<16x32xf32>
    %c0_5 = arith.constant 0 : index
    %c0_6 = arith.constant 0 : index
    %5 = vector.load %arg4[%c0_5, %c0_6] : memref<1x32xf32, #tpu.memory_space<vmem>>, vector<1x32xf32>
    %c0_7 = arith.constant 0 : index
    %c0_8 = arith.constant 0 : index
    %6 = vector.load %arg5[%c0_7, %c0_8] : memref<1x32xf32, #tpu.memory_space<vmem>>, vector<1x32xf32>
    %cst = arith.constant dense<0.000000e+00> : vector<16xf32>
    %7 = vector.multi_reduction <add>, %4, %cst [1] : vector<16x32xf32> to vector<16xf32>
    %8 = vector.shape_cast %7 : vector<16xf32> to vector<16x1xf32>
    %cst_9 = arith.constant 3.200000e+01 : f32
    %9 = vector.broadcast %cst_9 : f32 to vector<16x1xf32>
    %10 = arith.divf %8, %9 : vector<16x1xf32>
    %11 = vector.broadcast %10 : vector<16x1xf32> to vector<16x32xf32>
    %12 = arith.subf %4, %11 : vector<16x32xf32>
    %13 = arith.mulf %12, %12 : vector<16x32xf32>
    %cst_10 = arith.constant dense<0.000000e+00> : vector<16xf32>
    %14 = vector.multi_reduction <add>, %13, %cst_10 [1] : vector<16x32xf32> to vector<16xf32>
    %15 = vector.shape_cast %14 : vector<16xf32> to vector<16x1xf32>
    %cst_11 = arith.constant 3.200000e+01 : f32
    %16 = vector.broadcast %cst_11 : f32 to vector<16x1xf32>
    %17 = arith.divf %15, %16 : vector<16x1xf32>
    %18 = vector.broadcast %10 : vector<16x1xf32> to vector<16x32xf32>
    %19 = arith.subf %4, %18 : vector<16x32xf32>
    %cst_12 = arith.constant 9.99999996E-13 : f32
    %20 = vector.broadcast %cst_12 : f32 to vector<16x1xf32>
    %21 = arith.addf %17, %20 : vector<16x1xf32>
    %22 = math.rsqrt %21 : vector<16x1xf32>
    %23 = vector.broadcast %22 : vector<16x1xf32> to vector<16x32xf32>
    %24 = arith.mulf %19, %23 : vector<16x32xf32>
    %25 = vector.broadcast %5 : vector<1x32xf32> to vector<16x32xf32>
    %26 = arith.mulf %24, %25 : vector<16x32xf32>
    %27 = vector.broadcast %6 : vector<1x32xf32> to vector<16x32xf32>
    %28 = arith.addf %26, %27 : vector<16x32xf32>
    %29 = arith.truncf %28 : vector<16x32xf32> to vector<16x32xbf16>
    %c0_13 = arith.constant 0 : index
    %c0_14 = arith.constant 0 : index
    %30 = vector.load %arg6[%c0_13, %c0_14] : memref<32x16xbf16, #tpu.memory_space<vmem>>, vector<32x16xbf16>
    %cst_15 = arith.constant dense<0.000000e+00> : vector<16x16xf32>
    %31 = tpu.matmul %29, %30, %cst_15 {dimension_numbers = #tpu.dot_dimension_numbers<[1], [0], [0], [1], [0, 0, 1, 1], [], []>} : vector<16x32xbf16>, vector<32x16xbf16>, vector<16x16xf32> -> vector<16x16xf32>
    %c0_16 = arith.constant 0 : index
    %c0_17 = arith.constant 0 : index
    %32 = vector.load %arg7[%c0_16, %c0_17] : memref<1x16xf32, #tpu.memory_space<vmem>>, vector<1x16xf32>
    %33 = vector.broadcast %32 : vector<1x16xf32> to vector<16x16xf32>
    %34 = arith.addf %31, %33 : vector<16x16xf32>
    %35 = vector.extract_strided_slice %34 {offsets = [0, 0], sizes = [16, 8], strides = [1, 1]} : vector<16x16xf32> to vector<16x8xf32>
    %36 = arith.truncf %35 : vector<16x8xf32> to vector<16x8xbf16>
    %c0_18 = arith.constant 0 : index
    %c0_19 = arith.constant 0 : index
    %37 = vector.load %arg8[%c0_18, %c0_19] : memref<16x8xbf16, #tpu.memory_space<vmem>>, vector<16x8xbf16>
    tpu.vector_store %arg8[%c0_18, %c0_19], %36 {strides = array<i32>} : memref<16x8xbf16, #tpu.memory_space<vmem>>, vector<16x8xbf16>,
    %38 = vector.extract_strided_slice %34 {offsets = [0, 8], sizes = [16, 8], strides = [1, 1]} : vector<16x16xf32> to vector<16x8xf32>
    %39 = arith.truncf %38 : vector<16x8xf32> to vector<16x8xbf16>
    %c0_20 = arith.constant 0 : index
    %c0_21 = arith.constant 0 : index
    %40 = vector.load %arg9[%c0_20, %c0_21] : memref<16x8xbf16, #tpu.memory_space<vmem>>, vector<16x8xbf16>
    tpu.vector_store %arg9[%c0_20, %c0_21], %39 {strides = array<i32>} : memref<16x8xbf16, #tpu.memory_space<vmem>>, vector<16x8xbf16>,
    return
  }
  func.func @transform_0(%arg0: i32) -> (i32, i32) {
    %c0_i32 = arith.constant 0 : i32
    %c0_i32_0 = arith.constant 0 : i32
    return %arg0, %c0_i32 : i32, i32
  }
  func.func @transform_1(%arg0: i32) -> (i32, i32) {
    %c0_i32 = arith.constant 0 : i32
    %c0_i32_0 = arith.constant 0 : i32
    return %arg0, %c0_i32 : i32, i32
  }
  func.func @transform_2(%arg0: i32) -> (i32, i32) {
    %c0_i32 = arith.constant 0 : i32
    %c0_i32_0 = arith.constant 0 : i32
    return %arg0, %c0_i32 : i32, i32
  }
  func.func @transform_3(%arg0: i32) -> (i32, i32) {
    %c0_i32 = arith.constant 0 : i32
    %c0_i32_0 = arith.constant 0 : i32
    %c0_i32_1 = arith.constant 0 : i32
    return %c0_i32, %c0_i32_0 : i32, i32
  }
  func.func @transform_4(%arg0: i32) -> (i32, i32) {
    %c0_i32 = arith.constant 0 : i32
    %c0_i32_0 = arith.constant 0 : i32
    %c0_i32_1 = arith.constant 0 : i32
    return %c0_i32, %c0_i32_0 : i32, i32
  }
  func.func @transform_5(%arg0: i32) -> (i32, i32) {
    %c0_i32 = arith.constant 0 : i32
    %c0_i32_0 = arith.constant 0 : i32
    %c0_i32_1 = arith.constant 0 : i32
    return %c0_i32, %c0_i32_0 : i32, i32
  }
  func.func @transform_6(%arg0: i32) -> (i32, i32) {
    %c0_i32 = arith.constant 0 : i32
    %c0_i32_0 = arith.constant 0 : i32
    %c0_i32_1 = arith.constant 0 : i32
    return %c0_i32, %c0_i32_0 : i32, i32
  }
  func.func @transform_7(%arg0: i32) -> (i32, i32) {
    %c0_i32 = arith.constant 0 : i32
    %c0_i32_0 = arith.constant 0 : i32
    return %arg0, %c0_i32 : i32, i32
  }
  func.func @transform_8(%arg0: i32) -> (i32, i32) {
    %c0_i32 = arith.constant 0 : i32
    %c0_i32_0 = arith.constant 0 : i32
    return %arg0, %c0_i32 : i32, i32
  }
}

module attributes {stable_mosaic.version = 11 : i64} {
  func.func @_qkv_proj_kernel(%arg0: i32, %arg1: memref<16x32xf32, #tpu.memory_space<vmem>>, %arg2: memref<32x80xbf16, #tpu.memory_space<vmem>>, %arg3: memref<1x80xf32, #tpu.memory_space<vmem>>, %arg4: memref<3x16x8xbf16, #tpu.memory_space<vmem>>, %arg5: memref<3x16x8xbf16, #tpu.memory_space<vmem>>, %arg6: memref<4x16x8xbf16, #tpu.memory_space<vmem>>) attributes {dimension_semantics = [#tpu.dimension_semantics<parallel>], iteration_bounds = array<i64: 1>, scalar_prefetch = 0 : i64, scratch_operands = 0 : i64, tpu.core_type = #tpu.core_type<tc>, window_params = [{transform_indices = @transform_0, window_bounds = array<i64: 16, 32>}, {pipeline_mode = #tpu.pipeline_mode<synchronous>, transform_indices = @transform_1, window_bounds = array<i64: 32, 80>}, {pipeline_mode = #tpu.pipeline_mode<synchronous>, transform_indices = @transform_2, window_bounds = array<i64: 1, 80>}, {transform_indices = @transform_3, window_bounds = array<i64: 3, 16, 8>}, {transform_indices = @transform_4, window_bounds = array<i64: 3, 16, 8>}, {transform_indices = @transform_5, window_bounds = array<i64: 4, 16, 8>}]} {
    %c0 = arith.constant 0 : index
    %c0_0 = arith.constant 0 : index
    %0 = vector.load %arg1[%c0, %c0_0] : memref<16x32xf32, #tpu.memory_space<vmem>>, vector<16x32xf32>
    %1 = arith.truncf %0 : vector<16x32xf32> to vector<16x32xbf16>
    %c0_1 = arith.constant 0 : index
    %c0_2 = arith.constant 0 : index
    %2 = vector.load %arg2[%c0_1, %c0_2] : memref<32x80xbf16, #tpu.memory_space<vmem>>, vector<32x80xbf16>
    %cst = arith.constant dense<0.000000e+00> : vector<16x80xf32>
    %3 = tpu.matmul %1, %2, %cst {dimension_numbers = #tpu.dot_dimension_numbers<[1], [0], [0], [1], [0, 0, 1, 1], [], []>} : vector<16x32xbf16>, vector<32x80xbf16>, vector<16x80xf32> -> vector<16x80xf32>
    %c0_3 = arith.constant 0 : index
    %c0_4 = arith.constant 0 : index
    %4 = vector.load %arg3[%c0_3, %c0_4] : memref<1x80xf32, #tpu.memory_space<vmem>>, vector<1x80xf32>
    %5 = vector.broadcast %4 : vector<1x80xf32> to vector<16x80xf32>
    %6 = arith.addf %3, %5 : vector<16x80xf32>
    %7 = vector.extract_strided_slice %6 {offsets = [0, 0], sizes = [16, 8], strides = [1, 1]} : vector<16x80xf32> to vector<16x8xf32>
    %8 = arith.truncf %7 : vector<16x8xf32> to vector<16x8xbf16>
    %c0_5 = arith.constant 0 : index
    %c0_6 = arith.constant 0 : index
    %c0_7 = arith.constant 0 : index
    %9 = vector.load %arg4[%c0_5, %c0_6, %c0_7] : memref<3x16x8xbf16, #tpu.memory_space<vmem>>, vector<1x16x8xbf16>
    %10 = vector.shape_cast %9 : vector<1x16x8xbf16> to vector<16x8xbf16>
    %11 = vector.shape_cast %8 : vector<16x8xbf16> to vector<1x16x8xbf16>
    tpu.vector_store %arg4[%c0_5, %c0_6, %c0_7], %11 {strides = array<i32>} : memref<3x16x8xbf16, #tpu.memory_space<vmem>>, vector<1x16x8xbf16>,
    %12 = vector.extract_strided_slice %6 {offsets = [0, 24], sizes = [16, 8], strides = [1, 1]} : vector<16x80xf32> to vector<16x8xf32>
    %13 = arith.truncf %12 : vector<16x8xf32> to vector<16x8xbf16>
    %c0_8 = arith.constant 0 : index
    %c0_9 = arith.constant 0 : index
    %c0_10 = arith.constant 0 : index
    %14 = vector.load %arg5[%c0_8, %c0_9, %c0_10] : memref<3x16x8xbf16, #tpu.memory_space<vmem>>, vector<1x16x8xbf16>
    %15 = vector.shape_cast %14 : vector<1x16x8xbf16> to vector<16x8xbf16>
    %16 = vector.shape_cast %13 : vector<16x8xbf16> to vector<1x16x8xbf16>
    tpu.vector_store %arg5[%c0_8, %c0_9, %c0_10], %16 {strides = array<i32>} : memref<3x16x8xbf16, #tpu.memory_space<vmem>>, vector<1x16x8xbf16>,
    %17 = vector.extract_strided_slice %6 {offsets = [0, 8], sizes = [16, 8], strides = [1, 1]} : vector<16x80xf32> to vector<16x8xf32>
    %18 = arith.truncf %17 : vector<16x8xf32> to vector<16x8xbf16>
    %c1 = arith.constant 1 : index
    %c0_11 = arith.constant 0 : index
    %c0_12 = arith.constant 0 : index
    %19 = vector.load %arg4[%c1, %c0_11, %c0_12] : memref<3x16x8xbf16, #tpu.memory_space<vmem>>, vector<1x16x8xbf16>
    %20 = vector.shape_cast %19 : vector<1x16x8xbf16> to vector<16x8xbf16>
    %21 = vector.shape_cast %18 : vector<16x8xbf16> to vector<1x16x8xbf16>
    tpu.vector_store %arg4[%c1, %c0_11, %c0_12], %21 {strides = array<i32>} : memref<3x16x8xbf16, #tpu.memory_space<vmem>>, vector<1x16x8xbf16>,
    %22 = vector.extract_strided_slice %6 {offsets = [0, 32], sizes = [16, 8], strides = [1, 1]} : vector<16x80xf32> to vector<16x8xf32>
    %23 = arith.truncf %22 : vector<16x8xf32> to vector<16x8xbf16>
    %c1_13 = arith.constant 1 : index
    %c0_14 = arith.constant 0 : index
    %c0_15 = arith.constant 0 : index
    %24 = vector.load %arg5[%c1_13, %c0_14, %c0_15] : memref<3x16x8xbf16, #tpu.memory_space<vmem>>, vector<1x16x8xbf16>
    %25 = vector.shape_cast %24 : vector<1x16x8xbf16> to vector<16x8xbf16>
    %26 = vector.shape_cast %23 : vector<16x8xbf16> to vector<1x16x8xbf16>
    tpu.vector_store %arg5[%c1_13, %c0_14, %c0_15], %26 {strides = array<i32>} : memref<3x16x8xbf16, #tpu.memory_space<vmem>>, vector<1x16x8xbf16>,
    %27 = vector.extract_strided_slice %6 {offsets = [0, 16], sizes = [16, 8], strides = [1, 1]} : vector<16x80xf32> to vector<16x8xf32>
    %28 = arith.truncf %27 : vector<16x8xf32> to vector<16x8xbf16>
    %c2 = arith.constant 2 : index
    %c0_16 = arith.constant 0 : index
    %c0_17 = arith.constant 0 : index
    %29 = vector.load %arg4[%c2, %c0_16, %c0_17] : memref<3x16x8xbf16, #tpu.memory_space<vmem>>, vector<1x16x8xbf16>
    %30 = vector.shape_cast %29 : vector<1x16x8xbf16> to vector<16x8xbf16>
    %31 = vector.shape_cast %28 : vector<16x8xbf16> to vector<1x16x8xbf16>
    tpu.vector_store %arg4[%c2, %c0_16, %c0_17], %31 {strides = array<i32>} : memref<3x16x8xbf16, #tpu.memory_space<vmem>>, vector<1x16x8xbf16>,
    %32 = vector.extract_strided_slice %6 {offsets = [0, 40], sizes = [16, 8], strides = [1, 1]} : vector<16x80xf32> to vector<16x8xf32>
    %33 = arith.truncf %32 : vector<16x8xf32> to vector<16x8xbf16>
    %c2_18 = arith.constant 2 : index
    %c0_19 = arith.constant 0 : index
    %c0_20 = arith.constant 0 : index
    %34 = vector.load %arg5[%c2_18, %c0_19, %c0_20] : memref<3x16x8xbf16, #tpu.memory_space<vmem>>, vector<1x16x8xbf16>
    %35 = vector.shape_cast %34 : vector<1x16x8xbf16> to vector<16x8xbf16>
    %36 = vector.shape_cast %33 : vector<16x8xbf16> to vector<1x16x8xbf16>
    tpu.vector_store %arg5[%c2_18, %c0_19, %c0_20], %36 {strides = array<i32>} : memref<3x16x8xbf16, #tpu.memory_space<vmem>>, vector<1x16x8xbf16>,
    %37 = vector.extract_strided_slice %6 {offsets = [0, 48], sizes = [16, 8], strides = [1, 1]} : vector<16x80xf32> to vector<16x8xf32>
    %38 = arith.truncf %37 : vector<16x8xf32> to vector<16x8xbf16>
    %c0_21 = arith.constant 0 : index
    %c0_22 = arith.constant 0 : index
    %c0_23 = arith.constant 0 : index
    %39 = vector.load %arg6[%c0_21, %c0_22, %c0_23] : memref<4x16x8xbf16, #tpu.memory_space<vmem>>, vector<1x16x8xbf16>
    %40 = vector.shape_cast %39 : vector<1x16x8xbf16> to vector<16x8xbf16>
    %41 = vector.shape_cast %38 : vector<16x8xbf16> to vector<1x16x8xbf16>
    tpu.vector_store %arg6[%c0_21, %c0_22, %c0_23], %41 {strides = array<i32>} : memref<4x16x8xbf16, #tpu.memory_space<vmem>>, vector<1x16x8xbf16>,
    %42 = vector.extract_strided_slice %6 {offsets = [0, 56], sizes = [16, 8], strides = [1, 1]} : vector<16x80xf32> to vector<16x8xf32>
    %43 = arith.truncf %42 : vector<16x8xf32> to vector<16x8xbf16>
    %c1_24 = arith.constant 1 : index
    %c0_25 = arith.constant 0 : index
    %c0_26 = arith.constant 0 : index
    %44 = vector.load %arg6[%c1_24, %c0_25, %c0_26] : memref<4x16x8xbf16, #tpu.memory_space<vmem>>, vector<1x16x8xbf16>
    %45 = vector.shape_cast %44 : vector<1x16x8xbf16> to vector<16x8xbf16>
    %46 = vector.shape_cast %43 : vector<16x8xbf16> to vector<1x16x8xbf16>
    tpu.vector_store %arg6[%c1_24, %c0_25, %c0_26], %46 {strides = array<i32>} : memref<4x16x8xbf16, #tpu.memory_space<vmem>>, vector<1x16x8xbf16>,
    %47 = vector.extract_strided_slice %6 {offsets = [0, 64], sizes = [16, 8], strides = [1, 1]} : vector<16x80xf32> to vector<16x8xf32>
    %48 = arith.truncf %47 : vector<16x8xf32> to vector<16x8xbf16>
    %c2_27 = arith.constant 2 : index
    %c0_28 = arith.constant 0 : index
    %c0_29 = arith.constant 0 : index
    %49 = vector.load %arg6[%c2_27, %c0_28, %c0_29] : memref<4x16x8xbf16, #tpu.memory_space<vmem>>, vector<1x16x8xbf16>
    %50 = vector.shape_cast %49 : vector<1x16x8xbf16> to vector<16x8xbf16>
    %51 = vector.shape_cast %48 : vector<16x8xbf16> to vector<1x16x8xbf16>
    tpu.vector_store %arg6[%c2_27, %c0_28, %c0_29], %51 {strides = array<i32>} : memref<4x16x8xbf16, #tpu.memory_space<vmem>>, vector<1x16x8xbf16>,
    %52 = vector.extract_strided_slice %6 {offsets = [0, 72], sizes = [16, 8], strides = [1, 1]} : vector<16x80xf32> to vector<16x8xf32>
    %53 = arith.truncf %52 : vector<16x8xf32> to vector<16x8xbf16>
    %c3 = arith.constant 3 : index
    %c0_30 = arith.constant 0 : index
    %c0_31 = arith.constant 0 : index
    %54 = vector.load %arg6[%c3, %c0_30, %c0_31] : memref<4x16x8xbf16, #tpu.memory_space<vmem>>, vector<1x16x8xbf16>
    %55 = vector.shape_cast %54 : vector<1x16x8xbf16> to vector<16x8xbf16>
    %56 = vector.shape_cast %53 : vector<16x8xbf16> to vector<1x16x8xbf16>
    tpu.vector_store %arg6[%c3, %c0_30, %c0_31], %56 {strides = array<i32>} : memref<4x16x8xbf16, #tpu.memory_space<vmem>>, vector<1x16x8xbf16>,
    return
  }
  func.func @transform_0(%arg0: i32) -> (i32, i32) {
    %c0_i32 = arith.constant 0 : i32
    %c0_i32_0 = arith.constant 0 : i32
    return %arg0, %c0_i32 : i32, i32
  }
  func.func @transform_1(%arg0: i32) -> (i32, i32) {
    %c0_i32 = arith.constant 0 : i32
    %c0_i32_0 = arith.constant 0 : i32
    %c0_i32_1 = arith.constant 0 : i32
    return %c0_i32, %c0_i32_0 : i32, i32
  }
  func.func @transform_2(%arg0: i32) -> (i32, i32) {
    %c0_i32 = arith.constant 0 : i32
    %c0_i32_0 = arith.constant 0 : i32
    %c0_i32_1 = arith.constant 0 : i32
    return %c0_i32, %c0_i32_0 : i32, i32
  }
  func.func @transform_3(%arg0: i32) -> (i32, i32, i32) {
    %c0_i32 = arith.constant 0 : i32
    %c0_i32_0 = arith.constant 0 : i32
    %c0_i32_1 = arith.constant 0 : i32
    return %c0_i32, %arg0, %c0_i32_0 : i32, i32, i32
  }
  func.func @transform_4(%arg0: i32) -> (i32, i32, i32) {
    %c0_i32 = arith.constant 0 : i32
    %c0_i32_0 = arith.constant 0 : i32
    %c0_i32_1 = arith.constant 0 : i32
    return %c0_i32, %arg0, %c0_i32_0 : i32, i32, i32
  }
  func.func @transform_5(%arg0: i32) -> (i32, i32, i32) {
    %c0_i32 = arith.constant 0 : i32
    %c0_i32_0 = arith.constant 0 : i32
    %c0_i32_1 = arith.constant 0 : i32
    return %c0_i32, %arg0, %c0_i32_0 : i32, i32, i32
  }
}

module attributes {stable_mosaic.version = 11 : i64} {
  func.func @_self_attention_kernel(%arg0: i32, %arg1: i32, %arg2: memref<3x1x8x8xbf16, #tpu.memory_space<vmem>>, %arg3: memref<3x1x8x8xbf16, #tpu.memory_space<vmem>>, %arg4: memref<4x1x8x8xbf16, #tpu.memory_space<vmem>>, %arg5: memref<1x8x8xbf16, #tpu.memory_space<vmem>>, %arg6: memref<1x8x8xbf16, #tpu.memory_space<vmem>>, %arg7: memref<1x1x8xf32, #tpu.memory_space<vmem>>, %arg8: memref<1x8x1xf32, #tpu.memory_space<vmem>>, %arg9: memref<1x3x8x8xf32, #tpu.memory_space<vmem>>, %arg10: memref<1x8x32xbf16, #tpu.memory_space<vmem>>, %arg11: memref<1x2x128xf32, #tpu.memory_space<vmem>>) attributes {dimension_semantics = [#tpu.dimension_semantics<parallel>, #tpu.dimension_semantics<arbitrary>], iteration_bounds = array<i64: 2, 1>, scalar_prefetch = 0 : i64, scratch_operands = 0 : i64, tpu.core_type = #tpu.core_type<tc>, window_params = [{transform_indices = @transform_0, window_bounds = array<i64: 3, 1, 8, 8>}, {transform_indices = @transform_1, window_bounds = array<i64: 3, 1, 8, 8>}, {transform_indices = @transform_2, window_bounds = array<i64: 4, 1, 8, 8>}, {transform_indices = @transform_3, window_bounds = array<i64: 1, 8, 8>}, {transform_indices = @transform_4, window_bounds = array<i64: 1, 8, 8>}, {transform_indices = @transform_5, window_bounds = array<i64: 1, 1, 8>}, {transform_indices = @transform_6, window_bounds = array<i64: 1, 8, 1>}, {transform_indices = @transform_7, window_bounds = array<i64: 1, 3, 8, 8>}, {transform_indices = @transform_8, window_bounds = array<i64: 1, 8, 32>}, {transform_indices = @transform_9, window_bounds = array<i64: 1, 2, 128>}]} {
    %c0_i32 = arith.constant 0 : i32
    %0 = arith.cmpi eq, %arg1, %c0_i32 : i32
    %1 = arith.extui %0 : i1 to i32
    %c0_i32_0 = arith.constant 0 : i32
    %2 = arith.cmpi ne, %1, %c0_i32_0 : i32
    scf.if %2 {
      %cst_147 = arith.constant 0.000000e+00 : f32
      %288 = vector.broadcast %cst_147 : f32 to vector<1x2x128xf32>
      %c0_148 = arith.constant 0 : index
      %c0_149 = arith.constant 0 : index
      %c0_150 = arith.constant 0 : index
      %289 = vector.load %arg11[%c0_148, %c0_149, %c0_150] : memref<1x2x128xf32, #tpu.memory_space<vmem>>, vector<1x2x128xf32>
      tpu.vector_store %arg11[%c0_148, %c0_149, %c0_150], %288 {strides = array<i32>} : memref<1x2x128xf32, #tpu.memory_space<vmem>>, vector<1x2x128xf32>,
    } else {
    }
    %c0 = arith.constant 0 : index
    %c0_1 = arith.constant 0 : index
    %c0_2 = arith.constant 0 : index
    %3 = vector.load %arg7[%c0, %c0_1, %c0_2] : memref<1x1x8xf32, #tpu.memory_space<vmem>>, vector<1x1x8xf32>
    %4 = vector.shape_cast %3 : vector<1x1x8xf32> to vector<1x8xf32>
    %c0_3 = arith.constant 0 : index
    %c0_4 = arith.constant 0 : index
    %c0_5 = arith.constant 0 : index
    %5 = vector.load %arg8[%c0_3, %c0_4, %c0_5] : memref<1x8x1xf32, #tpu.memory_space<vmem>>, vector<1x8x1xf32>
    %6 = vector.shape_cast %5 : vector<1x8x1xf32> to vector<8x1xf32>
    %cst = arith.constant 1.000000e+00 : f32
    %7 = vector.broadcast %cst : f32 to vector<1x8xf32>
    %8 = arith.subf %7, %4 : vector<1x8xf32>
    %cst_6 = arith.constant -1.000000e+04 : f32
    %9 = vector.broadcast %cst_6 : f32 to vector<1x8xf32>
    %10 = arith.mulf %8, %9 : vector<1x8xf32>
    %c8_i32 = arith.constant 8 : i32
    %11 = arith.muli %arg1, %c8_i32 : i32
    %12 = tpu.iota {dimensions = array<i32: 0>} : vector<8x8xi32>
    %13 = vector.broadcast %11 : i32 to vector<8x8xi32>
    %14 = arith.addi %13, %12 : vector<8x8xi32>
    %15 = tpu.iota {dimensions = array<i32: 1>} : vector<8x8xi32>
    %16 = vector.broadcast %6 : vector<8x1xf32> to vector<8x8xf32>
    %17 = vector.broadcast %4 : vector<1x8xf32> to vector<8x8xf32>
    %18 = arith.mulf %16, %17 : vector<8x8xf32>
    %cst_7 = arith.constant 5.000000e-01 : f32
    %19 = vector.broadcast %cst_7 : f32 to vector<8x8xf32>
    %20 = arith.cmpf ogt, %18, %19 : vector<8x8xf32>
    %21 = arith.cmpi ne, %14, %15 : vector<8x8xi32>
    %22 = arith.andi %20, %21 : vector<8x8xi1>
    %c8_i32_8 = arith.constant 8 : i32
    %23 = vector.broadcast %c8_i32_8 : i32 to vector<8x8xi32>
    %24 = arith.cmpi slt, %14, %23 : vector<8x8xi32>
    %25 = arith.andi %22, %24 : vector<8x8xi1>
    %26 = arith.extui %25 : vector<8x8xi1> to vector<8x8xi32>
    %27 = arith.sitofp %26 : vector<8x8xi32> to vector<8x8xf32>
    %cst_9 = arith.constant 0.000000e+00 : f32
    %28 = vector.broadcast %cst_9 : f32 to vector<1x1xf32>
    %c0_10 = arith.constant 0 : index
    %c0_11 = arith.constant 0 : index
    %c0_12 = arith.constant 0 : index
    %29 = vector.load %arg5[%c0_10, %c0_11, %c0_12] : memref<1x8x8xbf16, #tpu.memory_space<vmem>>, vector<1x8x8xbf16>
    %30 = vector.shape_cast %29 : vector<1x8x8xbf16> to vector<8x8xbf16>
    %c0_13 = arith.constant 0 : index
    %c0_14 = arith.constant 0 : index
    %c0_15 = arith.constant 0 : index
    %31 = vector.load %arg6[%c0_13, %c0_14, %c0_15] : memref<1x8x8xbf16, #tpu.memory_space<vmem>>, vector<1x8x8xbf16>
    %32 = vector.shape_cast %31 : vector<1x8x8xbf16> to vector<8x8xbf16>
    %c0_16 = arith.constant 0 : index
    %c0_17 = arith.constant 0 : index
    %c0_18 = arith.constant 0 : index
    %c0_19 = arith.constant 0 : index
    %33 = vector.load %arg4[%c0_16, %c0_17, %c0_18, %c0_19] : memref<4x1x8x8xbf16, #tpu.memory_space<vmem>>, vector<1x1x8x8xbf16>
    %34 = vector.shape_cast %33 : vector<1x1x8x8xbf16> to vector<8x8xbf16>
    %cst_20 = arith.constant dense<0.000000e+00> : vector<8x8xf32>
    %35 = tpu.matmul %30, %32, %cst_20 {dimension_numbers = #tpu.dot_dimension_numbers<[1], [1], [0], [0], [0, 0, 1, 0], [], []>} : vector<8x8xbf16>, vector<8x8xbf16>, vector<8x8xf32> -> vector<8x8xf32>
    %cst_21 = arith.constant 0.353553385 : f32
    %36 = vector.broadcast %cst_21 : f32 to vector<8x8xf32>
    %37 = arith.mulf %35, %36 : vector<8x8xf32>
    %38 = vector.broadcast %10 : vector<1x8xf32> to vector<8x8xf32>
    %39 = arith.addf %37, %38 : vector<8x8xf32>
    %cst_22 = arith.constant dense<0xFF800000> : vector<8xf32>
    %40 = vector.multi_reduction <maximumf>, %39, %cst_22 [1] : vector<8x8xf32> to vector<8xf32>
    %41 = vector.shape_cast %40 : vector<8xf32> to vector<8x1xf32>
    %42 = vector.broadcast %41 : vector<8x1xf32> to vector<8x8xf32>
    %43 = arith.subf %39, %42 : vector<8x8xf32>
    %44 = math.exp %43 : vector<8x8xf32>
    %cst_23 = arith.constant dense<0.000000e+00> : vector<8xf32>
    %45 = vector.multi_reduction <add>, %44, %cst_23 [1] : vector<8x8xf32> to vector<8xf32>
    %46 = vector.shape_cast %45 : vector<8xf32> to vector<8x1xf32>
    %47 = tpu.reciprocal %46 {approx = true} : vector<8x1xf32> -> vector<8x1xf32>
    %48 = vector.broadcast %47 : vector<8x1xf32> to vector<8x8xf32>
    %49 = arith.mulf %44, %48 : vector<8x8xf32>
    %50 = arith.truncf %49 : vector<8x8xf32> to vector<8x8xbf16>
    %cst_24 = arith.constant dense<0.000000e+00> : vector<8x8xf32>
    %51 = tpu.matmul %50, %34, %cst_24 {dimension_numbers = #tpu.dot_dimension_numbers<[1], [0], [0], [1], [0, 0, 1, 1], [], []>} : vector<8x8xbf16>, vector<8x8xbf16>, vector<8x8xf32> -> vector<8x8xf32>
    %c0_25 = arith.constant 0 : index
    %c0_26 = arith.constant 0 : index
    %c0_27 = arith.constant 0 : index
    %c0_28 = arith.constant 0 : index
    %52 = vector.load %arg2[%c0_25, %c0_26, %c0_27, %c0_28] : memref<3x1x8x8xbf16, #tpu.memory_space<vmem>>, vector<1x1x8x8xbf16>
    %53 = vector.shape_cast %52 : vector<1x1x8x8xbf16> to vector<8x8xbf16>
    %c0_29 = arith.constant 0 : index
    %c0_30 = arith.constant 0 : index
    %c0_31 = arith.constant 0 : index
    %c0_32 = arith.constant 0 : index
    %54 = vector.load %arg3[%c0_29, %c0_30, %c0_31, %c0_32] : memref<3x1x8x8xbf16, #tpu.memory_space<vmem>>, vector<1x1x8x8xbf16>
    %55 = vector.shape_cast %54 : vector<1x1x8x8xbf16> to vector<8x8xbf16>
    %c1 = arith.constant 1 : index
    %c0_33 = arith.constant 0 : index
    %c0_34 = arith.constant 0 : index
    %c0_35 = arith.constant 0 : index
    %56 = vector.load %arg4[%c1, %c0_33, %c0_34, %c0_35] : memref<4x1x8x8xbf16, #tpu.memory_space<vmem>>, vector<1x1x8x8xbf16>
    %57 = vector.shape_cast %56 : vector<1x1x8x8xbf16> to vector<8x8xbf16>
    %cst_36 = arith.constant dense<0.000000e+00> : vector<8x8xf32>
    %58 = tpu.matmul %53, %55, %cst_36 {dimension_numbers = #tpu.dot_dimension_numbers<[1], [1], [0], [0], [0, 0, 1, 0], [], []>} : vector<8x8xbf16>, vector<8x8xbf16>, vector<8x8xf32> -> vector<8x8xf32>
    %59 = vector.broadcast %10 : vector<1x8xf32> to vector<8x8xf32>
    %60 = arith.addf %58, %59 : vector<8x8xf32>
    %c0_37 = arith.constant 0 : index
    %c0_38 = arith.constant 0 : index
    %c0_39 = arith.constant 0 : index
    %c0_40 = arith.constant 0 : index
    %61 = vector.load %arg9[%c0_37, %c0_38, %c0_39, %c0_40] : memref<1x3x8x8xf32, #tpu.memory_space<vmem>>, vector<1x1x8x8xf32>
    %62 = vector.shape_cast %61 : vector<1x1x8x8xf32> to vector<8x8xf32>
    %cst_41 = arith.constant 0.000000e+00 : f32
    %63 = vector.broadcast %cst_41 : f32 to vector<8x8xf32>
    %64 = arith.subf %63, %60 : vector<8x8xf32>
    %65 = math.exp %64 : vector<8x8xf32>
    %cst_42 = arith.constant 1.000000e+00 : f32
    %66 = vector.broadcast %cst_42 : f32 to vector<8x8xf32>
    %67 = arith.addf %66, %65 : vector<8x8xf32>
    %cst_43 = arith.constant 1.000000e+00 : f32
    %68 = vector.broadcast %cst_43 : f32 to vector<8x8xf32>
    %69 = arith.divf %68, %67 : vector<8x8xf32>
    %cst_44 = arith.constant 1.000000e+00 : f32
    %70 = vector.broadcast %cst_44 : f32 to vector<8x8xf32>
    %71 = arith.subf %70, %69 : vector<8x8xf32>
    %cst_45 = arith.constant -2.500000e-01 : f32
    %72 = vector.broadcast %cst_45 : f32 to vector<8x8xf32>
    %73 = arith.mulf %72, %71 : vector<8x8xf32>
    %cst_46 = arith.constant 1.000000e+00 : f32
    %74 = vector.broadcast %cst_46 : f32 to vector<8x8xf32>
    %75 = arith.subf %74, %69 : vector<8x8xf32>
    %76 = arith.mulf %73, %75 : vector<8x8xf32>
    %77 = arith.mulf %76, %62 : vector<8x8xf32>
    %cst_47 = arith.constant 9.99999993E-9 : f32
    %78 = vector.broadcast %cst_47 : f32 to vector<8x8xf32>
    %79 = arith.addf %69, %78 : vector<8x8xf32>
    %80 = math.log %79 : vector<8x8xf32>
    %81 = arith.mulf %77, %80 : vector<8x8xf32>
    %cst_48 = arith.constant 7.500000e-01 : f32
    %82 = vector.broadcast %cst_48 : f32 to vector<8x8xf32>
    %83 = arith.mulf %82, %69 : vector<8x8xf32>
    %84 = arith.mulf %83, %69 : vector<8x8xf32>
    %cst_49 = arith.constant 1.000000e+00 : f32
    %85 = vector.broadcast %cst_49 : f32 to vector<8x8xf32>
    %86 = arith.subf %85, %62 : vector<8x8xf32>
    %87 = arith.mulf %84, %86 : vector<8x8xf32>
    %cst_50 = arith.constant 1.000000e+00 : f32
    %88 = vector.broadcast %cst_50 : f32 to vector<8x8xf32>
    %89 = arith.subf %88, %69 : vector<8x8xf32>
    %cst_51 = arith.constant 9.99999993E-9 : f32
    %90 = vector.broadcast %cst_51 : f32 to vector<8x8xf32>
    %91 = arith.addf %89, %90 : vector<8x8xf32>
    %92 = math.log %91 : vector<8x8xf32>
    %93 = arith.mulf %87, %92 : vector<8x8xf32>
    %94 = arith.subf %81, %93 : vector<8x8xf32>
    %cst_52 = arith.constant 0.000000e+00 : f32
    %95 = vector.broadcast %cst_52 : f32 to vector<8x8xf32>
    %96 = arith.select %25, %94, %95 : vector<8x8xi1>, vector<8x8xf32>
    %97 = vector.shape_cast %96 : vector<8x8xf32> to vector<1x8x8xf32>
    %cst_53 = arith.constant dense<0.000000e+00> : vector<1xf32>
    %98 = vector.multi_reduction <add>, %97, %cst_53 [1, 2] : vector<1x8x8xf32> to vector<1xf32>
    %99 = vector.shape_cast %98 : vector<1xf32> to vector<1x1x1xf32>
    %100 = vector.extract %99[0, 0, 0] : f32 from vector<1x1x1xf32>
    %101 = vector.broadcast %100 : f32 to vector<1x1xf32>
    %102 = arith.addf %28, %101 : vector<1x1xf32>
    %cst_54 = arith.constant 1.000000e+00 : f32
    %103 = vector.broadcast %cst_54 : f32 to vector<8x8xf32>
    %104 = arith.subf %103, %62 : vector<8x8xf32>
    %cst_55 = arith.constant -1.000000e+04 : f32
    %105 = vector.broadcast %cst_55 : f32 to vector<8x8xf32>
    %106 = arith.mulf %104, %105 : vector<8x8xf32>
    %cst_56 = arith.constant 0.353553385 : f32
    %107 = vector.broadcast %cst_56 : f32 to vector<8x8xf32>
    %108 = arith.mulf %58, %107 : vector<8x8xf32>
    %109 = arith.addf %108, %106 : vector<8x8xf32>
    %cst_57 = arith.constant dense<0xFF800000> : vector<8xf32>
    %110 = vector.multi_reduction <maximumf>, %109, %cst_57 [1] : vector<8x8xf32> to vector<8xf32>
    %111 = vector.shape_cast %110 : vector<8xf32> to vector<8x1xf32>
    %112 = vector.broadcast %111 : vector<8x1xf32> to vector<8x8xf32>
    %113 = arith.subf %109, %112 : vector<8x8xf32>
    %114 = math.exp %113 : vector<8x8xf32>
    %cst_58 = arith.constant dense<0.000000e+00> : vector<8xf32>
    %115 = vector.multi_reduction <add>, %114, %cst_58 [1] : vector<8x8xf32> to vector<8xf32>
    %116 = vector.shape_cast %115 : vector<8xf32> to vector<8x1xf32>
    %117 = tpu.reciprocal %116 {approx = true} : vector<8x1xf32> -> vector<8x1xf32>
    %118 = vector.broadcast %117 : vector<8x1xf32> to vector<8x8xf32>
    %119 = arith.mulf %114, %118 : vector<8x8xf32>
    %120 = arith.truncf %119 : vector<8x8xf32> to vector<8x8xbf16>
    %cst_59 = arith.constant dense<0.000000e+00> : vector<8x8xf32>
    %121 = tpu.matmul %120, %57, %cst_59 {dimension_numbers = #tpu.dot_dimension_numbers<[1], [0], [0], [1], [0, 0, 1, 1], [], []>} : vector<8x8xbf16>, vector<8x8xbf16>, vector<8x8xf32> -> vector<8x8xf32>
    %c1_60 = arith.constant 1 : index
    %c0_61 = arith.constant 0 : index
    %c0_62 = arith.constant 0 : index
    %c0_63 = arith.constant 0 : index
    %122 = vector.load %arg2[%c1_60, %c0_61, %c0_62, %c0_63] : memref<3x1x8x8xbf16, #tpu.memory_space<vmem>>, vector<1x1x8x8xbf16>
    %123 = vector.shape_cast %122 : vector<1x1x8x8xbf16> to vector<8x8xbf16>
    %c1_64 = arith.constant 1 : index
    %c0_65 = arith.constant 0 : index
    %c0_66 = arith.constant 0 : index
    %c0_67 = arith.constant 0 : index
    %124 = vector.load %arg3[%c1_64, %c0_65, %c0_66, %c0_67] : memref<3x1x8x8xbf16, #tpu.memory_space<vmem>>, vector<1x1x8x8xbf16>
    %125 = vector.shape_cast %124 : vector<1x1x8x8xbf16> to vector<8x8xbf16>
    %c2 = arith.constant 2 : index
    %c0_68 = arith.constant 0 : index
    %c0_69 = arith.constant 0 : index
    %c0_70 = arith.constant 0 : index
    %126 = vector.load %arg4[%c2, %c0_68, %c0_69, %c0_70] : memref<4x1x8x8xbf16, #tpu.memory_space<vmem>>, vector<1x1x8x8xbf16>
    %127 = vector.shape_cast %126 : vector<1x1x8x8xbf16> to vector<8x8xbf16>
    %cst_71 = arith.constant dense<0.000000e+00> : vector<8x8xf32>
    %128 = tpu.matmul %123, %125, %cst_71 {dimension_numbers = #tpu.dot_dimension_numbers<[1], [1], [0], [0], [0, 0, 1, 0], [], []>} : vector<8x8xbf16>, vector<8x8xbf16>, vector<8x8xf32> -> vector<8x8xf32>
    %129 = vector.broadcast %10 : vector<1x8xf32> to vector<8x8xf32>
    %130 = arith.addf %128, %129 : vector<8x8xf32>
    %c0_72 = arith.constant 0 : index
    %c1_73 = arith.constant 1 : index
    %c0_74 = arith.constant 0 : index
    %c0_75 = arith.constant 0 : index
    %131 = vector.load %arg9[%c0_72, %c1_73, %c0_74, %c0_75] : memref<1x3x8x8xf32, #tpu.memory_space<vmem>>, vector<1x1x8x8xf32>
    %132 = vector.shape_cast %131 : vector<1x1x8x8xf32> to vector<8x8xf32>
    %cst_76 = arith.constant 0.000000e+00 : f32
    %133 = vector.broadcast %cst_76 : f32 to vector<8x8xf32>
    %134 = arith.subf %133, %130 : vector<8x8xf32>
    %135 = math.exp %134 : vector<8x8xf32>
    %cst_77 = arith.constant 1.000000e+00 : f32
    %136 = vector.broadcast %cst_77 : f32 to vector<8x8xf32>
    %137 = arith.addf %136, %135 : vector<8x8xf32>
    %cst_78 = arith.constant 1.000000e+00 : f32
    %138 = vector.broadcast %cst_78 : f32 to vector<8x8xf32>
    %139 = arith.divf %138, %137 : vector<8x8xf32>
    %cst_79 = arith.constant 1.000000e+00 : f32
    %140 = vector.broadcast %cst_79 : f32 to vector<8x8xf32>
    %141 = arith.subf %140, %139 : vector<8x8xf32>
    %cst_80 = arith.constant -2.500000e-01 : f32
    %142 = vector.broadcast %cst_80 : f32 to vector<8x8xf32>
    %143 = arith.mulf %142, %141 : vector<8x8xf32>
    %cst_81 = arith.constant 1.000000e+00 : f32
    %144 = vector.broadcast %cst_81 : f32 to vector<8x8xf32>
    %145 = arith.subf %144, %139 : vector<8x8xf32>
    %146 = arith.mulf %143, %145 : vector<8x8xf32>
    %147 = arith.mulf %146, %132 : vector<8x8xf32>
    %cst_82 = arith.constant 9.99999993E-9 : f32
    %148 = vector.broadcast %cst_82 : f32 to vector<8x8xf32>
    %149 = arith.addf %139, %148 : vector<8x8xf32>
    %150 = math.log %149 : vector<8x8xf32>
    %151 = arith.mulf %147, %150 : vector<8x8xf32>
    %cst_83 = arith.constant 7.500000e-01 : f32
    %152 = vector.broadcast %cst_83 : f32 to vector<8x8xf32>
    %153 = arith.mulf %152, %139 : vector<8x8xf32>
    %154 = arith.mulf %153, %139 : vector<8x8xf32>
    %cst_84 = arith.constant 1.000000e+00 : f32
    %155 = vector.broadcast %cst_84 : f32 to vector<8x8xf32>
    %156 = arith.subf %155, %132 : vector<8x8xf32>
    %157 = arith.mulf %154, %156 : vector<8x8xf32>
    %cst_85 = arith.constant 1.000000e+00 : f32
    %158 = vector.broadcast %cst_85 : f32 to vector<8x8xf32>
    %159 = arith.subf %158, %139 : vector<8x8xf32>
    %cst_86 = arith.constant 9.99999993E-9 : f32
    %160 = vector.broadcast %cst_86 : f32 to vector<8x8xf32>
    %161 = arith.addf %159, %160 : vector<8x8xf32>
    %162 = math.log %161 : vector<8x8xf32>
    %163 = arith.mulf %157, %162 : vector<8x8xf32>
    %164 = arith.subf %151, %163 : vector<8x8xf32>
    %cst_87 = arith.constant 0.000000e+00 : f32
    %165 = vector.broadcast %cst_87 : f32 to vector<8x8xf32>
    %166 = arith.select %25, %164, %165 : vector<8x8xi1>, vector<8x8xf32>
    %167 = vector.shape_cast %166 : vector<8x8xf32> to vector<1x8x8xf32>
    %cst_88 = arith.constant dense<0.000000e+00> : vector<1xf32>
    %168 = vector.multi_reduction <add>, %167, %cst_88 [1, 2] : vector<1x8x8xf32> to vector<1xf32>
    %169 = vector.shape_cast %168 : vector<1xf32> to vector<1x1x1xf32>
    %170 = vector.extract %169[0, 0, 0] : f32 from vector<1x1x1xf32>
    %171 = vector.broadcast %170 : f32 to vector<1x1xf32>
    %172 = arith.addf %102, %171 : vector<1x1xf32>
    %cst_89 = arith.constant 1.000000e+00 : f32
    %173 = vector.broadcast %cst_89 : f32 to vector<8x8xf32>
    %174 = arith.subf %173, %132 : vector<8x8xf32>
    %cst_90 = arith.constant -1.000000e+04 : f32
    %175 = vector.broadcast %cst_90 : f32 to vector<8x8xf32>
    %176 = arith.mulf %174, %175 : vector<8x8xf32>
    %cst_91 = arith.constant 0.353553385 : f32
    %177 = vector.broadcast %cst_91 : f32 to vector<8x8xf32>
    %178 = arith.mulf %128, %177 : vector<8x8xf32>
    %179 = arith.addf %178, %176 : vector<8x8xf32>
    %cst_92 = arith.constant dense<0xFF800000> : vector<8xf32>
    %180 = vector.multi_reduction <maximumf>, %179, %cst_92 [1] : vector<8x8xf32> to vector<8xf32>
    %181 = vector.shape_cast %180 : vector<8xf32> to vector<8x1xf32>
    %182 = vector.broadcast %181 : vector<8x1xf32> to vector<8x8xf32>
    %183 = arith.subf %179, %182 : vector<8x8xf32>
    %184 = math.exp %183 : vector<8x8xf32>
    %cst_93 = arith.constant dense<0.000000e+00> : vector<8xf32>
    %185 = vector.multi_reduction <add>, %184, %cst_93 [1] : vector<8x8xf32> to vector<8xf32>
    %186 = vector.shape_cast %185 : vector<8xf32> to vector<8x1xf32>
    %187 = tpu.reciprocal %186 {approx = true} : vector<8x1xf32> -> vector<8x1xf32>
    %188 = vector.broadcast %187 : vector<8x1xf32> to vector<8x8xf32>
    %189 = arith.mulf %184, %188 : vector<8x8xf32>
    %190 = arith.truncf %189 : vector<8x8xf32> to vector<8x8xbf16>
    %cst_94 = arith.constant dense<0.000000e+00> : vector<8x8xf32>
    %191 = tpu.matmul %190, %127, %cst_94 {dimension_numbers = #tpu.dot_dimension_numbers<[1], [0], [0], [1], [0, 0, 1, 1], [], []>} : vector<8x8xbf16>, vector<8x8xbf16>, vector<8x8xf32> -> vector<8x8xf32>
    %c2_95 = arith.constant 2 : index
    %c0_96 = arith.constant 0 : index
    %c0_97 = arith.constant 0 : index
    %c0_98 = arith.constant 0 : index
    %192 = vector.load %arg2[%c2_95, %c0_96, %c0_97, %c0_98] : memref<3x1x8x8xbf16, #tpu.memory_space<vmem>>, vector<1x1x8x8xbf16>
    %193 = vector.shape_cast %192 : vector<1x1x8x8xbf16> to vector<8x8xbf16>
    %c2_99 = arith.constant 2 : index
    %c0_100 = arith.constant 0 : index
    %c0_101 = arith.constant 0 : index
    %c0_102 = arith.constant 0 : index
    %194 = vector.load %arg3[%c2_99, %c0_100, %c0_101, %c0_102] : memref<3x1x8x8xbf16, #tpu.memory_space<vmem>>, vector<1x1x8x8xbf16>
    %195 = vector.shape_cast %194 : vector<1x1x8x8xbf16> to vector<8x8xbf16>
    %c3 = arith.constant 3 : index
    %c0_103 = arith.constant 0 : index
    %c0_104 = arith.constant 0 : index
    %c0_105 = arith.constant 0 : index
    %196 = vector.load %arg4[%c3, %c0_103, %c0_104, %c0_105] : memref<4x1x8x8xbf16, #tpu.memory_space<vmem>>, vector<1x1x8x8xbf16>
    %197 = vector.shape_cast %196 : vector<1x1x8x8xbf16> to vector<8x8xbf16>
    %cst_106 = arith.constant dense<0.000000e+00> : vector<8x8xf32>
    %198 = tpu.matmul %193, %195, %cst_106 {dimension_numbers = #tpu.dot_dimension_numbers<[1], [1], [0], [0], [0, 0, 1, 0], [], []>} : vector<8x8xbf16>, vector<8x8xbf16>, vector<8x8xf32> -> vector<8x8xf32>
    %199 = vector.broadcast %10 : vector<1x8xf32> to vector<8x8xf32>
    %200 = arith.addf %198, %199 : vector<8x8xf32>
    %c0_107 = arith.constant 0 : index
    %c2_108 = arith.constant 2 : index
    %c0_109 = arith.constant 0 : index
    %c0_110 = arith.constant 0 : index
    %201 = vector.load %arg9[%c0_107, %c2_108, %c0_109, %c0_110] : memref<1x3x8x8xf32, #tpu.memory_space<vmem>>, vector<1x1x8x8xf32>
    %202 = vector.shape_cast %201 : vector<1x1x8x8xf32> to vector<8x8xf32>
    %cst_111 = arith.constant 0.000000e+00 : f32
    %203 = vector.broadcast %cst_111 : f32 to vector<8x8xf32>
    %204 = arith.subf %203, %200 : vector<8x8xf32>
    %205 = math.exp %204 : vector<8x8xf32>
    %cst_112 = arith.constant 1.000000e+00 : f32
    %206 = vector.broadcast %cst_112 : f32 to vector<8x8xf32>
    %207 = arith.addf %206, %205 : vector<8x8xf32>
    %cst_113 = arith.constant 1.000000e+00 : f32
    %208 = vector.broadcast %cst_113 : f32 to vector<8x8xf32>
    %209 = arith.divf %208, %207 : vector<8x8xf32>
    %cst_114 = arith.constant 1.000000e+00 : f32
    %210 = vector.broadcast %cst_114 : f32 to vector<8x8xf32>
    %211 = arith.subf %210, %209 : vector<8x8xf32>
    %cst_115 = arith.constant -2.500000e-01 : f32
    %212 = vector.broadcast %cst_115 : f32 to vector<8x8xf32>
    %213 = arith.mulf %212, %211 : vector<8x8xf32>
    %cst_116 = arith.constant 1.000000e+00 : f32
    %214 = vector.broadcast %cst_116 : f32 to vector<8x8xf32>
    %215 = arith.subf %214, %209 : vector<8x8xf32>
    %216 = arith.mulf %213, %215 : vector<8x8xf32>
    %217 = arith.mulf %216, %202 : vector<8x8xf32>
    %cst_117 = arith.constant 9.99999993E-9 : f32
    %218 = vector.broadcast %cst_117 : f32 to vector<8x8xf32>
    %219 = arith.addf %209, %218 : vector<8x8xf32>
    %220 = math.log %219 : vector<8x8xf32>
    %221 = arith.mulf %217, %220 : vector<8x8xf32>
    %cst_118 = arith.constant 7.500000e-01 : f32
    %222 = vector.broadcast %cst_118 : f32 to vector<8x8xf32>
    %223 = arith.mulf %222, %209 : vector<8x8xf32>
    %224 = arith.mulf %223, %209 : vector<8x8xf32>
    %cst_119 = arith.constant 1.000000e+00 : f32
    %225 = vector.broadcast %cst_119 : f32 to vector<8x8xf32>
    %226 = arith.subf %225, %202 : vector<8x8xf32>
    %227 = arith.mulf %224, %226 : vector<8x8xf32>
    %cst_120 = arith.constant 1.000000e+00 : f32
    %228 = vector.broadcast %cst_120 : f32 to vector<8x8xf32>
    %229 = arith.subf %228, %209 : vector<8x8xf32>
    %cst_121 = arith.constant 9.99999993E-9 : f32
    %230 = vector.broadcast %cst_121 : f32 to vector<8x8xf32>
    %231 = arith.addf %229, %230 : vector<8x8xf32>
    %232 = math.log %231 : vector<8x8xf32>
    %233 = arith.mulf %227, %232 : vector<8x8xf32>
    %234 = arith.subf %221, %233 : vector<8x8xf32>
    %cst_122 = arith.constant 0.000000e+00 : f32
    %235 = vector.broadcast %cst_122 : f32 to vector<8x8xf32>
    %236 = arith.select %25, %234, %235 : vector<8x8xi1>, vector<8x8xf32>
    %237 = vector.shape_cast %236 : vector<8x8xf32> to vector<1x8x8xf32>
    %cst_123 = arith.constant dense<0.000000e+00> : vector<1xf32>
    %238 = vector.multi_reduction <add>, %237, %cst_123 [1, 2] : vector<1x8x8xf32> to vector<1xf32>
    %239 = vector.shape_cast %238 : vector<1xf32> to vector<1x1x1xf32>
    %240 = vector.extract %239[0, 0, 0] : f32 from vector<1x1x1xf32>
    %241 = vector.broadcast %240 : f32 to vector<1x1xf32>
    %242 = arith.addf %172, %241 : vector<1x1xf32>
    %cst_124 = arith.constant 1.000000e+00 : f32
    %243 = vector.broadcast %cst_124 : f32 to vector<8x8xf32>
    %244 = arith.subf %243, %202 : vector<8x8xf32>
    %cst_125 = arith.constant -1.000000e+04 : f32
    %245 = vector.broadcast %cst_125 : f32 to vector<8x8xf32>
    %246 = arith.mulf %244, %245 : vector<8x8xf32>
    %cst_126 = arith.constant 0.353553385 : f32
    %247 = vector.broadcast %cst_126 : f32 to vector<8x8xf32>
    %248 = arith.mulf %198, %247 : vector<8x8xf32>
    %249 = arith.addf %248, %246 : vector<8x8xf32>
    %cst_127 = arith.constant dense<0xFF800000> : vector<8xf32>
    %250 = vector.multi_reduction <maximumf>, %249, %cst_127 [1] : vector<8x8xf32> to vector<8xf32>
    %251 = vector.shape_cast %250 : vector<8xf32> to vector<8x1xf32>
    %252 = vector.broadcast %251 : vector<8x1xf32> to vector<8x8xf32>
    %253 = arith.subf %249, %252 : vector<8x8xf32>
    %254 = math.exp %253 : vector<8x8xf32>
    %cst_128 = arith.constant dense<0.000000e+00> : vector<8xf32>
    %255 = vector.multi_reduction <add>, %254, %cst_128 [1] : vector<8x8xf32> to vector<8xf32>
    %256 = vector.shape_cast %255 : vector<8xf32> to vector<8x1xf32>
    %257 = tpu.reciprocal %256 {approx = true} : vector<8x1xf32> -> vector<8x1xf32>
    %258 = vector.broadcast %257 : vector<8x1xf32> to vector<8x8xf32>
    %259 = arith.mulf %254, %258 : vector<8x8xf32>
    %260 = arith.truncf %259 : vector<8x8xf32> to vector<8x8xbf16>
    %cst_129 = arith.constant dense<0.000000e+00> : vector<8x8xf32>
    %261 = tpu.matmul %260, %197, %cst_129 {dimension_numbers = #tpu.dot_dimension_numbers<[1], [0], [0], [1], [0, 0, 1, 1], [], []>} : vector<8x8xbf16>, vector<8x8xbf16>, vector<8x8xf32> -> vector<8x8xf32>
    %262 = tpu.concatenate %51, %121, %191, %261 in 1 : vector<8x8xf32>, vector<8x8xf32>, vector<8x8xf32>, vector<8x8xf32> -> vector<8x32xf32>
    %263 = arith.truncf %262 : vector<8x32xf32> to vector<8x32xbf16>
    %c0_130 = arith.constant 0 : index
    %c0_131 = arith.constant 0 : index
    %c0_132 = arith.constant 0 : index
    %264 = vector.load %arg10[%c0_130, %c0_131, %c0_132] : memref<1x8x32xbf16, #tpu.memory_space<vmem>>, vector<1x8x32xbf16>
    %265 = vector.shape_cast %264 : vector<1x8x32xbf16> to vector<8x32xbf16>
    %266 = vector.shape_cast %263 : vector<8x32xbf16> to vector<1x8x32xbf16>
    tpu.vector_store %arg10[%c0_130, %c0_131, %c0_132], %266 {strides = array<i32>} : memref<1x8x32xbf16, #tpu.memory_space<vmem>>, vector<1x8x32xbf16>,
    %267 = vector.shape_cast %27 : vector<8x8xf32> to vector<1x8x8xf32>
    %cst_133 = arith.constant dense<0.000000e+00> : vector<1xf32>
    %268 = vector.multi_reduction <add>, %267, %cst_133 [1, 2] : vector<1x8x8xf32> to vector<1xf32>
    %269 = vector.shape_cast %268 : vector<1xf32> to vector<1x1x1xf32>
    %270 = vector.extract %269[0, 0, 0] : f32 from vector<1x1x1xf32>
    %271 = vector.broadcast %270 : f32 to vector<1x1xf32>
    %cst_134 = arith.constant 3.000000e+00 : f32
    %272 = vector.broadcast %cst_134 : f32 to vector<1x1xf32>
    %273 = arith.mulf %272, %271 : vector<1x1xf32>
    %c0_135 = arith.constant 0 : index
    %c0_136 = arith.constant 0 : index
    %c0_137 = arith.constant 0 : index
    %274 = vector.load %arg11[%c0_135, %c0_136, %c0_137] : memref<1x2x128xf32, #tpu.memory_space<vmem>>, vector<1x1x128xf32>
    %275 = vector.shape_cast %274 : vector<1x1x128xf32> to vector<1x128xf32>
    %276 = vector.broadcast %242 : vector<1x1xf32> to vector<1x128xf32>
    %277 = arith.addf %275, %276 : vector<1x128xf32>
    %c0_138 = arith.constant 0 : index
    %c0_139 = arith.constant 0 : index
    %c0_140 = arith.constant 0 : index
    %278 = vector.load %arg11[%c0_138, %c0_139, %c0_140] : memref<1x2x128xf32, #tpu.memory_space<vmem>>, vector<1x1x128xf32>
    %279 = vector.shape_cast %278 : vector<1x1x128xf32> to vector<1x128xf32>
    %280 = vector.shape_cast %277 : vector<1x128xf32> to vector<1x1x128xf32>
    tpu.vector_store %arg11[%c0_138, %c0_139, %c0_140], %280 {strides = array<i32>} : memref<1x2x128xf32, #tpu.memory_space<vmem>>, vector<1x1x128xf32>,
    %c0_141 = arith.constant 0 : index
    %c1_142 = arith.constant 1 : index
    %c0_143 = arith.constant 0 : index
    %281 = vector.load %arg11[%c0_141, %c1_142, %c0_143] : memref<1x2x128xf32, #tpu.memory_space<vmem>>, vector<1x1x128xf32>
    %282 = vector.shape_cast %281 : vector<1x1x128xf32> to vector<1x128xf32>
    %283 = vector.broadcast %273 : vector<1x1xf32> to vector<1x128xf32>
    %284 = arith.addf %282, %283 : vector<1x128xf32>
    %c0_144 = arith.constant 0 : index
    %c1_145 = arith.constant 1 : index
    %c0_146 = arith.constant 0 : index
    %285 = vector.load %arg11[%c0_144, %c1_145, %c0_146] : memref<1x2x128xf32, #tpu.memory_space<vmem>>, vector<1x1x128xf32>
    %286 = vector.shape_cast %285 : vector<1x1x128xf32> to vector<1x128xf32>
    %287 = vector.shape_cast %284 : vector<1x128xf32> to vector<1x1x128xf32>
    tpu.vector_store %arg11[%c0_144, %c1_145, %c0_146], %287 {strides = array<i32>} : memref<1x2x128xf32, #tpu.memory_space<vmem>>, vector<1x1x128xf32>,
    return
  }
  func.func @transform_0(%arg0: i32, %arg1: i32) -> (i32, i32, i32, i32) {
    %c0_i32 = arith.constant 0 : i32
    %c0_i32_0 = arith.constant 0 : i32
    %c0_i32_1 = arith.constant 0 : i32
    return %c0_i32, %arg0, %arg1, %c0_i32_0 : i32, i32, i32, i32
  }
  func.func @transform_1(%arg0: i32, %arg1: i32) -> (i32, i32, i32, i32) {
    %c0_i32 = arith.constant 0 : i32
    %c0_i32_0 = arith.constant 0 : i32
    %c0_i32_1 = arith.constant 0 : i32
    %c0_i32_2 = arith.constant 0 : i32
    return %c0_i32, %arg0, %c0_i32_0, %c0_i32_1 : i32, i32, i32, i32
  }
  func.func @transform_2(%arg0: i32, %arg1: i32) -> (i32, i32, i32, i32) {
    %c0_i32 = arith.constant 0 : i32
    %c0_i32_0 = arith.constant 0 : i32
    %c0_i32_1 = arith.constant 0 : i32
    %c0_i32_2 = arith.constant 0 : i32
    return %c0_i32, %arg0, %c0_i32_0, %c0_i32_1 : i32, i32, i32, i32
  }
  func.func @transform_3(%arg0: i32, %arg1: i32) -> (i32, i32, i32) {
    %c0_i32 = arith.constant 0 : i32
    %c0_i32_0 = arith.constant 0 : i32
    return %arg0, %arg1, %c0_i32 : i32, i32, i32
  }
  func.func @transform_4(%arg0: i32, %arg1: i32) -> (i32, i32, i32) {
    %c0_i32 = arith.constant 0 : i32
    %c0_i32_0 = arith.constant 0 : i32
    %c0_i32_1 = arith.constant 0 : i32
    return %arg0, %c0_i32, %c0_i32_0 : i32, i32, i32
  }
  func.func @transform_5(%arg0: i32, %arg1: i32) -> (i32, i32, i32) {
    %c0_i32 = arith.constant 0 : i32
    %c0_i32_0 = arith.constant 0 : i32
    %c0_i32_1 = arith.constant 0 : i32
    return %arg0, %c0_i32, %c0_i32_0 : i32, i32, i32
  }
  func.func @transform_6(%arg0: i32, %arg1: i32) -> (i32, i32, i32) {
    %c0_i32 = arith.constant 0 : i32
    %c0_i32_0 = arith.constant 0 : i32
    return %arg0, %arg1, %c0_i32 : i32, i32, i32
  }
  func.func @transform_7(%arg0: i32, %arg1: i32) -> (i32, i32, i32, i32) {
    %c0_i32 = arith.constant 0 : i32
    %c0_i32_0 = arith.constant 0 : i32
    %c0_i32_1 = arith.constant 0 : i32
    return %arg0, %c0_i32, %arg1, %c0_i32_0 : i32, i32, i32, i32
  }
  func.func @transform_8(%arg0: i32, %arg1: i32) -> (i32, i32, i32) {
    %c0_i32 = arith.constant 0 : i32
    %c0_i32_0 = arith.constant 0 : i32
    return %arg0, %arg1, %c0_i32 : i32, i32, i32
  }
  func.func @transform_9(%arg0: i32, %arg1: i32) -> (i32, i32, i32) {
    %c0_i32 = arith.constant 0 : i32
    %c0_i32_0 = arith.constant 0 : i32
    %c0_i32_1 = arith.constant 0 : i32
    return %arg0, %c0_i32, %c0_i32_0 : i32, i32, i32
  }
}

module attributes {stable_mosaic.version = 11 : i64} {
  func.func @_gnn_query_kernel(%arg0: i32, %arg1: memref<16x32xbf16, #tpu.memory_space<vmem>>, %arg2: memref<32x32xbf16, #tpu.memory_space<vmem>>, %arg3: memref<1x32xf32, #tpu.memory_space<vmem>>, %arg4: memref<1x32xf32, #tpu.memory_space<vmem>>, %arg5: memref<1x32xf32, #tpu.memory_space<vmem>>, %arg6: memref<32x8xbf16, #tpu.memory_space<vmem>>, %arg7: memref<1x8xf32, #tpu.memory_space<vmem>>, %arg8: memref<16x32xbf16, #tpu.memory_space<vmem>>, %arg9: memref<4x16x2xbf16, #tpu.memory_space<vmem>>) attributes {dimension_semantics = [#tpu.dimension_semantics<parallel>], iteration_bounds = array<i64: 1>, scalar_prefetch = 0 : i64, scratch_operands = 0 : i64, tpu.core_type = #tpu.core_type<tc>, window_params = [{transform_indices = @transform_0, window_bounds = array<i64: 16, 32>}, {pipeline_mode = #tpu.pipeline_mode<synchronous>, transform_indices = @transform_1, window_bounds = array<i64: 32, 32>}, {pipeline_mode = #tpu.pipeline_mode<synchronous>, transform_indices = @transform_2, window_bounds = array<i64: 1, 32>}, {pipeline_mode = #tpu.pipeline_mode<synchronous>, transform_indices = @transform_3, window_bounds = array<i64: 1, 32>}, {pipeline_mode = #tpu.pipeline_mode<synchronous>, transform_indices = @transform_4, window_bounds = array<i64: 1, 32>}, {pipeline_mode = #tpu.pipeline_mode<synchronous>, transform_indices = @transform_5, window_bounds = array<i64: 32, 8>}, {pipeline_mode = #tpu.pipeline_mode<synchronous>, transform_indices = @transform_6, window_bounds = array<i64: 1, 8>}, {transform_indices = @transform_7, window_bounds = array<i64: 16, 32>}, {transform_indices = @transform_8, window_bounds = array<i64: 4, 16, 2>}]} {
    %c0 = arith.constant 0 : index
    %c0_0 = arith.constant 0 : index
    %0 = vector.load %arg1[%c0, %c0_0] : memref<16x32xbf16, #tpu.memory_space<vmem>>, vector<16x32xbf16>
    %c0_1 = arith.constant 0 : index
    %c0_2 = arith.constant 0 : index
    %1 = vector.load %arg2[%c0_1, %c0_2] : memref<32x32xbf16, #tpu.memory_space<vmem>>, vector<32x32xbf16>
    %cst = arith.constant dense<0.000000e+00> : vector<16x32xf32>
    %2 = tpu.matmul %0, %1, %cst {dimension_numbers = #tpu.dot_dimension_numbers<[1], [0], [0], [1], [0, 0, 1, 1], [], []>} : vector<16x32xbf16>, vector<32x32xbf16>, vector<16x32xf32> -> vector<16x32xf32>
    %c0_3 = arith.constant 0 : index
    %c0_4 = arith.constant 0 : index
    %3 = vector.load %arg3[%c0_3, %c0_4] : memref<1x32xf32, #tpu.memory_space<vmem>>, vector<1x32xf32>
    %4 = vector.broadcast %3 : vector<1x32xf32> to vector<16x32xf32>
    %5 = arith.addf %2, %4 : vector<16x32xf32>
    %c0_5 = arith.constant 0 : index
    %c0_6 = arith.constant 0 : index
    %6 = vector.load %arg4[%c0_5, %c0_6] : memref<1x32xf32, #tpu.memory_space<vmem>>, vector<1x32xf32>
    %c0_7 = arith.constant 0 : index
    %c0_8 = arith.constant 0 : index
    %7 = vector.load %arg5[%c0_7, %c0_8] : memref<1x32xf32, #tpu.memory_space<vmem>>, vector<1x32xf32>
    %cst_9 = arith.constant dense<0.000000e+00> : vector<16xf32>
    %8 = vector.multi_reduction <add>, %5, %cst_9 [1] : vector<16x32xf32> to vector<16xf32>
    %9 = vector.shape_cast %8 : vector<16xf32> to vector<16x1xf32>
    %cst_10 = arith.constant 3.200000e+01 : f32
    %10 = vector.broadcast %cst_10 : f32 to vector<16x1xf32>
    %11 = arith.divf %9, %10 : vector<16x1xf32>
    %12 = vector.broadcast %11 : vector<16x1xf32> to vector<16x32xf32>
    %13 = arith.subf %5, %12 : vector<16x32xf32>
    %14 = arith.mulf %13, %13 : vector<16x32xf32>
    %cst_11 = arith.constant dense<0.000000e+00> : vector<16xf32>
    %15 = vector.multi_reduction <add>, %14, %cst_11 [1] : vector<16x32xf32> to vector<16xf32>
    %16 = vector.shape_cast %15 : vector<16xf32> to vector<16x1xf32>
    %cst_12 = arith.constant 3.200000e+01 : f32
    %17 = vector.broadcast %cst_12 : f32 to vector<16x1xf32>
    %18 = arith.divf %16, %17 : vector<16x1xf32>
    %19 = vector.broadcast %11 : vector<16x1xf32> to vector<16x32xf32>
    %20 = arith.subf %5, %19 : vector<16x32xf32>
    %cst_13 = arith.constant 9.99999996E-13 : f32
    %21 = vector.broadcast %cst_13 : f32 to vector<16x1xf32>
    %22 = arith.addf %18, %21 : vector<16x1xf32>
    %23 = math.rsqrt %22 : vector<16x1xf32>
    %24 = vector.broadcast %23 : vector<16x1xf32> to vector<16x32xf32>
    %25 = arith.mulf %20, %24 : vector<16x32xf32>
    %26 = vector.broadcast %6 : vector<1x32xf32> to vector<16x32xf32>
    %27 = arith.mulf %25, %26 : vector<16x32xf32>
    %28 = vector.broadcast %7 : vector<1x32xf32> to vector<16x32xf32>
    %29 = arith.addf %27, %28 : vector<16x32xf32>
    %30 = arith.truncf %29 : vector<16x32xf32> to vector<16x32xbf16>
    %c0_14 = arith.constant 0 : index
    %c0_15 = arith.constant 0 : index
    %31 = vector.load %arg8[%c0_14, %c0_15] : memref<16x32xbf16, #tpu.memory_space<vmem>>, vector<16x32xbf16>
    tpu.vector_store %arg8[%c0_14, %c0_15], %30 {strides = array<i32>} : memref<16x32xbf16, #tpu.memory_space<vmem>>, vector<16x32xbf16>,
    %32 = arith.truncf %29 : vector<16x32xf32> to vector<16x32xbf16>
    %c0_16 = arith.constant 0 : index
    %c0_17 = arith.constant 0 : index
    %33 = vector.load %arg6[%c0_16, %c0_17] : memref<32x8xbf16, #tpu.memory_space<vmem>>, vector<32x8xbf16>
    %cst_18 = arith.constant dense<0.000000e+00> : vector<16x8xf32>
    %34 = tpu.matmul %32, %33, %cst_18 {dimension_numbers = #tpu.dot_dimension_numbers<[1], [0], [0], [1], [0, 0, 1, 1], [], []>} : vector<16x32xbf16>, vector<32x8xbf16>, vector<16x8xf32> -> vector<16x8xf32>
    %c0_19 = arith.constant 0 : index
    %c0_20 = arith.constant 0 : index
    %35 = vector.load %arg7[%c0_19, %c0_20] : memref<1x8xf32, #tpu.memory_space<vmem>>, vector<1x8xf32>
    %36 = vector.broadcast %35 : vector<1x8xf32> to vector<16x8xf32>
    %37 = arith.addf %34, %36 : vector<16x8xf32>
    %38 = vector.extract_strided_slice %37 {offsets = [0, 0], sizes = [16, 2], strides = [1, 1]} : vector<16x8xf32> to vector<16x2xf32>
    %39 = arith.truncf %38 : vector<16x2xf32> to vector<16x2xbf16>
    %c0_21 = arith.constant 0 : index
    %c0_22 = arith.constant 0 : index
    %c0_23 = arith.constant 0 : index
    %40 = vector.load %arg9[%c0_21, %c0_22, %c0_23] : memref<4x16x2xbf16, #tpu.memory_space<vmem>>, vector<1x16x2xbf16>
    %41 = vector.shape_cast %40 : vector<1x16x2xbf16> to vector<16x2xbf16>
    %42 = vector.shape_cast %39 : vector<16x2xbf16> to vector<1x16x2xbf16>
    tpu.vector_store %arg9[%c0_21, %c0_22, %c0_23], %42 {strides = array<i32>} : memref<4x16x2xbf16, #tpu.memory_space<vmem>>, vector<1x16x2xbf16>,
    %43 = vector.extract_strided_slice %37 {offsets = [0, 2], sizes = [16, 2], strides = [1, 1]} : vector<16x8xf32> to vector<16x2xf32>
    %44 = arith.truncf %43 : vector<16x2xf32> to vector<16x2xbf16>
    %c1 = arith.constant 1 : index
    %c0_24 = arith.constant 0 : index
    %c0_25 = arith.constant 0 : index
    %45 = vector.load %arg9[%c1, %c0_24, %c0_25] : memref<4x16x2xbf16, #tpu.memory_space<vmem>>, vector<1x16x2xbf16>
    %46 = vector.shape_cast %45 : vector<1x16x2xbf16> to vector<16x2xbf16>
    %47 = vector.shape_cast %44 : vector<16x2xbf16> to vector<1x16x2xbf16>
    tpu.vector_store %arg9[%c1, %c0_24, %c0_25], %47 {strides = array<i32>} : memref<4x16x2xbf16, #tpu.memory_space<vmem>>, vector<1x16x2xbf16>,
    %48 = vector.extract_strided_slice %37 {offsets = [0, 4], sizes = [16, 2], strides = [1, 1]} : vector<16x8xf32> to vector<16x2xf32>
    %49 = arith.truncf %48 : vector<16x2xf32> to vector<16x2xbf16>
    %c2 = arith.constant 2 : index
    %c0_26 = arith.constant 0 : index
    %c0_27 = arith.constant 0 : index
    %50 = vector.load %arg9[%c2, %c0_26, %c0_27] : memref<4x16x2xbf16, #tpu.memory_space<vmem>>, vector<1x16x2xbf16>
    %51 = vector.shape_cast %50 : vector<1x16x2xbf16> to vector<16x2xbf16>
    %52 = vector.shape_cast %49 : vector<16x2xbf16> to vector<1x16x2xbf16>
    tpu.vector_store %arg9[%c2, %c0_26, %c0_27], %52 {strides = array<i32>} : memref<4x16x2xbf16, #tpu.memory_space<vmem>>, vector<1x16x2xbf16>,
    %53 = vector.extract_strided_slice %37 {offsets = [0, 6], sizes = [16, 2], strides = [1, 1]} : vector<16x8xf32> to vector<16x2xf32>
    %54 = arith.truncf %53 : vector<16x2xf32> to vector<16x2xbf16>
    %c3 = arith.constant 3 : index
    %c0_28 = arith.constant 0 : index
    %c0_29 = arith.constant 0 : index
    %55 = vector.load %arg9[%c3, %c0_28, %c0_29] : memref<4x16x2xbf16, #tpu.memory_space<vmem>>, vector<1x16x2xbf16>
    %56 = vector.shape_cast %55 : vector<1x16x2xbf16> to vector<16x2xbf16>
    %57 = vector.shape_cast %54 : vector<16x2xbf16> to vector<1x16x2xbf16>
    tpu.vector_store %arg9[%c3, %c0_28, %c0_29], %57 {strides = array<i32>} : memref<4x16x2xbf16, #tpu.memory_space<vmem>>, vector<1x16x2xbf16>,
    return
  }
  func.func @transform_0(%arg0: i32) -> (i32, i32) {
    %c0_i32 = arith.constant 0 : i32
    %c0_i32_0 = arith.constant 0 : i32
    return %arg0, %c0_i32 : i32, i32
  }
  func.func @transform_1(%arg0: i32) -> (i32, i32) {
    %c0_i32 = arith.constant 0 : i32
    %c0_i32_0 = arith.constant 0 : i32
    %c0_i32_1 = arith.constant 0 : i32
    return %c0_i32, %c0_i32_0 : i32, i32
  }
  func.func @transform_2(%arg0: i32) -> (i32, i32) {
    %c0_i32 = arith.constant 0 : i32
    %c0_i32_0 = arith.constant 0 : i32
    %c0_i32_1 = arith.constant 0 : i32
    return %c0_i32, %c0_i32_0 : i32, i32
  }
  func.func @transform_3(%arg0: i32) -> (i32, i32) {
    %c0_i32 = arith.constant 0 : i32
    %c0_i32_0 = arith.constant 0 : i32
    %c0_i32_1 = arith.constant 0 : i32
    return %c0_i32, %c0_i32_0 : i32, i32
  }
  func.func @transform_4(%arg0: i32) -> (i32, i32) {
    %c0_i32 = arith.constant 0 : i32
    %c0_i32_0 = arith.constant 0 : i32
    %c0_i32_1 = arith.constant 0 : i32
    return %c0_i32, %c0_i32_0 : i32, i32
  }
  func.func @transform_5(%arg0: i32) -> (i32, i32) {
    %c0_i32 = arith.constant 0 : i32
    %c0_i32_0 = arith.constant 0 : i32
    %c0_i32_1 = arith.constant 0 : i32
    return %c0_i32, %c0_i32_0 : i32, i32
  }
  func.func @transform_6(%arg0: i32) -> (i32, i32) {
    %c0_i32 = arith.constant 0 : i32
    %c0_i32_0 = arith.constant 0 : i32
    %c0_i32_1 = arith.constant 0 : i32
    return %c0_i32, %c0_i32_0 : i32, i32
  }
  func.func @transform_7(%arg0: i32) -> (i32, i32) {
    %c0_i32 = arith.constant 0 : i32
    %c0_i32_0 = arith.constant 0 : i32
    return %arg0, %c0_i32 : i32, i32
  }
  func.func @transform_8(%arg0: i32) -> (i32, i32, i32) {
    %c0_i32 = arith.constant 0 : i32
    %c0_i32_0 = arith.constant 0 : i32
    %c0_i32_1 = arith.constant 0 : i32
    return %c0_i32, %arg0, %c0_i32_0 : i32, i32, i32
  }
}

module attributes {stable_mosaic.version = 11 : i64} {
  func.func @_enc_kv_kernel(%arg0: i32, %arg1: memref<32x32xf32, #tpu.memory_space<vmem>>, %arg2: memref<32x40xbf16, #tpu.memory_space<vmem>>, %arg3: memref<1x40xf32, #tpu.memory_space<vmem>>, %arg4: memref<4x32x2xbf16, #tpu.memory_space<vmem>>, %arg5: memref<4x32x8xbf16, #tpu.memory_space<vmem>>) attributes {dimension_semantics = [#tpu.dimension_semantics<parallel>], iteration_bounds = array<i64: 1>, scalar_prefetch = 0 : i64, scratch_operands = 0 : i64, tpu.core_type = #tpu.core_type<tc>, window_params = [{transform_indices = @transform_0, window_bounds = array<i64: 32, 32>}, {pipeline_mode = #tpu.pipeline_mode<synchronous>, transform_indices = @transform_1, window_bounds = array<i64: 32, 40>}, {pipeline_mode = #tpu.pipeline_mode<synchronous>, transform_indices = @transform_2, window_bounds = array<i64: 1, 40>}, {transform_indices = @transform_3, window_bounds = array<i64: 4, 32, 2>}, {transform_indices = @transform_4, window_bounds = array<i64: 4, 32, 8>}]} {
    %c0 = arith.constant 0 : index
    %c0_0 = arith.constant 0 : index
    %0 = vector.load %arg1[%c0, %c0_0] : memref<32x32xf32, #tpu.memory_space<vmem>>, vector<32x32xf32>
    %1 = arith.truncf %0 : vector<32x32xf32> to vector<32x32xbf16>
    %c0_1 = arith.constant 0 : index
    %c0_2 = arith.constant 0 : index
    %2 = vector.load %arg2[%c0_1, %c0_2] : memref<32x40xbf16, #tpu.memory_space<vmem>>, vector<32x40xbf16>
    %cst = arith.constant dense<0.000000e+00> : vector<32x40xf32>
    %3 = tpu.matmul %1, %2, %cst {dimension_numbers = #tpu.dot_dimension_numbers<[1], [0], [0], [1], [0, 0, 1, 1], [], []>} : vector<32x32xbf16>, vector<32x40xbf16>, vector<32x40xf32> -> vector<32x40xf32>
    %c0_3 = arith.constant 0 : index
    %c0_4 = arith.constant 0 : index
    %4 = vector.load %arg3[%c0_3, %c0_4] : memref<1x40xf32, #tpu.memory_space<vmem>>, vector<1x40xf32>
    %5 = vector.broadcast %4 : vector<1x40xf32> to vector<32x40xf32>
    %6 = arith.addf %3, %5 : vector<32x40xf32>
    %7 = vector.extract_strided_slice %6 {offsets = [0, 0], sizes = [32, 2], strides = [1, 1]} : vector<32x40xf32> to vector<32x2xf32>
    %8 = arith.truncf %7 : vector<32x2xf32> to vector<32x2xbf16>
    %c0_5 = arith.constant 0 : index
    %c0_6 = arith.constant 0 : index
    %c0_7 = arith.constant 0 : index
    %9 = vector.load %arg4[%c0_5, %c0_6, %c0_7] : memref<4x32x2xbf16, #tpu.memory_space<vmem>>, vector<1x32x2xbf16>
    %10 = vector.shape_cast %9 : vector<1x32x2xbf16> to vector<32x2xbf16>
    %11 = vector.shape_cast %8 : vector<32x2xbf16> to vector<1x32x2xbf16>
    tpu.vector_store %arg4[%c0_5, %c0_6, %c0_7], %11 {strides = array<i32>} : memref<4x32x2xbf16, #tpu.memory_space<vmem>>, vector<1x32x2xbf16>,
    %12 = vector.extract_strided_slice %6 {offsets = [0, 2], sizes = [32, 2], strides = [1, 1]} : vector<32x40xf32> to vector<32x2xf32>
    %13 = arith.truncf %12 : vector<32x2xf32> to vector<32x2xbf16>
    %c1 = arith.constant 1 : index
    %c0_8 = arith.constant 0 : index
    %c0_9 = arith.constant 0 : index
    %14 = vector.load %arg4[%c1, %c0_8, %c0_9] : memref<4x32x2xbf16, #tpu.memory_space<vmem>>, vector<1x32x2xbf16>
    %15 = vector.shape_cast %14 : vector<1x32x2xbf16> to vector<32x2xbf16>
    %16 = vector.shape_cast %13 : vector<32x2xbf16> to vector<1x32x2xbf16>
    tpu.vector_store %arg4[%c1, %c0_8, %c0_9], %16 {strides = array<i32>} : memref<4x32x2xbf16, #tpu.memory_space<vmem>>, vector<1x32x2xbf16>,
    %17 = vector.extract_strided_slice %6 {offsets = [0, 4], sizes = [32, 2], strides = [1, 1]} : vector<32x40xf32> to vector<32x2xf32>
    %18 = arith.truncf %17 : vector<32x2xf32> to vector<32x2xbf16>
    %c2 = arith.constant 2 : index
    %c0_10 = arith.constant 0 : index
    %c0_11 = arith.constant 0 : index
    %19 = vector.load %arg4[%c2, %c0_10, %c0_11] : memref<4x32x2xbf16, #tpu.memory_space<vmem>>, vector<1x32x2xbf16>
    %20 = vector.shape_cast %19 : vector<1x32x2xbf16> to vector<32x2xbf16>
    %21 = vector.shape_cast %18 : vector<32x2xbf16> to vector<1x32x2xbf16>
    tpu.vector_store %arg4[%c2, %c0_10, %c0_11], %21 {strides = array<i32>} : memref<4x32x2xbf16, #tpu.memory_space<vmem>>, vector<1x32x2xbf16>,
    %22 = vector.extract_strided_slice %6 {offsets = [0, 6], sizes = [32, 2], strides = [1, 1]} : vector<32x40xf32> to vector<32x2xf32>
    %23 = arith.truncf %22 : vector<32x2xf32> to vector<32x2xbf16>
    %c3 = arith.constant 3 : index
    %c0_12 = arith.constant 0 : index
    %c0_13 = arith.constant 0 : index
    %24 = vector.load %arg4[%c3, %c0_12, %c0_13] : memref<4x32x2xbf16, #tpu.memory_space<vmem>>, vector<1x32x2xbf16>
    %25 = vector.shape_cast %24 : vector<1x32x2xbf16> to vector<32x2xbf16>
    %26 = vector.shape_cast %23 : vector<32x2xbf16> to vector<1x32x2xbf16>
    tpu.vector_store %arg4[%c3, %c0_12, %c0_13], %26 {strides = array<i32>} : memref<4x32x2xbf16, #tpu.memory_space<vmem>>, vector<1x32x2xbf16>,
    %27 = vector.extract_strided_slice %6 {offsets = [0, 8], sizes = [32, 8], strides = [1, 1]} : vector<32x40xf32> to vector<32x8xf32>
    %28 = arith.truncf %27 : vector<32x8xf32> to vector<32x8xbf16>
    %c0_14 = arith.constant 0 : index
    %c0_15 = arith.constant 0 : index
    %c0_16 = arith.constant 0 : index
    %29 = vector.load %arg5[%c0_14, %c0_15, %c0_16] : memref<4x32x8xbf16, #tpu.memory_space<vmem>>, vector<1x32x8xbf16>
    %30 = vector.shape_cast %29 : vector<1x32x8xbf16> to vector<32x8xbf16>
    %31 = vector.shape_cast %28 : vector<32x8xbf16> to vector<1x32x8xbf16>
    tpu.vector_store %arg5[%c0_14, %c0_15, %c0_16], %31 {strides = array<i32>} : memref<4x32x8xbf16, #tpu.memory_space<vmem>>, vector<1x32x8xbf16>,
    %32 = vector.extract_strided_slice %6 {offsets = [0, 16], sizes = [32, 8], strides = [1, 1]} : vector<32x40xf32> to vector<32x8xf32>
    %33 = arith.truncf %32 : vector<32x8xf32> to vector<32x8xbf16>
    %c1_17 = arith.constant 1 : index
    %c0_18 = arith.constant 0 : index
    %c0_19 = arith.constant 0 : index
    %34 = vector.load %arg5[%c1_17, %c0_18, %c0_19] : memref<4x32x8xbf16, #tpu.memory_space<vmem>>, vector<1x32x8xbf16>
    %35 = vector.shape_cast %34 : vector<1x32x8xbf16> to vector<32x8xbf16>
    %36 = vector.shape_cast %33 : vector<32x8xbf16> to vector<1x32x8xbf16>
    tpu.vector_store %arg5[%c1_17, %c0_18, %c0_19], %36 {strides = array<i32>} : memref<4x32x8xbf16, #tpu.memory_space<vmem>>, vector<1x32x8xbf16>,
    %37 = vector.extract_strided_slice %6 {offsets = [0, 24], sizes = [32, 8], strides = [1, 1]} : vector<32x40xf32> to vector<32x8xf32>
    %38 = arith.truncf %37 : vector<32x8xf32> to vector<32x8xbf16>
    %c2_20 = arith.constant 2 : index
    %c0_21 = arith.constant 0 : index
    %c0_22 = arith.constant 0 : index
    %39 = vector.load %arg5[%c2_20, %c0_21, %c0_22] : memref<4x32x8xbf16, #tpu.memory_space<vmem>>, vector<1x32x8xbf16>
    %40 = vector.shape_cast %39 : vector<1x32x8xbf16> to vector<32x8xbf16>
    %41 = vector.shape_cast %38 : vector<32x8xbf16> to vector<1x32x8xbf16>
    tpu.vector_store %arg5[%c2_20, %c0_21, %c0_22], %41 {strides = array<i32>} : memref<4x32x8xbf16, #tpu.memory_space<vmem>>, vector<1x32x8xbf16>,
    %42 = vector.extract_strided_slice %6 {offsets = [0, 32], sizes = [32, 8], strides = [1, 1]} : vector<32x40xf32> to vector<32x8xf32>
    %43 = arith.truncf %42 : vector<32x8xf32> to vector<32x8xbf16>
    %c3_23 = arith.constant 3 : index
    %c0_24 = arith.constant 0 : index
    %c0_25 = arith.constant 0 : index
    %44 = vector.load %arg5[%c3_23, %c0_24, %c0_25] : memref<4x32x8xbf16, #tpu.memory_space<vmem>>, vector<1x32x8xbf16>
    %45 = vector.shape_cast %44 : vector<1x32x8xbf16> to vector<32x8xbf16>
    %46 = vector.shape_cast %43 : vector<32x8xbf16> to vector<1x32x8xbf16>
    tpu.vector_store %arg5[%c3_23, %c0_24, %c0_25], %46 {strides = array<i32>} : memref<4x32x8xbf16, #tpu.memory_space<vmem>>, vector<1x32x8xbf16>,
    return
  }
  func.func @transform_0(%arg0: i32) -> (i32, i32) {
    %c0_i32 = arith.constant 0 : i32
    %c0_i32_0 = arith.constant 0 : i32
    return %arg0, %c0_i32 : i32, i32
  }
  func.func @transform_1(%arg0: i32) -> (i32, i32) {
    %c0_i32 = arith.constant 0 : i32
    %c0_i32_0 = arith.constant 0 : i32
    %c0_i32_1 = arith.constant 0 : i32
    return %c0_i32, %c0_i32_0 : i32, i32
  }
  func.func @transform_2(%arg0: i32) -> (i32, i32) {
    %c0_i32 = arith.constant 0 : i32
    %c0_i32_0 = arith.constant 0 : i32
    %c0_i32_1 = arith.constant 0 : i32
    return %c0_i32, %c0_i32_0 : i32, i32
  }
  func.func @transform_3(%arg0: i32) -> (i32, i32, i32) {
    %c0_i32 = arith.constant 0 : i32
    %c0_i32_0 = arith.constant 0 : i32
    %c0_i32_1 = arith.constant 0 : i32
    return %c0_i32, %arg0, %c0_i32_0 : i32, i32, i32
  }
  func.func @transform_4(%arg0: i32) -> (i32, i32, i32) {
    %c0_i32 = arith.constant 0 : i32
    %c0_i32_0 = arith.constant 0 : i32
    %c0_i32_1 = arith.constant 0 : i32
    return %c0_i32, %arg0, %c0_i32_0 : i32, i32, i32
  }
}

module attributes {stable_mosaic.version = 11 : i64} {
  func.func @_cross_gate_kernel(%arg0: i32, %arg1: memref<16x32xbf16, #tpu.memory_space<vmem>>, %arg2: memref<16x32xbf16, #tpu.memory_space<vmem>>, %arg3: memref<32x32xbf16, #tpu.memory_space<vmem>>, %arg4: memref<1x32xf32, #tpu.memory_space<vmem>>, %arg5: memref<32x32xbf16, #tpu.memory_space<vmem>>, %arg6: memref<32x32xbf16, #tpu.memory_space<vmem>>, %arg7: memref<1x32xf32, #tpu.memory_space<vmem>>, %arg8: memref<1x32xf32, #tpu.memory_space<vmem>>, %arg9: memref<1x32xf32, #tpu.memory_space<vmem>>, %arg10: memref<16x32xbf16, #tpu.memory_space<vmem>>) attributes {dimension_semantics = [#tpu.dimension_semantics<parallel>], iteration_bounds = array<i64: 1>, scalar_prefetch = 0 : i64, scratch_operands = 0 : i64, tpu.core_type = #tpu.core_type<tc>, window_params = [{transform_indices = @transform_0, window_bounds = array<i64: 16, 32>}, {transform_indices = @transform_1, window_bounds = array<i64: 16, 32>}, {pipeline_mode = #tpu.pipeline_mode<synchronous>, transform_indices = @transform_2, window_bounds = array<i64: 32, 32>}, {pipeline_mode = #tpu.pipeline_mode<synchronous>, transform_indices = @transform_3, window_bounds = array<i64: 1, 32>}, {pipeline_mode = #tpu.pipeline_mode<synchronous>, transform_indices = @transform_4, window_bounds = array<i64: 32, 32>}, {pipeline_mode = #tpu.pipeline_mode<synchronous>, transform_indices = @transform_5, window_bounds = array<i64: 32, 32>}, {pipeline_mode = #tpu.pipeline_mode<synchronous>, transform_indices = @transform_6, window_bounds = array<i64: 1, 32>}, {pipeline_mode = #tpu.pipeline_mode<synchronous>, transform_indices = @transform_7, window_bounds = array<i64: 1, 32>}, {pipeline_mode = #tpu.pipeline_mode<synchronous>, transform_indices = @transform_8, window_bounds = array<i64: 1, 32>}, {transform_indices = @transform_9, window_bounds = array<i64: 16, 32>}]} {
    %c0 = arith.constant 0 : index
    %c0_0 = arith.constant 0 : index
    %0 = vector.load %arg2[%c0, %c0_0] : memref<16x32xbf16, #tpu.memory_space<vmem>>, vector<16x32xbf16>
    %1 = arith.extf %0 : vector<16x32xbf16> to vector<16x32xf32>
    %c0_1 = arith.constant 0 : index
    %c0_2 = arith.constant 0 : index
    %2 = vector.load %arg1[%c0_1, %c0_2] : memref<16x32xbf16, #tpu.memory_space<vmem>>, vector<16x32xbf16>
    %c0_3 = arith.constant 0 : index
    %c0_4 = arith.constant 0 : index
    %3 = vector.load %arg3[%c0_3, %c0_4] : memref<32x32xbf16, #tpu.memory_space<vmem>>, vector<32x32xbf16>
    %cst = arith.constant dense<0.000000e+00> : vector<16x32xf32>
    %4 = tpu.matmul %2, %3, %cst {dimension_numbers = #tpu.dot_dimension_numbers<[1], [0], [0], [1], [0, 0, 1, 1], [], []>} : vector<16x32xbf16>, vector<32x32xbf16>, vector<16x32xf32> -> vector<16x32xf32>
    %c0_5 = arith.constant 0 : index
    %c0_6 = arith.constant 0 : index
    %5 = vector.load %arg4[%c0_5, %c0_6] : memref<1x32xf32, #tpu.memory_space<vmem>>, vector<1x32xf32>
    %6 = vector.broadcast %5 : vector<1x32xf32> to vector<16x32xf32>
    %7 = arith.addf %4, %6 : vector<16x32xf32>
    %c0_7 = arith.constant 0 : index
    %c0_8 = arith.constant 0 : index
    %8 = vector.load %arg2[%c0_7, %c0_8] : memref<16x32xbf16, #tpu.memory_space<vmem>>, vector<16x32xbf16>
    %c0_9 = arith.constant 0 : index
    %c0_10 = arith.constant 0 : index
    %9 = vector.load %arg5[%c0_9, %c0_10] : memref<32x32xbf16, #tpu.memory_space<vmem>>, vector<32x32xbf16>
    %cst_11 = arith.constant dense<0.000000e+00> : vector<16x32xf32>
    %10 = tpu.matmul %8, %9, %cst_11 {dimension_numbers = #tpu.dot_dimension_numbers<[1], [0], [0], [1], [0, 0, 1, 1], [], []>} : vector<16x32xbf16>, vector<32x32xbf16>, vector<16x32xf32> -> vector<16x32xf32>
    %11 = arith.truncf %7 : vector<16x32xf32> to vector<16x32xbf16>
    %c0_12 = arith.constant 0 : index
    %c0_13 = arith.constant 0 : index
    %12 = vector.load %arg6[%c0_12, %c0_13] : memref<32x32xbf16, #tpu.memory_space<vmem>>, vector<32x32xbf16>
    %cst_14 = arith.constant dense<0.000000e+00> : vector<16x32xf32>
    %13 = tpu.matmul %11, %12, %cst_14 {dimension_numbers = #tpu.dot_dimension_numbers<[1], [0], [0], [1], [0, 0, 1, 1], [], []>} : vector<16x32xbf16>, vector<32x32xbf16>, vector<16x32xf32> -> vector<16x32xf32>
    %14 = arith.addf %10, %13 : vector<16x32xf32>
    %c0_15 = arith.constant 0 : index
    %c0_16 = arith.constant 0 : index
    %15 = vector.load %arg7[%c0_15, %c0_16] : memref<1x32xf32, #tpu.memory_space<vmem>>, vector<1x32xf32>
    %16 = vector.broadcast %15 : vector<1x32xf32> to vector<16x32xf32>
    %17 = arith.addf %14, %16 : vector<16x32xf32>
    %cst_17 = arith.constant 0.000000e+00 : f32
    %18 = vector.broadcast %cst_17 : f32 to vector<16x32xf32>
    %19 = arith.subf %18, %17 : vector<16x32xf32>
    %20 = math.exp %19 : vector<16x32xf32>
    %cst_18 = arith.constant 1.000000e+00 : f32
    %21 = vector.broadcast %cst_18 : f32 to vector<16x32xf32>
    %22 = arith.addf %21, %20 : vector<16x32xf32>
    %cst_19 = arith.constant 1.000000e+00 : f32
    %23 = vector.broadcast %cst_19 : f32 to vector<16x32xf32>
    %24 = arith.divf %23, %22 : vector<16x32xf32>
    %25 = arith.mulf %24, %7 : vector<16x32xf32>
    %cst_20 = arith.constant 1.000000e+00 : f32
    %26 = vector.broadcast %cst_20 : f32 to vector<16x32xf32>
    %27 = arith.subf %26, %24 : vector<16x32xf32>
    %28 = arith.mulf %27, %1 : vector<16x32xf32>
    %29 = arith.addf %25, %28 : vector<16x32xf32>
    %c0_21 = arith.constant 0 : index
    %c0_22 = arith.constant 0 : index
    %30 = vector.load %arg8[%c0_21, %c0_22] : memref<1x32xf32, #tpu.memory_space<vmem>>, vector<1x32xf32>
    %c0_23 = arith.constant 0 : index
    %c0_24 = arith.constant 0 : index
    %31 = vector.load %arg9[%c0_23, %c0_24] : memref<1x32xf32, #tpu.memory_space<vmem>>, vector<1x32xf32>
    %cst_25 = arith.constant dense<0.000000e+00> : vector<16xf32>
    %32 = vector.multi_reduction <add>, %29, %cst_25 [1] : vector<16x32xf32> to vector<16xf32>
    %33 = vector.shape_cast %32 : vector<16xf32> to vector<16x1xf32>
    %cst_26 = arith.constant 3.200000e+01 : f32
    %34 = vector.broadcast %cst_26 : f32 to vector<16x1xf32>
    %35 = arith.divf %33, %34 : vector<16x1xf32>
    %36 = vector.broadcast %35 : vector<16x1xf32> to vector<16x32xf32>
    %37 = arith.subf %29, %36 : vector<16x32xf32>
    %38 = arith.mulf %37, %37 : vector<16x32xf32>
    %cst_27 = arith.constant dense<0.000000e+00> : vector<16xf32>
    %39 = vector.multi_reduction <add>, %38, %cst_27 [1] : vector<16x32xf32> to vector<16xf32>
    %40 = vector.shape_cast %39 : vector<16xf32> to vector<16x1xf32>
    %cst_28 = arith.constant 3.200000e+01 : f32
    %41 = vector.broadcast %cst_28 : f32 to vector<16x1xf32>
    %42 = arith.divf %40, %41 : vector<16x1xf32>
    %43 = vector.broadcast %35 : vector<16x1xf32> to vector<16x32xf32>
    %44 = arith.subf %29, %43 : vector<16x32xf32>
    %cst_29 = arith.constant 9.99999996E-13 : f32
    %45 = vector.broadcast %cst_29 : f32 to vector<16x1xf32>
    %46 = arith.addf %42, %45 : vector<16x1xf32>
    %47 = math.rsqrt %46 : vector<16x1xf32>
    %48 = vector.broadcast %47 : vector<16x1xf32> to vector<16x32xf32>
    %49 = arith.mulf %44, %48 : vector<16x32xf32>
    %50 = vector.broadcast %30 : vector<1x32xf32> to vector<16x32xf32>
    %51 = arith.mulf %49, %50 : vector<16x32xf32>
    %52 = vector.broadcast %31 : vector<1x32xf32> to vector<16x32xf32>
    %53 = arith.addf %51, %52 : vector<16x32xf32>
    %54 = arith.truncf %53 : vector<16x32xf32> to vector<16x32xbf16>
    %c0_30 = arith.constant 0 : index
    %c0_31 = arith.constant 0 : index
    %55 = vector.load %arg10[%c0_30, %c0_31] : memref<16x32xbf16, #tpu.memory_space<vmem>>, vector<16x32xbf16>
    tpu.vector_store %arg10[%c0_30, %c0_31], %54 {strides = array<i32>} : memref<16x32xbf16, #tpu.memory_space<vmem>>, vector<16x32xbf16>,
    return
  }
  func.func @transform_0(%arg0: i32) -> (i32, i32) {
    %c0_i32 = arith.constant 0 : i32
    %c0_i32_0 = arith.constant 0 : i32
    return %arg0, %c0_i32 : i32, i32
  }
  func.func @transform_1(%arg0: i32) -> (i32, i32) {
    %c0_i32 = arith.constant 0 : i32
    %c0_i32_0 = arith.constant 0 : i32
    return %arg0, %c0_i32 : i32, i32
  }
  func.func @transform_2(%arg0: i32) -> (i32, i32) {
    %c0_i32 = arith.constant 0 : i32
    %c0_i32_0 = arith.constant 0 : i32
    %c0_i32_1 = arith.constant 0 : i32
    return %c0_i32, %c0_i32_0 : i32, i32
  }
  func.func @transform_3(%arg0: i32) -> (i32, i32) {
    %c0_i32 = arith.constant 0 : i32
    %c0_i32_0 = arith.constant 0 : i32
    %c0_i32_1 = arith.constant 0 : i32
    return %c0_i32, %c0_i32_0 : i32, i32
  }
  func.func @transform_4(%arg0: i32) -> (i32, i32) {
    %c0_i32 = arith.constant 0 : i32
    %c0_i32_0 = arith.constant 0 : i32
    %c0_i32_1 = arith.constant 0 : i32
    return %c0_i32, %c0_i32_0 : i32, i32
  }
  func.func @transform_5(%arg0: i32) -> (i32, i32) {
    %c0_i32 = arith.constant 0 : i32
    %c0_i32_0 = arith.constant 0 : i32
    %c0_i32_1 = arith.constant 0 : i32
    return %c0_i32, %c0_i32_0 : i32, i32
  }
  func.func @transform_6(%arg0: i32) -> (i32, i32) {
    %c0_i32 = arith.constant 0 : i32
    %c0_i32_0 = arith.constant 0 : i32
    %c0_i32_1 = arith.constant 0 : i32
    return %c0_i32, %c0_i32_0 : i32, i32
  }
  func.func @transform_7(%arg0: i32) -> (i32, i32) {
    %c0_i32 = arith.constant 0 : i32
    %c0_i32_0 = arith.constant 0 : i32
    %c0_i32_1 = arith.constant 0 : i32
    return %c0_i32, %c0_i32_0 : i32, i32
  }
  func.func @transform_8(%arg0: i32) -> (i32, i32) {
    %c0_i32 = arith.constant 0 : i32
    %c0_i32_0 = arith.constant 0 : i32
    %c0_i32_1 = arith.constant 0 : i32
    return %c0_i32, %c0_i32_0 : i32, i32
  }
  func.func @transform_9(%arg0: i32) -> (i32, i32) {
    %c0_i32 = arith.constant 0 : i32
    %c0_i32_0 = arith.constant 0 : i32
    return %arg0, %c0_i32 : i32, i32
  }
}

module attributes {stable_mosaic.version = 11 : i64} {
  func.func @_cross_attention_kernel(%arg0: i32, %arg1: i32, %arg2: memref<4x1x8x2xbf16, #tpu.memory_space<vmem>>, %arg3: memref<4x1x16x2xbf16, #tpu.memory_space<vmem>>, %arg4: memref<4x1x16x8xbf16, #tpu.memory_space<vmem>>, %arg5: memref<1x1x8x16xf32, #tpu.memory_space<vmem>>, %arg6: memref<1x8x32xbf16, #tpu.memory_space<vmem>>, %arg7: memref<4x8x1xf32, #tpu.memory_space<vmem>>, %arg8: memref<4x8x1xf32, #tpu.memory_space<vmem>>, %arg9: memref<4x8x8xf32, #tpu.memory_space<vmem>>) attributes {dimension_semantics = [#tpu.dimension_semantics<parallel>, #tpu.dimension_semantics<arbitrary>], iteration_bounds = array<i64: 2, 1>, scalar_prefetch = 0 : i64, scratch_operands = 3 : i64, tpu.core_type = #tpu.core_type<tc>, window_params = [{transform_indices = @transform_0, window_bounds = array<i64: 4, 1, 8, 2>}, {transform_indices = @transform_1, window_bounds = array<i64: 4, 1, 16, 2>}, {transform_indices = @transform_2, window_bounds = array<i64: 4, 1, 16, 8>}, {transform_indices = @transform_3, window_bounds = array<i64: 1, 1, 8, 16>}, {transform_indices = @transform_4, window_bounds = array<i64: 1, 8, 32>}]} {
    %c0_i32 = arith.constant 0 : i32
    %0 = arith.cmpi eq, %arg1, %c0_i32 : i32
    %1 = arith.extui %0 : i1 to i32
    %c0_i32_0 = arith.constant 0 : i32
    %2 = arith.cmpi ne, %1, %c0_i32_0 : i32
    scf.if %2 {
      %cst_144 = arith.constant -1.000000e+30 : f32
      %180 = vector.broadcast %cst_144 : f32 to vector<4x8x1xf32>
      %c0_145 = arith.constant 0 : index
      %c0_146 = arith.constant 0 : index
      %c0_147 = arith.constant 0 : index
      %181 = vector.load %arg7[%c0_145, %c0_146, %c0_147] : memref<4x8x1xf32, #tpu.memory_space<vmem>>, vector<4x8x1xf32>
      tpu.vector_store %arg7[%c0_145, %c0_146, %c0_147], %180 {strides = array<i32>} : memref<4x8x1xf32, #tpu.memory_space<vmem>>, vector<4x8x1xf32>,
      %cst_148 = arith.constant 0.000000e+00 : f32
      %182 = vector.broadcast %cst_148 : f32 to vector<4x8x1xf32>
      %c0_149 = arith.constant 0 : index
      %c0_150 = arith.constant 0 : index
      %c0_151 = arith.constant 0 : index
      %183 = vector.load %arg8[%c0_149, %c0_150, %c0_151] : memref<4x8x1xf32, #tpu.memory_space<vmem>>, vector<4x8x1xf32>
      tpu.vector_store %arg8[%c0_149, %c0_150, %c0_151], %182 {strides = array<i32>} : memref<4x8x1xf32, #tpu.memory_space<vmem>>, vector<4x8x1xf32>,
      %cst_152 = arith.constant 0.000000e+00 : f32
      %184 = vector.broadcast %cst_152 : f32 to vector<4x8x8xf32>
      %c0_153 = arith.constant 0 : index
      %c0_154 = arith.constant 0 : index
      %c0_155 = arith.constant 0 : index
      %185 = vector.load %arg9[%c0_153, %c0_154, %c0_155] : memref<4x8x8xf32, #tpu.memory_space<vmem>>, vector<4x8x8xf32>
      tpu.vector_store %arg9[%c0_153, %c0_154, %c0_155], %184 {strides = array<i32>} : memref<4x8x8xf32, #tpu.memory_space<vmem>>, vector<4x8x8xf32>,
    } else {
    }
    %c0 = arith.constant 0 : index
    %c0_1 = arith.constant 0 : index
    %c0_2 = arith.constant 0 : index
    %c0_3 = arith.constant 0 : index
    %3 = vector.load %arg5[%c0, %c0_1, %c0_2, %c0_3] : memref<1x1x8x16xf32, #tpu.memory_space<vmem>>, vector<1x1x8x16xf32>
    %4 = vector.shape_cast %3 : vector<1x1x8x16xf32> to vector<8x16xf32>
    %cst = arith.constant 1.000000e+00 : f32
    %5 = vector.broadcast %cst : f32 to vector<8x16xf32>
    %6 = arith.subf %5, %4 : vector<8x16xf32>
    %cst_4 = arith.constant -1.000000e+04 : f32
    %7 = vector.broadcast %cst_4 : f32 to vector<8x16xf32>
    %8 = arith.mulf %6, %7 : vector<8x16xf32>
    %c0_5 = arith.constant 0 : index
    %c0_6 = arith.constant 0 : index
    %c0_7 = arith.constant 0 : index
    %c0_8 = arith.constant 0 : index
    %9 = vector.load %arg2[%c0_5, %c0_6, %c0_7, %c0_8] : memref<4x1x8x2xbf16, #tpu.memory_space<vmem>>, vector<1x1x8x2xbf16>
    %10 = vector.shape_cast %9 : vector<1x1x8x2xbf16> to vector<8x2xbf16>
    %c0_9 = arith.constant 0 : index
    %c0_10 = arith.constant 0 : index
    %c0_11 = arith.constant 0 : index
    %c0_12 = arith.constant 0 : index
    %11 = vector.load %arg3[%c0_9, %c0_10, %c0_11, %c0_12] : memref<4x1x16x2xbf16, #tpu.memory_space<vmem>>, vector<1x1x16x2xbf16>
    %12 = vector.shape_cast %11 : vector<1x1x16x2xbf16> to vector<16x2xbf16>
    %c0_13 = arith.constant 0 : index
    %c0_14 = arith.constant 0 : index
    %c0_15 = arith.constant 0 : index
    %c0_16 = arith.constant 0 : index
    %13 = vector.load %arg4[%c0_13, %c0_14, %c0_15, %c0_16] : memref<4x1x16x8xbf16, #tpu.memory_space<vmem>>, vector<1x1x16x8xbf16>
    %14 = vector.shape_cast %13 : vector<1x1x16x8xbf16> to vector<16x8xbf16>
    %cst_17 = arith.constant dense<0.000000e+00> : vector<8x16xf32>
    %15 = tpu.matmul %10, %12, %cst_17 {dimension_numbers = #tpu.dot_dimension_numbers<[1], [1], [0], [0], [0, 0, 1, 0], [], []>} : vector<8x2xbf16>, vector<16x2xbf16>, vector<8x16xf32> -> vector<8x16xf32>
    %cst_18 = arith.constant 0.707106769 : f32
    %16 = vector.broadcast %cst_18 : f32 to vector<8x16xf32>
    %17 = arith.mulf %15, %16 : vector<8x16xf32>
    %18 = arith.addf %17, %8 : vector<8x16xf32>
    %c0_19 = arith.constant 0 : index
    %c0_20 = arith.constant 0 : index
    %c0_21 = arith.constant 0 : index
    %19 = vector.load %arg7[%c0_19, %c0_20, %c0_21] : memref<4x8x1xf32, #tpu.memory_space<vmem>>, vector<1x8x1xf32>
    %20 = vector.shape_cast %19 : vector<1x8x1xf32> to vector<8x1xf32>
    %cst_22 = arith.constant dense<0xFF800000> : vector<8xf32>
    %21 = vector.multi_reduction <maximumf>, %18, %cst_22 [1] : vector<8x16xf32> to vector<8xf32>
    %22 = vector.shape_cast %21 : vector<8xf32> to vector<8x1xf32>
    %23 = arith.maximumf %20, %22 : vector<8x1xf32>
    %24 = arith.subf %20, %23 : vector<8x1xf32>
    %25 = math.exp %24 : vector<8x1xf32>
    %26 = vector.broadcast %23 : vector<8x1xf32> to vector<8x16xf32>
    %27 = arith.subf %18, %26 : vector<8x16xf32>
    %28 = math.exp %27 : vector<8x16xf32>
    %c0_23 = arith.constant 0 : index
    %c0_24 = arith.constant 0 : index
    %c0_25 = arith.constant 0 : index
    %29 = vector.load %arg8[%c0_23, %c0_24, %c0_25] : memref<4x8x1xf32, #tpu.memory_space<vmem>>, vector<1x8x1xf32>
    %30 = vector.shape_cast %29 : vector<1x8x1xf32> to vector<8x1xf32>
    %31 = arith.mulf %25, %30 : vector<8x1xf32>
    %cst_26 = arith.constant dense<0.000000e+00> : vector<8xf32>
    %32 = vector.multi_reduction <add>, %28, %cst_26 [1] : vector<8x16xf32> to vector<8xf32>
    %33 = vector.shape_cast %32 : vector<8xf32> to vector<8x1xf32>
    %34 = arith.addf %31, %33 : vector<8x1xf32>
    %c0_27 = arith.constant 0 : index
    %c0_28 = arith.constant 0 : index
    %c0_29 = arith.constant 0 : index
    %35 = vector.load %arg8[%c0_27, %c0_28, %c0_29] : memref<4x8x1xf32, #tpu.memory_space<vmem>>, vector<1x8x1xf32>
    %36 = vector.shape_cast %35 : vector<1x8x1xf32> to vector<8x1xf32>
    %37 = vector.shape_cast %34 : vector<8x1xf32> to vector<1x8x1xf32>
    tpu.vector_store %arg8[%c0_27, %c0_28, %c0_29], %37 {strides = array<i32>} : memref<4x8x1xf32, #tpu.memory_space<vmem>>, vector<1x8x1xf32>,
    %c0_30 = arith.constant 0 : index
    %c0_31 = arith.constant 0 : index
    %c0_32 = arith.constant 0 : index
    %38 = vector.load %arg9[%c0_30, %c0_31, %c0_32] : memref<4x8x8xf32, #tpu.memory_space<vmem>>, vector<1x8x8xf32>
    %39 = vector.shape_cast %38 : vector<1x8x8xf32> to vector<8x8xf32>
    %40 = vector.broadcast %25 : vector<8x1xf32> to vector<8x8xf32>
    %41 = arith.mulf %40, %39 : vector<8x8xf32>
    %42 = arith.truncf %28 : vector<8x16xf32> to vector<8x16xbf16>
    %cst_33 = arith.constant dense<0.000000e+00> : vector<8x8xf32>
    %43 = tpu.matmul %42, %14, %cst_33 {dimension_numbers = #tpu.dot_dimension_numbers<[1], [0], [0], [1], [0, 0, 1, 1], [], []>} : vector<8x16xbf16>, vector<16x8xbf16>, vector<8x8xf32> -> vector<8x8xf32>
    %44 = arith.addf %41, %43 : vector<8x8xf32>
    %c0_34 = arith.constant 0 : index
    %c0_35 = arith.constant 0 : index
    %c0_36 = arith.constant 0 : index
    %45 = vector.load %arg9[%c0_34, %c0_35, %c0_36] : memref<4x8x8xf32, #tpu.memory_space<vmem>>, vector<1x8x8xf32>
    %46 = vector.shape_cast %45 : vector<1x8x8xf32> to vector<8x8xf32>
    %47 = vector.shape_cast %44 : vector<8x8xf32> to vector<1x8x8xf32>
    tpu.vector_store %arg9[%c0_34, %c0_35, %c0_36], %47 {strides = array<i32>} : memref<4x8x8xf32, #tpu.memory_space<vmem>>, vector<1x8x8xf32>,
    %c0_37 = arith.constant 0 : index
    %c0_38 = arith.constant 0 : index
    %c0_39 = arith.constant 0 : index
    %48 = vector.load %arg7[%c0_37, %c0_38, %c0_39] : memref<4x8x1xf32, #tpu.memory_space<vmem>>, vector<1x8x1xf32>
    %49 = vector.shape_cast %48 : vector<1x8x1xf32> to vector<8x1xf32>
    %50 = vector.shape_cast %23 : vector<8x1xf32> to vector<1x8x1xf32>
    tpu.vector_store %arg7[%c0_37, %c0_38, %c0_39], %50 {strides = array<i32>} : memref<4x8x1xf32, #tpu.memory_space<vmem>>, vector<1x8x1xf32>,
    %c1 = arith.constant 1 : index
    %c0_40 = arith.constant 0 : index
    %c0_41 = arith.constant 0 : index
    %c0_42 = arith.constant 0 : index
    %51 = vector.load %arg2[%c1, %c0_40, %c0_41, %c0_42] : memref<4x1x8x2xbf16, #tpu.memory_space<vmem>>, vector<1x1x8x2xbf16>
    %52 = vector.shape_cast %51 : vector<1x1x8x2xbf16> to vector<8x2xbf16>
    %c1_43 = arith.constant 1 : index
    %c0_44 = arith.constant 0 : index
    %c0_45 = arith.constant 0 : index
    %c0_46 = arith.constant 0 : index
    %53 = vector.load %arg3[%c1_43, %c0_44, %c0_45, %c0_46] : memref<4x1x16x2xbf16, #tpu.memory_space<vmem>>, vector<1x1x16x2xbf16>
    %54 = vector.shape_cast %53 : vector<1x1x16x2xbf16> to vector<16x2xbf16>
    %c1_47 = arith.constant 1 : index
    %c0_48 = arith.constant 0 : index
    %c0_49 = arith.constant 0 : index
    %c0_50 = arith.constant 0 : index
    %55 = vector.load %arg4[%c1_47, %c0_48, %c0_49, %c0_50] : memref<4x1x16x8xbf16, #tpu.memory_space<vmem>>, vector<1x1x16x8xbf16>
    %56 = vector.shape_cast %55 : vector<1x1x16x8xbf16> to vector<16x8xbf16>
    %cst_51 = arith.constant dense<0.000000e+00> : vector<8x16xf32>
    %57 = tpu.matmul %52, %54, %cst_51 {dimension_numbers = #tpu.dot_dimension_numbers<[1], [1], [0], [0], [0, 0, 1, 0], [], []>} : vector<8x2xbf16>, vector<16x2xbf16>, vector<8x16xf32> -> vector<8x16xf32>
    %cst_52 = arith.constant 0.707106769 : f32
    %58 = vector.broadcast %cst_52 : f32 to vector<8x16xf32>
    %59 = arith.mulf %57, %58 : vector<8x16xf32>
    %60 = arith.addf %59, %8 : vector<8x16xf32>
    %c1_53 = arith.constant 1 : index
    %c0_54 = arith.constant 0 : index
    %c0_55 = arith.constant 0 : index
    %61 = vector.load %arg7[%c1_53, %c0_54, %c0_55] : memref<4x8x1xf32, #tpu.memory_space<vmem>>, vector<1x8x1xf32>
    %62 = vector.shape_cast %61 : vector<1x8x1xf32> to vector<8x1xf32>
    %cst_56 = arith.constant dense<0xFF800000> : vector<8xf32>
    %63 = vector.multi_reduction <maximumf>, %60, %cst_56 [1] : vector<8x16xf32> to vector<8xf32>
    %64 = vector.shape_cast %63 : vector<8xf32> to vector<8x1xf32>
    %65 = arith.maximumf %62, %64 : vector<8x1xf32>
    %66 = arith.subf %62, %65 : vector<8x1xf32>
    %67 = math.exp %66 : vector<8x1xf32>
    %68 = vector.broadcast %65 : vector<8x1xf32> to vector<8x16xf32>
    %69 = arith.subf %60, %68 : vector<8x16xf32>
    %70 = math.exp %69 : vector<8x16xf32>
    %c1_57 = arith.constant 1 : index
    %c0_58 = arith.constant 0 : index
    %c0_59 = arith.constant 0 : index
    %71 = vector.load %arg8[%c1_57, %c0_58, %c0_59] : memref<4x8x1xf32, #tpu.memory_space<vmem>>, vector<1x8x1xf32>
    %72 = vector.shape_cast %71 : vector<1x8x1xf32> to vector<8x1xf32>
    %73 = arith.mulf %67, %72 : vector<8x1xf32>
    %cst_60 = arith.constant dense<0.000000e+00> : vector<8xf32>
    %74 = vector.multi_reduction <add>, %70, %cst_60 [1] : vector<8x16xf32> to vector<8xf32>
    %75 = vector.shape_cast %74 : vector<8xf32> to vector<8x1xf32>
    %76 = arith.addf %73, %75 : vector<8x1xf32>
    %c1_61 = arith.constant 1 : index
    %c0_62 = arith.constant 0 : index
    %c0_63 = arith.constant 0 : index
    %77 = vector.load %arg8[%c1_61, %c0_62, %c0_63] : memref<4x8x1xf32, #tpu.memory_space<vmem>>, vector<1x8x1xf32>
    %78 = vector.shape_cast %77 : vector<1x8x1xf32> to vector<8x1xf32>
    %79 = vector.shape_cast %76 : vector<8x1xf32> to vector<1x8x1xf32>
    tpu.vector_store %arg8[%c1_61, %c0_62, %c0_63], %79 {strides = array<i32>} : memref<4x8x1xf32, #tpu.memory_space<vmem>>, vector<1x8x1xf32>,
    %c1_64 = arith.constant 1 : index
    %c0_65 = arith.constant 0 : index
    %c0_66 = arith.constant 0 : index
    %80 = vector.load %arg9[%c1_64, %c0_65, %c0_66] : memref<4x8x8xf32, #tpu.memory_space<vmem>>, vector<1x8x8xf32>
    %81 = vector.shape_cast %80 : vector<1x8x8xf32> to vector<8x8xf32>
    %82 = vector.broadcast %67 : vector<8x1xf32> to vector<8x8xf32>
    %83 = arith.mulf %82, %81 : vector<8x8xf32>
    %84 = arith.truncf %70 : vector<8x16xf32> to vector<8x16xbf16>
    %cst_67 = arith.constant dense<0.000000e+00> : vector<8x8xf32>
    %85 = tpu.matmul %84, %56, %cst_67 {dimension_numbers = #tpu.dot_dimension_numbers<[1], [0], [0], [1], [0, 0, 1, 1], [], []>} : vector<8x16xbf16>, vector<16x8xbf16>, vector<8x8xf32> -> vector<8x8xf32>
    %86 = arith.addf %83, %85 : vector<8x8xf32>
    %c1_68 = arith.constant 1 : index
    %c0_69 = arith.constant 0 : index
    %c0_70 = arith.constant 0 : index
    %87 = vector.load %arg9[%c1_68, %c0_69, %c0_70] : memref<4x8x8xf32, #tpu.memory_space<vmem>>, vector<1x8x8xf32>
    %88 = vector.shape_cast %87 : vector<1x8x8xf32> to vector<8x8xf32>
    %89 = vector.shape_cast %86 : vector<8x8xf32> to vector<1x8x8xf32>
    tpu.vector_store %arg9[%c1_68, %c0_69, %c0_70], %89 {strides = array<i32>} : memref<4x8x8xf32, #tpu.memory_space<vmem>>, vector<1x8x8xf32>,
    %c1_71 = arith.constant 1 : index
    %c0_72 = arith.constant 0 : index
    %c0_73 = arith.constant 0 : index
    %90 = vector.load %arg7[%c1_71, %c0_72, %c0_73] : memref<4x8x1xf32, #tpu.memory_space<vmem>>, vector<1x8x1xf32>
    %91 = vector.shape_cast %90 : vector<1x8x1xf32> to vector<8x1xf32>
    %92 = vector.shape_cast %65 : vector<8x1xf32> to vector<1x8x1xf32>
    tpu.vector_store %arg7[%c1_71, %c0_72, %c0_73], %92 {strides = array<i32>} : memref<4x8x1xf32, #tpu.memory_space<vmem>>, vector<1x8x1xf32>,
    %c2 = arith.constant 2 : index
    %c0_74 = arith.constant 0 : index
    %c0_75 = arith.constant 0 : index
    %c0_76 = arith.constant 0 : index
    %93 = vector.load %arg2[%c2, %c0_74, %c0_75, %c0_76] : memref<4x1x8x2xbf16, #tpu.memory_space<vmem>>, vector<1x1x8x2xbf16>
    %94 = vector.shape_cast %93 : vector<1x1x8x2xbf16> to vector<8x2xbf16>
    %c2_77 = arith.constant 2 : index
    %c0_78 = arith.constant 0 : index
    %c0_79 = arith.constant 0 : index
    %c0_80 = arith.constant 0 : index
    %95 = vector.load %arg3[%c2_77, %c0_78, %c0_79, %c0_80] : memref<4x1x16x2xbf16, #tpu.memory_space<vmem>>, vector<1x1x16x2xbf16>
    %96 = vector.shape_cast %95 : vector<1x1x16x2xbf16> to vector<16x2xbf16>
    %c2_81 = arith.constant 2 : index
    %c0_82 = arith.constant 0 : index
    %c0_83 = arith.constant 0 : index
    %c0_84 = arith.constant 0 : index
    %97 = vector.load %arg4[%c2_81, %c0_82, %c0_83, %c0_84] : memref<4x1x16x8xbf16, #tpu.memory_space<vmem>>, vector<1x1x16x8xbf16>
    %98 = vector.shape_cast %97 : vector<1x1x16x8xbf16> to vector<16x8xbf16>
    %cst_85 = arith.constant dense<0.000000e+00> : vector<8x16xf32>
    %99 = tpu.matmul %94, %96, %cst_85 {dimension_numbers = #tpu.dot_dimension_numbers<[1], [1], [0], [0], [0, 0, 1, 0], [], []>} : vector<8x2xbf16>, vector<16x2xbf16>, vector<8x16xf32> -> vector<8x16xf32>
    %cst_86 = arith.constant 0.707106769 : f32
    %100 = vector.broadcast %cst_86 : f32 to vector<8x16xf32>
    %101 = arith.mulf %99, %100 : vector<8x16xf32>
    %102 = arith.addf %101, %8 : vector<8x16xf32>
    %c2_87 = arith.constant 2 : index
    %c0_88 = arith.constant 0 : index
    %c0_89 = arith.constant 0 : index
    %103 = vector.load %arg7[%c2_87, %c0_88, %c0_89] : memref<4x8x1xf32, #tpu.memory_space<vmem>>, vector<1x8x1xf32>
    %104 = vector.shape_cast %103 : vector<1x8x1xf32> to vector<8x1xf32>
    %cst_90 = arith.constant dense<0xFF800000> : vector<8xf32>
    %105 = vector.multi_reduction <maximumf>, %102, %cst_90 [1] : vector<8x16xf32> to vector<8xf32>
    %106 = vector.shape_cast %105 : vector<8xf32> to vector<8x1xf32>
    %107 = arith.maximumf %104, %106 : vector<8x1xf32>
    %108 = arith.subf %104, %107 : vector<8x1xf32>
    %109 = math.exp %108 : vector<8x1xf32>
    %110 = vector.broadcast %107 : vector<8x1xf32> to vector<8x16xf32>
    %111 = arith.subf %102, %110 : vector<8x16xf32>
    %112 = math.exp %111 : vector<8x16xf32>
    %c2_91 = arith.constant 2 : index
    %c0_92 = arith.constant 0 : index
    %c0_93 = arith.constant 0 : index
    %113 = vector.load %arg8[%c2_91, %c0_92, %c0_93] : memref<4x8x1xf32, #tpu.memory_space<vmem>>, vector<1x8x1xf32>
    %114 = vector.shape_cast %113 : vector<1x8x1xf32> to vector<8x1xf32>
    %115 = arith.mulf %109, %114 : vector<8x1xf32>
    %cst_94 = arith.constant dense<0.000000e+00> : vector<8xf32>
    %116 = vector.multi_reduction <add>, %112, %cst_94 [1] : vector<8x16xf32> to vector<8xf32>
    %117 = vector.shape_cast %116 : vector<8xf32> to vector<8x1xf32>
    %118 = arith.addf %115, %117 : vector<8x1xf32>
    %c2_95 = arith.constant 2 : index
    %c0_96 = arith.constant 0 : index
    %c0_97 = arith.constant 0 : index
    %119 = vector.load %arg8[%c2_95, %c0_96, %c0_97] : memref<4x8x1xf32, #tpu.memory_space<vmem>>, vector<1x8x1xf32>
    %120 = vector.shape_cast %119 : vector<1x8x1xf32> to vector<8x1xf32>
    %121 = vector.shape_cast %118 : vector<8x1xf32> to vector<1x8x1xf32>
    tpu.vector_store %arg8[%c2_95, %c0_96, %c0_97], %121 {strides = array<i32>} : memref<4x8x1xf32, #tpu.memory_space<vmem>>, vector<1x8x1xf32>,
    %c2_98 = arith.constant 2 : index
    %c0_99 = arith.constant 0 : index
    %c0_100 = arith.constant 0 : index
    %122 = vector.load %arg9[%c2_98, %c0_99, %c0_100] : memref<4x8x8xf32, #tpu.memory_space<vmem>>, vector<1x8x8xf32>
    %123 = vector.shape_cast %122 : vector<1x8x8xf32> to vector<8x8xf32>
    %124 = vector.broadcast %109 : vector<8x1xf32> to vector<8x8xf32>
    %125 = arith.mulf %124, %123 : vector<8x8xf32>
    %126 = arith.truncf %112 : vector<8x16xf32> to vector<8x16xbf16>
    %cst_101 = arith.constant dense<0.000000e+00> : vector<8x8xf32>
    %127 = tpu.matmul %126, %98, %cst_101 {dimension_numbers = #tpu.dot_dimension_numbers<[1], [0], [0], [1], [0, 0, 1, 1], [], []>} : vector<8x16xbf16>, vector<16x8xbf16>, vector<8x8xf32> -> vector<8x8xf32>
    %128 = arith.addf %125, %127 : vector<8x8xf32>
    %c2_102 = arith.constant 2 : index
    %c0_103 = arith.constant 0 : index
    %c0_104 = arith.constant 0 : index
    %129 = vector.load %arg9[%c2_102, %c0_103, %c0_104] : memref<4x8x8xf32, #tpu.memory_space<vmem>>, vector<1x8x8xf32>
    %130 = vector.shape_cast %129 : vector<1x8x8xf32> to vector<8x8xf32>
    %131 = vector.shape_cast %128 : vector<8x8xf32> to vector<1x8x8xf32>
    tpu.vector_store %arg9[%c2_102, %c0_103, %c0_104], %131 {strides = array<i32>} : memref<4x8x8xf32, #tpu.memory_space<vmem>>, vector<1x8x8xf32>,
    %c2_105 = arith.constant 2 : index
    %c0_106 = arith.constant 0 : index
    %c0_107 = arith.constant 0 : index
    %132 = vector.load %arg7[%c2_105, %c0_106, %c0_107] : memref<4x8x1xf32, #tpu.memory_space<vmem>>, vector<1x8x1xf32>
    %133 = vector.shape_cast %132 : vector<1x8x1xf32> to vector<8x1xf32>
    %134 = vector.shape_cast %107 : vector<8x1xf32> to vector<1x8x1xf32>
    tpu.vector_store %arg7[%c2_105, %c0_106, %c0_107], %134 {strides = array<i32>} : memref<4x8x1xf32, #tpu.memory_space<vmem>>, vector<1x8x1xf32>,
    %c3 = arith.constant 3 : index
    %c0_108 = arith.constant 0 : index
    %c0_109 = arith.constant 0 : index
    %c0_110 = arith.constant 0 : index
    %135 = vector.load %arg2[%c3, %c0_108, %c0_109, %c0_110] : memref<4x1x8x2xbf16, #tpu.memory_space<vmem>>, vector<1x1x8x2xbf16>
    %136 = vector.shape_cast %135 : vector<1x1x8x2xbf16> to vector<8x2xbf16>
    %c3_111 = arith.constant 3 : index
    %c0_112 = arith.constant 0 : index
    %c0_113 = arith.constant 0 : index
    %c0_114 = arith.constant 0 : index
    %137 = vector.load %arg3[%c3_111, %c0_112, %c0_113, %c0_114] : memref<4x1x16x2xbf16, #tpu.memory_space<vmem>>, vector<1x1x16x2xbf16>
    %138 = vector.shape_cast %137 : vector<1x1x16x2xbf16> to vector<16x2xbf16>
    %c3_115 = arith.constant 3 : index
    %c0_116 = arith.constant 0 : index
    %c0_117 = arith.constant 0 : index
    %c0_118 = arith.constant 0 : index
    %139 = vector.load %arg4[%c3_115, %c0_116, %c0_117, %c0_118] : memref<4x1x16x8xbf16, #tpu.memory_space<vmem>>, vector<1x1x16x8xbf16>
    %140 = vector.shape_cast %139 : vector<1x1x16x8xbf16> to vector<16x8xbf16>
    %cst_119 = arith.constant dense<0.000000e+00> : vector<8x16xf32>
    %141 = tpu.matmul %136, %138, %cst_119 {dimension_numbers = #tpu.dot_dimension_numbers<[1], [1], [0], [0], [0, 0, 1, 0], [], []>} : vector<8x2xbf16>, vector<16x2xbf16>, vector<8x16xf32> -> vector<8x16xf32>
    %cst_120 = arith.constant 0.707106769 : f32
    %142 = vector.broadcast %cst_120 : f32 to vector<8x16xf32>
    %143 = arith.mulf %141, %142 : vector<8x16xf32>
    %144 = arith.addf %143, %8 : vector<8x16xf32>
    %c3_121 = arith.constant 3 : index
    %c0_122 = arith.constant 0 : index
    %c0_123 = arith.constant 0 : index
    %145 = vector.load %arg7[%c3_121, %c0_122, %c0_123] : memref<4x8x1xf32, #tpu.memory_space<vmem>>, vector<1x8x1xf32>
    %146 = vector.shape_cast %145 : vector<1x8x1xf32> to vector<8x1xf32>
    %cst_124 = arith.constant dense<0xFF800000> : vector<8xf32>
    %147 = vector.multi_reduction <maximumf>, %144, %cst_124 [1] : vector<8x16xf32> to vector<8xf32>
    %148 = vector.shape_cast %147 : vector<8xf32> to vector<8x1xf32>
    %149 = arith.maximumf %146, %148 : vector<8x1xf32>
    %150 = arith.subf %146, %149 : vector<8x1xf32>
    %151 = math.exp %150 : vector<8x1xf32>
    %152 = vector.broadcast %149 : vector<8x1xf32> to vector<8x16xf32>
    %153 = arith.subf %144, %152 : vector<8x16xf32>
    %154 = math.exp %153 : vector<8x16xf32>
    %c3_125 = arith.constant 3 : index
    %c0_126 = arith.constant 0 : index
    %c0_127 = arith.constant 0 : index
    %155 = vector.load %arg8[%c3_125, %c0_126, %c0_127] : memref<4x8x1xf32, #tpu.memory_space<vmem>>, vector<1x8x1xf32>
    %156 = vector.shape_cast %155 : vector<1x8x1xf32> to vector<8x1xf32>
    %157 = arith.mulf %151, %156 : vector<8x1xf32>
    %cst_128 = arith.constant dense<0.000000e+00> : vector<8xf32>
    %158 = vector.multi_reduction <add>, %154, %cst_128 [1] : vector<8x16xf32> to vector<8xf32>
    %159 = vector.shape_cast %158 : vector<8xf32> to vector<8x1xf32>
    %160 = arith.addf %157, %159 : vector<8x1xf32>
    %c3_129 = arith.constant 3 : index
    %c0_130 = arith.constant 0 : index
    %c0_131 = arith.constant 0 : index
    %161 = vector.load %arg8[%c3_129, %c0_130, %c0_131] : memref<4x8x1xf32, #tpu.memory_space<vmem>>, vector<1x8x1xf32>
    %162 = vector.shape_cast %161 : vector<1x8x1xf32> to vector<8x1xf32>
    %163 = vector.shape_cast %160 : vector<8x1xf32> to vector<1x8x1xf32>
    tpu.vector_store %arg8[%c3_129, %c0_130, %c0_131], %163 {strides = array<i32>} : memref<4x8x1xf32, #tpu.memory_space<vmem>>, vector<1x8x1xf32>,
    %c3_132 = arith.constant 3 : index
    %c0_133 = arith.constant 0 : index
    %c0_134 = arith.constant 0 : index
    %164 = vector.load %arg9[%c3_132, %c0_133, %c0_134] : memref<4x8x8xf32, #tpu.memory_space<vmem>>, vector<1x8x8xf32>
    %165 = vector.shape_cast %164 : vector<1x8x8xf32> to vector<8x8xf32>
    %166 = vector.broadcast %151 : vector<8x1xf32> to vector<8x8xf32>
    %167 = arith.mulf %166, %165 : vector<8x8xf32>
    %168 = arith.truncf %154 : vector<8x16xf32> to vector<8x16xbf16>
    %cst_135 = arith.constant dense<0.000000e+00> : vector<8x8xf32>
    %169 = tpu.matmul %168, %140, %cst_135 {dimension_numbers = #tpu.dot_dimension_numbers<[1], [0], [0], [1], [0, 0, 1, 1], [], []>} : vector<8x16xbf16>, vector<16x8xbf16>, vector<8x8xf32> -> vector<8x8xf32>
    %170 = arith.addf %167, %169 : vector<8x8xf32>
    %c3_136 = arith.constant 3 : index
    %c0_137 = arith.constant 0 : index
    %c0_138 = arith.constant 0 : index
    %171 = vector.load %arg9[%c3_136, %c0_137, %c0_138] : memref<4x8x8xf32, #tpu.memory_space<vmem>>, vector<1x8x8xf32>
    %172 = vector.shape_cast %171 : vector<1x8x8xf32> to vector<8x8xf32>
    %173 = vector.shape_cast %170 : vector<8x8xf32> to vector<1x8x8xf32>
    tpu.vector_store %arg9[%c3_136, %c0_137, %c0_138], %173 {strides = array<i32>} : memref<4x8x8xf32, #tpu.memory_space<vmem>>, vector<1x8x8xf32>,
    %c3_139 = arith.constant 3 : index
    %c0_140 = arith.constant 0 : index
    %c0_141 = arith.constant 0 : index
    %174 = vector.load %arg7[%c3_139, %c0_140, %c0_141] : memref<4x8x1xf32, #tpu.memory_space<vmem>>, vector<1x8x1xf32>
    %175 = vector.shape_cast %174 : vector<1x8x1xf32> to vector<8x1xf32>
    %176 = vector.shape_cast %149 : vector<8x1xf32> to vector<1x8x1xf32>
    tpu.vector_store %arg7[%c3_139, %c0_140, %c0_141], %176 {strides = array<i32>} : memref<4x8x1xf32, #tpu.memory_space<vmem>>, vector<1x8x1xf32>,
    %c0_i32_142 = arith.constant 0 : i32
    %177 = arith.cmpi eq, %arg1, %c0_i32_142 : i32
    %178 = arith.extui %177 : i1 to i32
    %c0_i32_143 = arith.constant 0 : i32
    %179 = arith.cmpi ne, %178, %c0_i32_143 : i32
    scf.if %179 {
      %c0_144 = arith.constant 0 : index
      %c0_145 = arith.constant 0 : index
      %c0_146 = arith.constant 0 : index
      %180 = vector.load %arg9[%c0_144, %c0_145, %c0_146] : memref<4x8x8xf32, #tpu.memory_space<vmem>>, vector<1x8x8xf32>
      %181 = vector.shape_cast %180 : vector<1x8x8xf32> to vector<8x8xf32>
      %c0_147 = arith.constant 0 : index
      %c0_148 = arith.constant 0 : index
      %c0_149 = arith.constant 0 : index
      %182 = vector.load %arg8[%c0_147, %c0_148, %c0_149] : memref<4x8x1xf32, #tpu.memory_space<vmem>>, vector<1x8x1xf32>
      %183 = vector.shape_cast %182 : vector<1x8x1xf32> to vector<8x1xf32>
      %184 = tpu.reciprocal %183 {approx = true} : vector<8x1xf32> -> vector<8x1xf32>
      %185 = vector.broadcast %184 : vector<8x1xf32> to vector<8x8xf32>
      %186 = arith.mulf %181, %185 : vector<8x8xf32>
      %c1_150 = arith.constant 1 : index
      %c0_151 = arith.constant 0 : index
      %c0_152 = arith.constant 0 : index
      %187 = vector.load %arg9[%c1_150, %c0_151, %c0_152] : memref<4x8x8xf32, #tpu.memory_space<vmem>>, vector<1x8x8xf32>
      %188 = vector.shape_cast %187 : vector<1x8x8xf32> to vector<8x8xf32>
      %c1_153 = arith.constant 1 : index
      %c0_154 = arith.constant 0 : index
      %c0_155 = arith.constant 0 : index
      %189 = vector.load %arg8[%c1_153, %c0_154, %c0_155] : memref<4x8x1xf32, #tpu.memory_space<vmem>>, vector<1x8x1xf32>
      %190 = vector.shape_cast %189 : vector<1x8x1xf32> to vector<8x1xf32>
      %191 = tpu.reciprocal %190 {approx = true} : vector<8x1xf32> -> vector<8x1xf32>
      %192 = vector.broadcast %191 : vector<8x1xf32> to vector<8x8xf32>
      %193 = arith.mulf %188, %192 : vector<8x8xf32>
      %c2_156 = arith.constant 2 : index
      %c0_157 = arith.constant 0 : index
      %c0_158 = arith.constant 0 : index
      %194 = vector.load %arg9[%c2_156, %c0_157, %c0_158] : memref<4x8x8xf32, #tpu.memory_space<vmem>>, vector<1x8x8xf32>
      %195 = vector.shape_cast %194 : vector<1x8x8xf32> to vector<8x8xf32>
      %c2_159 = arith.constant 2 : index
      %c0_160 = arith.constant 0 : index
      %c0_161 = arith.constant 0 : index
      %196 = vector.load %arg8[%c2_159, %c0_160, %c0_161] : memref<4x8x1xf32, #tpu.memory_space<vmem>>, vector<1x8x1xf32>
      %197 = vector.shape_cast %196 : vector<1x8x1xf32> to vector<8x1xf32>
      %198 = tpu.reciprocal %197 {approx = true} : vector<8x1xf32> -> vector<8x1xf32>
      %199 = vector.broadcast %198 : vector<8x1xf32> to vector<8x8xf32>
      %200 = arith.mulf %195, %199 : vector<8x8xf32>
      %c3_162 = arith.constant 3 : index
      %c0_163 = arith.constant 0 : index
      %c0_164 = arith.constant 0 : index
      %201 = vector.load %arg9[%c3_162, %c0_163, %c0_164] : memref<4x8x8xf32, #tpu.memory_space<vmem>>, vector<1x8x8xf32>
      %202 = vector.shape_cast %201 : vector<1x8x8xf32> to vector<8x8xf32>
      %c3_165 = arith.constant 3 : index
      %c0_166 = arith.constant 0 : index
      %c0_167 = arith.constant 0 : index
      %203 = vector.load %arg8[%c3_165, %c0_166, %c0_167] : memref<4x8x1xf32, #tpu.memory_space<vmem>>, vector<1x8x1xf32>
      %204 = vector.shape_cast %203 : vector<1x8x1xf32> to vector<8x1xf32>
      %205 = tpu.reciprocal %204 {approx = true} : vector<8x1xf32> -> vector<8x1xf32>
      %206 = vector.broadcast %205 : vector<8x1xf32> to vector<8x8xf32>
      %207 = arith.mulf %202, %206 : vector<8x8xf32>
      %208 = tpu.concatenate %186, %193, %200, %207 in 1 : vector<8x8xf32>, vector<8x8xf32>, vector<8x8xf32>, vector<8x8xf32> -> vector<8x32xf32>
      %209 = arith.truncf %208 : vector<8x32xf32> to vector<8x32xbf16>
      %c0_168 = arith.constant 0 : index
      %c0_169 = arith.constant 0 : index
      %c0_170 = arith.constant 0 : index
      %210 = vector.load %arg6[%c0_168, %c0_169, %c0_170] : memref<1x8x32xbf16, #tpu.memory_space<vmem>>, vector<1x8x32xbf16>
      %211 = vector.shape_cast %210 : vector<1x8x32xbf16> to vector<8x32xbf16>
      %212 = vector.shape_cast %209 : vector<8x32xbf16> to vector<1x8x32xbf16>
      tpu.vector_store %arg6[%c0_168, %c0_169, %c0_170], %212 {strides = array<i32>} : memref<1x8x32xbf16, #tpu.memory_space<vmem>>, vector<1x8x32xbf16>,
    } else {
    }
    return
  }
  func.func @transform_0(%arg0: i32, %arg1: i32) -> (i32, i32, i32, i32) {
    %c0_i32 = arith.constant 0 : i32
    %c0_i32_0 = arith.constant 0 : i32
    %c0_i32_1 = arith.constant 0 : i32
    %c0_i32_2 = arith.constant 0 : i32
    return %c0_i32, %arg0, %c0_i32_0, %c0_i32_1 : i32, i32, i32, i32
  }
  func.func @transform_1(%arg0: i32, %arg1: i32) -> (i32, i32, i32, i32) {
    %c0_i32 = arith.constant 0 : i32
    %c0_i32_0 = arith.constant 0 : i32
    %c0_i32_1 = arith.constant 0 : i32
    return %c0_i32, %arg0, %arg1, %c0_i32_0 : i32, i32, i32, i32
  }
  func.func @transform_2(%arg0: i32, %arg1: i32) -> (i32, i32, i32, i32) {
    %c0_i32 = arith.constant 0 : i32
    %c0_i32_0 = arith.constant 0 : i32
    %c0_i32_1 = arith.constant 0 : i32
    return %c0_i32, %arg0, %arg1, %c0_i32_0 : i32, i32, i32, i32
  }
  func.func @transform_3(%arg0: i32, %arg1: i32) -> (i32, i32, i32, i32) {
    %c0_i32 = arith.constant 0 : i32
    %c0_i32_0 = arith.constant 0 : i32
    %c0_i32_1 = arith.constant 0 : i32
    return %arg0, %c0_i32, %c0_i32_0, %arg1 : i32, i32, i32, i32
  }
  func.func @transform_4(%arg0: i32, %arg1: i32) -> (i32, i32, i32) {
    %c0_i32 = arith.constant 0 : i32
    %c0_i32_0 = arith.constant 0 : i32
    %c0_i32_1 = arith.constant 0 : i32
    return %arg0, %c0_i32, %c0_i32_0 : i32, i32, i32
  }
}

module attributes {stable_mosaic.version = 11 : i64} {
  func.func @_output_block_kernel(%arg0: i32, %arg1: memref<16x32xbf16, #tpu.memory_space<vmem>>, %arg2: memref<16x32xf32, #tpu.memory_space<vmem>>, %arg3: memref<32x32xbf16, #tpu.memory_space<vmem>>, %arg4: memref<1x32xf32, #tpu.memory_space<vmem>>, %arg5: memref<1x32xf32, #tpu.memory_space<vmem>>, %arg6: memref<1x32xf32, #tpu.memory_space<vmem>>, %arg7: memref<32x64xbf16, #tpu.memory_space<vmem>>, %arg8: memref<1x64xf32, #tpu.memory_space<vmem>>, %arg9: memref<64x32xbf16, #tpu.memory_space<vmem>>, %arg10: memref<1x32xf32, #tpu.memory_space<vmem>>, %arg11: memref<1x32xf32, #tpu.memory_space<vmem>>, %arg12: memref<1x32xf32, #tpu.memory_space<vmem>>, %arg13: memref<16x32xf32, #tpu.memory_space<vmem>>) attributes {dimension_semantics = [#tpu.dimension_semantics<parallel>], iteration_bounds = array<i64: 1>, scalar_prefetch = 0 : i64, scratch_operands = 0 : i64, tpu.core_type = #tpu.core_type<tc>, window_params = [{transform_indices = @transform_0, window_bounds = array<i64: 16, 32>}, {transform_indices = @transform_1, window_bounds = array<i64: 16, 32>}, {pipeline_mode = #tpu.pipeline_mode<synchronous>, transform_indices = @transform_2, window_bounds = array<i64: 32, 32>}, {pipeline_mode = #tpu.pipeline_mode<synchronous>, transform_indices = @transform_3, window_bounds = array<i64: 1, 32>}, {pipeline_mode = #tpu.pipeline_mode<synchronous>, transform_indices = @transform_4, window_bounds = array<i64: 1, 32>}, {pipeline_mode = #tpu.pipeline_mode<synchronous>, transform_indices = @transform_5, window_bounds = array<i64: 1, 32>}, {pipeline_mode = #tpu.pipeline_mode<synchronous>, transform_indices = @transform_6, window_bounds = array<i64: 32, 64>}, {pipeline_mode = #tpu.pipeline_mode<synchronous>, transform_indices = @transform_7, window_bounds = array<i64: 1, 64>}, {pipeline_mode = #tpu.pipeline_mode<synchronous>, transform_indices = @transform_8, window_bounds = array<i64: 64, 32>}, {pipeline_mode = #tpu.pipeline_mode<synchronous>, transform_indices = @transform_9, window_bounds = array<i64: 1, 32>}, {pipeline_mode = #tpu.pipeline_mode<synchronous>, transform_indices = @transform_10, window_bounds = array<i64: 1, 32>}, {pipeline_mode = #tpu.pipeline_mode<synchronous>, transform_indices = @transform_11, window_bounds = array<i64: 1, 32>}, {transform_indices = @transform_12, window_bounds = array<i64: 16, 32>}]} {
    %c0 = arith.constant 0 : index
    %c0_0 = arith.constant 0 : index
    %0 = vector.load %arg1[%c0, %c0_0] : memref<16x32xbf16, #tpu.memory_space<vmem>>, vector<16x32xbf16>
    %c0_1 = arith.constant 0 : index
    %c0_2 = arith.constant 0 : index
    %1 = vector.load %arg3[%c0_1, %c0_2] : memref<32x32xbf16, #tpu.memory_space<vmem>>, vector<32x32xbf16>
    %cst = arith.constant dense<0.000000e+00> : vector<16x32xf32>
    %2 = tpu.matmul %0, %1, %cst {dimension_numbers = #tpu.dot_dimension_numbers<[1], [0], [0], [1], [0, 0, 1, 1], [], []>} : vector<16x32xbf16>, vector<32x32xbf16>, vector<16x32xf32> -> vector<16x32xf32>
    %c0_3 = arith.constant 0 : index
    %c0_4 = arith.constant 0 : index
    %3 = vector.load %arg4[%c0_3, %c0_4] : memref<1x32xf32, #tpu.memory_space<vmem>>, vector<1x32xf32>
    %4 = vector.broadcast %3 : vector<1x32xf32> to vector<16x32xf32>
    %5 = arith.addf %2, %4 : vector<16x32xf32>
    %c0_5 = arith.constant 0 : index
    %c0_6 = arith.constant 0 : index
    %6 = vector.load %arg2[%c0_5, %c0_6] : memref<16x32xf32, #tpu.memory_space<vmem>>, vector<16x32xf32>
    %7 = arith.addf %5, %6 : vector<16x32xf32>
    %c0_7 = arith.constant 0 : index
    %c0_8 = arith.constant 0 : index
    %8 = vector.load %arg5[%c0_7, %c0_8] : memref<1x32xf32, #tpu.memory_space<vmem>>, vector<1x32xf32>
    %c0_9 = arith.constant 0 : index
    %c0_10 = arith.constant 0 : index
    %9 = vector.load %arg6[%c0_9, %c0_10] : memref<1x32xf32, #tpu.memory_space<vmem>>, vector<1x32xf32>
    %cst_11 = arith.constant dense<0.000000e+00> : vector<16xf32>
    %10 = vector.multi_reduction <add>, %7, %cst_11 [1] : vector<16x32xf32> to vector<16xf32>
    %11 = vector.shape_cast %10 : vector<16xf32> to vector<16x1xf32>
    %cst_12 = arith.constant 3.200000e+01 : f32
    %12 = vector.broadcast %cst_12 : f32 to vector<16x1xf32>
    %13 = arith.divf %11, %12 : vector<16x1xf32>
    %14 = vector.broadcast %13 : vector<16x1xf32> to vector<16x32xf32>
    %15 = arith.subf %7, %14 : vector<16x32xf32>
    %16 = arith.mulf %15, %15 : vector<16x32xf32>
    %cst_13 = arith.constant dense<0.000000e+00> : vector<16xf32>
    %17 = vector.multi_reduction <add>, %16, %cst_13 [1] : vector<16x32xf32> to vector<16xf32>
    %18 = vector.shape_cast %17 : vector<16xf32> to vector<16x1xf32>
    %cst_14 = arith.constant 3.200000e+01 : f32
    %19 = vector.broadcast %cst_14 : f32 to vector<16x1xf32>
    %20 = arith.divf %18, %19 : vector<16x1xf32>
    %21 = vector.broadcast %13 : vector<16x1xf32> to vector<16x32xf32>
    %22 = arith.subf %7, %21 : vector<16x32xf32>
    %cst_15 = arith.constant 9.99999996E-13 : f32
    %23 = vector.broadcast %cst_15 : f32 to vector<16x1xf32>
    %24 = arith.addf %20, %23 : vector<16x1xf32>
    %25 = math.rsqrt %24 : vector<16x1xf32>
    %26 = vector.broadcast %25 : vector<16x1xf32> to vector<16x32xf32>
    %27 = arith.mulf %22, %26 : vector<16x32xf32>
    %28 = vector.broadcast %8 : vector<1x32xf32> to vector<16x32xf32>
    %29 = arith.mulf %27, %28 : vector<16x32xf32>
    %30 = vector.broadcast %9 : vector<1x32xf32> to vector<16x32xf32>
    %31 = arith.addf %29, %30 : vector<16x32xf32>
    %32 = arith.truncf %31 : vector<16x32xf32> to vector<16x32xbf16>
    %c0_16 = arith.constant 0 : index
    %c0_17 = arith.constant 0 : index
    %33 = vector.load %arg7[%c0_16, %c0_17] : memref<32x64xbf16, #tpu.memory_space<vmem>>, vector<32x64xbf16>
    %cst_18 = arith.constant dense<0.000000e+00> : vector<16x64xf32>
    %34 = tpu.matmul %32, %33, %cst_18 {dimension_numbers = #tpu.dot_dimension_numbers<[1], [0], [0], [1], [0, 0, 1, 1], [], []>} : vector<16x32xbf16>, vector<32x64xbf16>, vector<16x64xf32> -> vector<16x64xf32>
    %c0_19 = arith.constant 0 : index
    %c0_20 = arith.constant 0 : index
    %35 = vector.load %arg8[%c0_19, %c0_20] : memref<1x64xf32, #tpu.memory_space<vmem>>, vector<1x64xf32>
    %36 = vector.broadcast %35 : vector<1x64xf32> to vector<16x64xf32>
    %37 = arith.addf %34, %36 : vector<16x64xf32>
    %cst_21 = arith.constant 5.000000e-01 : f32
    %38 = vector.broadcast %cst_21 : f32 to vector<16x64xf32>
    %39 = arith.mulf %38, %37 : vector<16x64xf32>
    %cst_22 = arith.constant 0.707106769 : f32
    %40 = vector.broadcast %cst_22 : f32 to vector<16x64xf32>
    %41 = arith.mulf %37, %40 : vector<16x64xf32>
    %42 = math.absf %41 : vector<16x64xf32>
    %cst_23 = arith.constant 0.327591091 : f32
    %43 = vector.broadcast %cst_23 : f32 to vector<16x64xf32>
    %44 = arith.mulf %43, %42 : vector<16x64xf32>
    %cst_24 = arith.constant 1.000000e+00 : f32
    %45 = vector.broadcast %cst_24 : f32 to vector<16x64xf32>
    %46 = arith.addf %45, %44 : vector<16x64xf32>
    %cst_25 = arith.constant 1.000000e+00 : f32
    %47 = vector.broadcast %cst_25 : f32 to vector<16x64xf32>
    %48 = arith.divf %47, %46 : vector<16x64xf32>
    %cst_26 = arith.constant 1.06140542 : f32
    %49 = vector.broadcast %cst_26 : f32 to vector<16x64xf32>
    %50 = arith.mulf %49, %48 : vector<16x64xf32>
    %cst_27 = arith.constant -1.45315206 : f32
    %51 = vector.broadcast %cst_27 : f32 to vector<16x64xf32>
    %52 = arith.addf %50, %51 : vector<16x64xf32>
    %53 = arith.mulf %52, %48 : vector<16x64xf32>
    %cst_28 = arith.constant 1.42141378 : f32
    %54 = vector.broadcast %cst_28 : f32 to vector<16x64xf32>
    %55 = arith.addf %53, %54 : vector<16x64xf32>
    %56 = arith.mulf %55, %48 : vector<16x64xf32>
    %cst_29 = arith.constant -0.284496725 : f32
    %57 = vector.broadcast %cst_29 : f32 to vector<16x64xf32>
    %58 = arith.addf %56, %57 : vector<16x64xf32>
    %59 = arith.mulf %58, %48 : vector<16x64xf32>
    %cst_30 = arith.constant 0.254829586 : f32
    %60 = vector.broadcast %cst_30 : f32 to vector<16x64xf32>
    %61 = arith.addf %59, %60 : vector<16x64xf32>
    %62 = arith.mulf %61, %48 : vector<16x64xf32>
    %cst_31 = arith.constant 0.000000e+00 : f32
    %63 = vector.broadcast %cst_31 : f32 to vector<16x64xf32>
    %64 = arith.subf %63, %42 : vector<16x64xf32>
    %65 = arith.mulf %64, %42 : vector<16x64xf32>
    %66 = math.exp %65 : vector<16x64xf32>
    %67 = arith.mulf %62, %66 : vector<16x64xf32>
    %cst_32 = arith.constant 1.000000e+00 : f32
    %68 = vector.broadcast %cst_32 : f32 to vector<16x64xf32>
    %69 = arith.subf %68, %67 : vector<16x64xf32>
    %cst_33 = arith.constant 0.000000e+00 : f32
    %70 = vector.broadcast %cst_33 : f32 to vector<16x64xf32>
    %71 = arith.cmpf oge, %41, %70 : vector<16x64xf32>
    %cst_34 = arith.constant 0.000000e+00 : f32
    %72 = vector.broadcast %cst_34 : f32 to vector<16x64xf32>
    %73 = arith.subf %72, %69 : vector<16x64xf32>
    %74 = arith.select %71, %69, %73 : vector<16x64xi1>, vector<16x64xf32>
    %cst_35 = arith.constant 1.000000e+00 : f32
    %75 = vector.broadcast %cst_35 : f32 to vector<16x64xf32>
    %76 = arith.addf %75, %74 : vector<16x64xf32>
    %77 = arith.mulf %39, %76 : vector<16x64xf32>
    %78 = arith.truncf %77 : vector<16x64xf32> to vector<16x64xbf16>
    %c0_36 = arith.constant 0 : index
    %c0_37 = arith.constant 0 : index
    %79 = vector.load %arg9[%c0_36, %c0_37] : memref<64x32xbf16, #tpu.memory_space<vmem>>, vector<64x32xbf16>
    %cst_38 = arith.constant dense<0.000000e+00> : vector<16x32xf32>
    %80 = tpu.matmul %78, %79, %cst_38 {dimension_numbers = #tpu.dot_dimension_numbers<[1], [0], [0], [1], [0, 0, 1, 1], [], []>} : vector<16x64xbf16>, vector<64x32xbf16>, vector<16x32xf32> -> vector<16x32xf32>
    %c0_39 = arith.constant 0 : index
    %c0_40 = arith.constant 0 : index
    %81 = vector.load %arg10[%c0_39, %c0_40] : memref<1x32xf32, #tpu.memory_space<vmem>>, vector<1x32xf32>
    %82 = vector.broadcast %81 : vector<1x32xf32> to vector<16x32xf32>
    %83 = arith.addf %80, %82 : vector<16x32xf32>
    %84 = arith.addf %83, %31 : vector<16x32xf32>
    %c0_41 = arith.constant 0 : index
    %c0_42 = arith.constant 0 : index
    %85 = vector.load %arg11[%c0_41, %c0_42] : memref<1x32xf32, #tpu.memory_space<vmem>>, vector<1x32xf32>
    %c0_43 = arith.constant 0 : index
    %c0_44 = arith.constant 0 : index
    %86 = vector.load %arg12[%c0_43, %c0_44] : memref<1x32xf32, #tpu.memory_space<vmem>>, vector<1x32xf32>
    %cst_45 = arith.constant dense<0.000000e+00> : vector<16xf32>
    %87 = vector.multi_reduction <add>, %84, %cst_45 [1] : vector<16x32xf32> to vector<16xf32>
    %88 = vector.shape_cast %87 : vector<16xf32> to vector<16x1xf32>
    %cst_46 = arith.constant 3.200000e+01 : f32
    %89 = vector.broadcast %cst_46 : f32 to vector<16x1xf32>
    %90 = arith.divf %88, %89 : vector<16x1xf32>
    %91 = vector.broadcast %90 : vector<16x1xf32> to vector<16x32xf32>
    %92 = arith.subf %84, %91 : vector<16x32xf32>
    %93 = arith.mulf %92, %92 : vector<16x32xf32>
    %cst_47 = arith.constant dense<0.000000e+00> : vector<16xf32>
    %94 = vector.multi_reduction <add>, %93, %cst_47 [1] : vector<16x32xf32> to vector<16xf32>
    %95 = vector.shape_cast %94 : vector<16xf32> to vector<16x1xf32>
    %cst_48 = arith.constant 3.200000e+01 : f32
    %96 = vector.broadcast %cst_48 : f32 to vector<16x1xf32>
    %97 = arith.divf %95, %96 : vector<16x1xf32>
    %98 = vector.broadcast %90 : vector<16x1xf32> to vector<16x32xf32>
    %99 = arith.subf %84, %98 : vector<16x32xf32>
    %cst_49 = arith.constant 9.99999996E-13 : f32
    %100 = vector.broadcast %cst_49 : f32 to vector<16x1xf32>
    %101 = arith.addf %97, %100 : vector<16x1xf32>
    %102 = math.rsqrt %101 : vector<16x1xf32>
    %103 = vector.broadcast %102 : vector<16x1xf32> to vector<16x32xf32>
    %104 = arith.mulf %99, %103 : vector<16x32xf32>
    %105 = vector.broadcast %85 : vector<1x32xf32> to vector<16x32xf32>
    %106 = arith.mulf %104, %105 : vector<16x32xf32>
    %107 = vector.broadcast %86 : vector<1x32xf32> to vector<16x32xf32>
    %108 = arith.addf %106, %107 : vector<16x32xf32>
    %c0_50 = arith.constant 0 : index
    %c0_51 = arith.constant 0 : index
    %109 = vector.load %arg13[%c0_50, %c0_51] : memref<16x32xf32, #tpu.memory_space<vmem>>, vector<16x32xf32>
    tpu.vector_store %arg13[%c0_50, %c0_51], %108 {strides = array<i32>} : memref<16x32xf32, #tpu.memory_space<vmem>>, vector<16x32xf32>,
    return
  }
  func.func @transform_0(%arg0: i32) -> (i32, i32) {
    %c0_i32 = arith.constant 0 : i32
    %c0_i32_0 = arith.constant 0 : i32
    return %arg0, %c0_i32 : i32, i32
  }
  func.func @transform_1(%arg0: i32) -> (i32, i32) {
    %c0_i32 = arith.constant 0 : i32
    %c0_i32_0 = arith.constant 0 : i32
    return %arg0, %c0_i32 : i32, i32
  }
  func.func @transform_2(%arg0: i32) -> (i32, i32) {
    %c0_i32 = arith.constant 0 : i32
    %c0_i32_0 = arith.constant 0 : i32
    %c0_i32_1 = arith.constant 0 : i32
    return %c0_i32, %c0_i32_0 : i32, i32
  }
  func.func @transform_3(%arg0: i32) -> (i32, i32) {
    %c0_i32 = arith.constant 0 : i32
    %c0_i32_0 = arith.constant 0 : i32
    %c0_i32_1 = arith.constant 0 : i32
    return %c0_i32, %c0_i32_0 : i32, i32
  }
  func.func @transform_4(%arg0: i32) -> (i32, i32) {
    %c0_i32 = arith.constant 0 : i32
    %c0_i32_0 = arith.constant 0 : i32
    %c0_i32_1 = arith.constant 0 : i32
    return %c0_i32, %c0_i32_0 : i32, i32
  }
  func.func @transform_5(%arg0: i32) -> (i32, i32) {
    %c0_i32 = arith.constant 0 : i32
    %c0_i32_0 = arith.constant 0 : i32
    %c0_i32_1 = arith.constant 0 : i32
    return %c0_i32, %c0_i32_0 : i32, i32
  }
  func.func @transform_6(%arg0: i32) -> (i32, i32) {
    %c0_i32 = arith.constant 0 : i32
    %c0_i32_0 = arith.constant 0 : i32
    %c0_i32_1 = arith.constant 0 : i32
    return %c0_i32, %c0_i32_0 : i32, i32
  }
  func.func @transform_7(%arg0: i32) -> (i32, i32) {
    %c0_i32 = arith.constant 0 : i32
    %c0_i32_0 = arith.constant 0 : i32
    %c0_i32_1 = arith.constant 0 : i32
    return %c0_i32, %c0_i32_0 : i32, i32
  }
  func.func @transform_8(%arg0: i32) -> (i32, i32) {
    %c0_i32 = arith.constant 0 : i32
    %c0_i32_0 = arith.constant 0 : i32
    %c0_i32_1 = arith.constant 0 : i32
    return %c0_i32, %c0_i32_0 : i32, i32
  }
  func.func @transform_9(%arg0: i32) -> (i32, i32) {
    %c0_i32 = arith.constant 0 : i32
    %c0_i32_0 = arith.constant 0 : i32
    %c0_i32_1 = arith.constant 0 : i32
    return %c0_i32, %c0_i32_0 : i32, i32
  }
  func.func @transform_10(%arg0: i32) -> (i32, i32) {
    %c0_i32 = arith.constant 0 : i32
    %c0_i32_0 = arith.constant 0 : i32
    %c0_i32_1 = arith.constant 0 : i32
    return %c0_i32, %c0_i32_0 : i32, i32
  }
  func.func @transform_11(%arg0: i32) -> (i32, i32) {
    %c0_i32 = arith.constant 0 : i32
    %c0_i32_0 = arith.constant 0 : i32
    %c0_i32_1 = arith.constant 0 : i32
    return %c0_i32, %c0_i32_0 : i32, i32
  }
  func.func @transform_12(%arg0: i32) -> (i32, i32) {
    %c0_i32 = arith.constant 0 : i32
    %c0_i32_0 = arith.constant 0 : i32
    return %arg0, %c0_i32 : i32, i32
  }
}

</mosaic_0001>

<bundles_post_ra>
// kernel: struct_self_attention_forward.8
= control target key start
LH: loop header
LB: loop body
LE: loop exit
PB: predicated region body
PF: predicated region fallthrough
CT: control target
= control target key end

     0   :  { %v237_v0 = vmov 0.0   ;;  %vm238_vm0 = vmmov 0   ;;  %vm44_vm1 = vcmask 261120   ;;  %vm97_vm2 = vcmask 60416   ;;  %s241_s6 = smov 96   ;;  %s242_s7 = smov 112   ;;  %s373_s1 = inlined_call_operand.vmem [shape: bf16[32,80], index: 1, kind: input, shape index: {}]   ;;  %s374_s0 = inlined_call_operand.vmem [shape: f32[16,32], index: 0, kind: input, shape index: {}]   ;;  %s375_s2 = inlined_call_operand.vmem [shape: f32[1,80], index: 2, kind: input, shape index: {}]   ;;  %s376_s3 = inlined_call_operand.vmem [shape: bf16[3,16,8], index: 3, kind: output, shape index: {0}]   ;;  %s377_s4 = inlined_call_operand.vmem [shape: bf16[3,16,8], index: 4, kind: output, shape index: {1}]   ;;  %s378_s5 = inlined_call_operand.vmem [shape: bf16[4,16,8], index: 5, kind: output, shape index: {2}]  }
   0x1   :  { %216 = vmatprep.subr.bf16.mxu0 %v237_v0  ;;  %v235_v1 = vld [vmem:[%s373_s1] sm:$0xff]   ;;  %220 = vmatprep.mubr.msk.bf16.mxu0 %vm238_vm0, %v237_v0  ;;  %v236_v2 = vld [vmem:[%s373_s1 + $0x8] sm:$0xff]   ;;  %s239_s1 = smov 120   ;;  %s243_s8 = smov 88  }
   0x2   :  { %217 = vmatpush3.bf16.msra.mxu0 %v235_v1  ;;  %v18_v3 = vld [vmem:[%s374_s0] sm:$0xff]  ;;  %v19_v4 = vld [vmem:[%s374_s0 + $0x8] sm:$0xff]  ;;  %s240_s0 = smov 104   ;;  %s244_s9 = smov 80  }
   0x3   :  { %218 = vmatprep.subr.bf16.mxu0 %v237_v0  ;;  %v20_v5 = vpack.c.bf16 %v19_v4, %v18_v3  ;;  %v191_v6 = vld [vmem:[%s375_s2] ss:$0 sm:$0xff]  ;;  %s245_s10 = smov 72   ;;  %s246_s11 = smov 64  }
   0x4   :  { %s247_s12 = smov 56  }
   0x6   :  { %219 = vmatpush3.bf16.msra.mxu0 %v236_v2 }
   0x9   :  { %221 = vmatmul.mubr.msk.bf16.vlgmr.msra.gmra.mrb[0].mxu0 %vm44_vm1, %v20_v5 }
  0xdc   :  { %v82_v7 = vpop.f32.mrb[0].mxu0 }
  0xdd   :  { %v83_v8 = vadd.f32 %v191_v6, %v82_v7  ;;  %v222_v9 = vpop.f32.mrb[1].mxu0 }
  0xde   :  { %v85_v10 = vpop.f32.mrb[2].mxu0 }
  0xdf   :  { %v211_v11 = vpack.c.bf16 %v83_v8, %v83_v8  ;;  %v86_v12 = vadd.f32 %v191_v6, %v85_v10  ;;  %v223_v13 = vpop.f32.mrb[3].mxu0 }
  0xe1   :  { %v212_v14 = vpack.c.bf16 %v86_v12, %v86_v12  ;;  %108 = vrot.lane.b32.xlu1 %v211_v11, %s239_s1  ;;  %100 = vrot.lane.b32.xlu0 %v211_v11, %s240_s0  ;;  %98 = vst.msk [vmem:[%s376_s3] sm:$0xf] %vm97_vm2, %v211_v11 }
  0xe3   :  { %99 = vst.msk [vmem:[%s376_s3 + $0x4] sm:$0xf] %vm97_vm2, %v212_v14 }
  0xe5   :  { %117 = vrot.lane.b32.xlu0 %v211_v11, %s241_s6  ;;  %110 = vrot.lane.b32.xlu1 %v212_v14, %s239_s1 }
  0xe9   :  { %126 = vrot.lane.b32.xlu0 %v211_v11, %s242_s7  ;;  %119 = vrot.lane.b32.xlu1 %v212_v14, %s241_s6 }
  0xed   :  { %135 = vrot.lane.b32.xlu0 %v211_v11, %s243_s8  ;;  %128 = vrot.lane.b32.xlu1 %v212_v14, %s242_s7 }
  0xf1   :  { %144 = vrot.lane.b32.xlu0 %v211_v11, %s244_s9  ;;  %137 = vrot.lane.b32.xlu1 %v212_v14, %s243_s8 }
  0xf5   :  { %152 = vrot.lane.b32.xlu0 %v211_v11, %s245_s10  ;;  %146 = vrot.lane.b32.xlu1 %v212_v14, %s244_s9 }
  0xf9   :  { %161 = vrot.lane.b32.xlu0 %v211_v11, %s246_s11  ;;  %154 = vrot.lane.b32.xlu1 %v212_v14, %s245_s10 }
  0xfd   :  { %163 = vrot.lane.b32.xlu1 %v212_v14, %s246_s11  ;;  %102 = vrot.lane.b32.xlu0 %v212_v14, %s240_s0 }
 0x101   :  { %172 = vrot.lane.b32.xlu1 %v212_v14, %s247_s12  ;;  %170 = vrot.lane.b32.xlu0 %v211_v11, %s247_s12 }
 0x153   :  { %v109_v15 = vpop.permute.xlu1 %108  ;;  %v101_v16 = vpop.permute.xlu0 %100 }
 0x154   :  { %197 = vst.msk [vmem:[%s376_s3 + $0x8] sm:$0xf] %vm97_vm2, %v109_v15  ;;  %106 = vst.msk [vmem:[%s377_s4] sm:$0xf] %vm97_vm2, %v101_v16 }
 0x157   :  { %v118_v17 = vpop.permute.xlu0 %117  ;;  %v111_v18 = vpop.permute.xlu1 %110 }
 0x158   :  { %199 = vst.msk [vmem:[%s377_s4 + $0x8] sm:$0xf] %vm97_vm2, %v118_v17  ;;  %198 = vst.msk [vmem:[%s376_s3 + $0xc] sm:$0xf] %vm97_vm2, %v111_v18 }
 0x15b   :  { %v127_v19 = vpop.permute.xlu0 %126  ;;  %v120_v20 = vpop.permute.xlu1 %119 }
 0x15c   :  { %201 = vst.msk [vmem:[%s376_s3 + $0x10] sm:$0xf] %vm97_vm2, %v127_v19  ;;  %200 = vst.msk [vmem:[%s377_s4 + $0xc] sm:$0xf] %vm97_vm2, %v120_v20 }
 0x15f   :  { %v136_v21 = vpop.permute.xlu0 %135  ;;  %v129_v22 = vpop.permute.xlu1 %128 }
 0x160   :  { %203 = vst.msk [vmem:[%s377_s4 + $0x10] sm:$0xf] %vm97_vm2, %v136_v21  ;;  %202 = vst.msk [vmem:[%s376_s3 + $0x14] sm:$0xf] %vm97_vm2, %v129_v22 }
 0x163   :  { %v145_v23 = vpop.permute.xlu0 %144  ;;  %v138_v24 = vpop.permute.xlu1 %137 }
 0x164   :  { %150 = vst.msk [vmem:[%s378_s5] sm:$0xf] %vm97_vm2, %v145_v23  ;;  %204 = vst.msk [vmem:[%s377_s4 + $0x14] sm:$0xf] %vm97_vm2, %v138_v24 }
 0x167   :  { %v153_v25 = vpop.permute.xlu0 %152  ;;  %v147_v26 = vpop.permute.xlu1 %146 }
 0x168   :  { %205 = vst.msk [vmem:[%s378_s5 + $0x8] sm:$0xf] %vm97_vm2, %v153_v25  ;;  %151 = vst.msk [vmem:[%s378_s5 + $0x4] sm:$0xf] %vm97_vm2, %v147_v26 }
 0x16b   :  { %v162_v27 = vpop.permute.xlu0 %161  ;;  %v155_v28 = vpop.permute.xlu1 %154 }
 0x16c   :  { %207 = vst.msk [vmem:[%s378_s5 + $0x10] sm:$0xf] %vm97_vm2, %v162_v27  ;;  %206 = vst.msk [vmem:[%s378_s5 + $0xc] sm:$0xf] %vm97_vm2, %v155_v28 }
 0x16f   :  { %v164_v29 = vpop.permute.xlu1 %163  ;;  %v103_v30 = vpop.permute.xlu0 %102 }
 0x170   :  { %208 = vst.msk [vmem:[%s378_s5 + $0x14] sm:$0xf] %vm97_vm2, %v164_v29  ;;  %107 = vst.msk [vmem:[%s377_s4 + $0x4] sm:$0xf] %vm97_vm2, %v103_v30 }
 0x173   :  { %v173_v31 = vpop.permute.xlu1 %172  ;;  %v171_v32 = vpop.permute.xlu0 %170 }
 0x174   :  { %210 = vst.msk [vmem:[%s378_s5 + $0x1c] sm:$0xf] %vm97_vm2, %v173_v31  ;;  %209 = vst.msk [vmem:[%s378_s5 + $0x18] sm:$0xf] %vm97_vm2, %v171_v32 }

// kernel: struct_self_attention_forward.9
= control target key start
LH: loop header
LB: loop body
LE: loop exit
PB: predicated region body
PF: predicated region fallthrough
CT: control target
= control target key end

     0   :  { %vm41_vm0 = vcmask 261120   ;;  %v210_v23 = vmov 0.0   ;;  %vm211_vm1 = vmmov 0   ;;  %vm161_vm2 = vcmask 60416   ;;  %s212_s23 = smov 120   ;;  %s308_s0 = inlined_call_operand.vmem [shape: f32[16,32], index: 0, kind: input, shape index: {}]   ;;  %s309_s1 = inlined_call_operand.vmem [shape: f32[16,32], index: 1, kind: input, shape index: {}]   ;;  %s310_s2 = inlined_call_operand.vmem [shape: f32[16,32], index: 2, kind: input, shape index: {}]   ;;  %s311_s5 = inlined_call_operand.vmem [shape: bf16[32,16], index: 5, kind: input, shape index: {}]   ;;  %s312_s3 = inlined_call_operand.vmem [shape: f32[1,32], index: 3, kind: input, shape index: {}]   ;;  %s313_s4 = inlined_call_operand.vmem [shape: f32[1,32], index: 4, kind: input, shape index: {}]   ;;  %s314_s6 = inlined_call_operand.vmem [shape: f32[1,16], index: 6, kind: input, shape index: {}]   ;;  %s315_s7 = inlined_call_operand.vmem [shape: bf16[16,8], index: 7, kind: output, shape index: {0}]   ;;  %s316_s8 = inlined_call_operand.vmem [shape: bf16[16,8], index: 8, kind: output, shape index: {1}]  }
   0x1   :  { %v29_v0 = vld [vmem:[%s308_s0] sm:$0xff]  ;;  %v30_v4 = vld [vmem:[%s308_s0 + $0x8] sm:$0xff]  ;;  %193 = vmatprep.subr.bf16.mxu0 %v210_v23  ;;  %197 = vmatprep.mubr.msk.bf16.mxu0 %vm211_vm1, %v210_v23 }
   0x2   :  { %v31_v1 = vld [vmem:[%s309_s1] sm:$0xff]  ;;  %v32_v5 = vld [vmem:[%s309_s1 + $0x8] sm:$0xff] }
   0x3   :  { %v35_v2 = vld [vmem:[%s310_s2] sm:$0xff]  ;;  %v33_v3 = vadd.f32 %v31_v1, %v29_v0  ;;  %v36_v6 = vld [vmem:[%s310_s2 + $0x8] sm:$0xff]  ;;  %v34_v7 = vadd.f32 %v32_v5, %v30_v4 }
   0x4   :  { %v204_v22 = vld [vmem:[%s311_s5] sm:$0xff]   ;;  %v205_v24 = vld [vmem:[%s311_s5 + $0x8] sm:$0xff]  }
   0x5   :  { %v37_v8 = vadd.f32 %v35_v2, %v33_v3  ;;  %v38_v9 = vadd.f32 %v36_v6, %v34_v7  ;;  %194 = vmatpush3.bf16.msra.mxu0 %v204_v22  ;;  %v180_v33 = vld [vmem:[%s312_s3] ss:$0 sm:$0xff] }
   0x6   :  { %195 = vmatprep.subr.bf16.mxu0 %v210_v23  ;;  %v181_v37 = vld [vmem:[%s313_s4] ss:$0 sm:$0xff] }
   0x7   :  { %v42_v10 = vsel %vm41_vm0, %v37_v8, 0.0  ;;  %v45_v11 = vsel %vm41_vm0, %v38_v9, 0.0  ;;  %v182_v42 = vld [vmem:[%s314_s6] ss:$0 sm:$0xff] }
   0x8   :  { %43 = vadd.xlane.f32.xlu0 %v42_v10 }
   0x9   :  { %196 = vmatpush3.bf16.msra.mxu0 %v205_v24 }
   0xc   :  { %46 = vadd.xlane.f32.xlu0 %v45_v11 }
  0x95   :  { %v44_v12 = vpop.xlane.xlu0 %43 }
  0x96   :  { %v49_v13 = vmul.f32 0.03125, %v44_v12 }
  0x98   :  { %v51_v14 = vsub.f32 %v37_v8, %v49_v13 }
  0x99   :  { %v47_v15 = vpop.xlane.xlu0 %46 }
  0x9a   :  { %v50_v16 = vmul.f32 0.03125, %v47_v15  ;;  %v53_v17 = vmul.f32 %v51_v14, %v51_v14 }
  0x9c   :  { %v52_v18 = vsub.f32 %v38_v9, %v50_v16  ;;  %v55_v19 = vsel %vm41_vm0, %v53_v17, 0.0 }
  0x9d   :  { %56 = vadd.xlane.f32.xlu1 %v55_v19 }
  0x9e   :  { %v54_v20 = vmul.f32 %v52_v18, %v52_v18 }
  0xa0   :  { %v58_v21 = vsel %vm41_vm0, %v54_v20, 0.0 }
  0xa1   :  { %59 = vadd.xlane.f32.xlu1 %v58_v21 }
 0x12a   :  { %v57_v25 = vpop.xlane.xlu1 %56 }
 0x12b   :  { %v61_v26 = vmul.f32 0.03125, %v57_v25 }
 0x12d   :  { %v63_v27 = vadd.f32 1e-12, %v61_v26 }
 0x12e   :  { %v60_v28 = vpop.xlane.xlu1 %59 }
 0x12f   :  { %206 = vrsqrt.f32 %v63_v27  ;;  %v62_v29 = vmul.f32 0.03125, %v60_v28 }
 0x131   :  { %v64_v30 = vadd.f32 1e-12, %v62_v29 }
 0x133   :  { %208 = vrsqrt.f32 %v64_v30 }
 0x139   :  { %v207_v31 = vpop.eup %206 }
 0x13a   :  { %v67_v32 = vmul.f32 %v207_v31, %v51_v14 }
 0x13c   :  { %v75_v36 = vmul.f32 %v180_v33, %v67_v32 }
 0x13d   :  { %v209_v34 = vpop.eup %208 }
 0x13e   :  { %v68_v35 = vmul.f32 %v209_v34, %v52_v18  ;;  %v83_v39 = vadd.f32 %v181_v37, %v75_v36 }
 0x140   :  { %v76_v38 = vmul.f32 %v180_v33, %v68_v35 }
 0x142   :  { %v84_v40 = vadd.f32 %v181_v37, %v76_v38 }
 0x144   :  { %v85_v41 = vpack.c.bf16 %v84_v40, %v83_v39 }
 0x146   :  { %198 = vmatmul.mubr.msk.bf16.vlgmr.msra.gmra.mrb[0].mxu0 %vm41_vm0, %v85_v41 }
 0x219   :  { %v146_v43 = vpop.f32.mrb[0].mxu0 }
 0x21a   :  { %v147_v44 = vadd.f32 %v182_v42, %v146_v43  ;;  %v199_v45 = vpop.f32.mrb[1].mxu0 }
 0x21b   :  { %v149_v46 = vpop.f32.mrb[2].mxu0 }
 0x21c   :  { %v188_v47 = vpack.c.bf16 %v147_v44, %v147_v44  ;;  %v150_v48 = vadd.f32 %v182_v42, %v149_v46  ;;  %v200_v49 = vpop.f32.mrb[3].mxu0 }
 0x21e   :  { %162 = vst.msk [vmem:[%s315_s7] sm:$0xf] %vm161_vm2, %v188_v47  ;;  %v189_v50 = vpack.c.bf16 %v150_v48, %v150_v48  ;;  %164 = vrot.lane.b32.xlu0 %v188_v47, %s212_s23 }
 0x220   :  { %163 = vst.msk [vmem:[%s315_s7 + $0x4] sm:$0xf] %vm161_vm2, %v189_v50  ;;  %166 = vrot.lane.b32.xlu1 %v189_v50, %s212_s23 }
 0x290   :  { %v165_v51 = vpop.permute.xlu0 %164 }
 0x291   :  { %170 = vst.msk [vmem:[%s316_s8] sm:$0xf] %vm161_vm2, %v165_v51 }
 0x292   :  { %v167_v52 = vpop.permute.xlu1 %166 }
 0x293   :  { %171 = vst.msk [vmem:[%s316_s8 + $0x4] sm:$0xf] %vm161_vm2, %v167_v52 }

// kernel: struct_self_attention_forward.11
= control target key start
LH: loop header
LB: loop body
LE: loop exit
PB: predicated region body
PF: predicated region fallthrough
CT: control target
= control target key end

     0   :  { %v334_v0 = vmov 0.0   ;;  %vm335_vm0 = vmmov 0   ;;  %vm59_vm1 = vcmask 261120   ;;  %vm157_vm2 = vcmask 257024   ;;  %s337_s23 = smov 126   ;;  %s338_s25 = smov 122   ;;  %s455_s1 = inlined_call_operand.vmem [shape: bf16[32,32], index: 1, kind: input, shape index: {}]   ;;  %s456_s0 = inlined_call_operand.vmem [shape: bf16[16,32], index: 0, kind: input, shape index: {}]   ;;  %s457_s2 = inlined_call_operand.vmem [shape: f32[1,32], index: 2, kind: input, shape index: {}]   ;;  %s458_s5 = inlined_call_operand.vmem [shape: bf16[32,8], index: 5, kind: input, shape index: {}]   ;;  %s459_s3 = inlined_call_operand.vmem [shape: f32[1,32], index: 3, kind: input, shape index: {}]   ;;  %s460_s4 = inlined_call_operand.vmem [shape: f32[1,32], index: 4, kind: input, shape index: {}]   ;;  %s461_s7 = inlined_call_operand.vmem [shape: bf16[16,32], index: 7, kind: output, shape index: {0}]   ;;  %s462_s6 = inlined_call_operand.vmem [shape: f32[1,8], index: 6, kind: input, shape index: {}]   ;;  %s463_s8 = inlined_call_operand.vmem [shape: bf16[4,16,2], index: 8, kind: output, shape index: {1}]  }
   0x1   :  { %304 = vmatprep.subr.bf16.mxu0 %v334_v0  ;;  %v325_v1 = vld [vmem:[%s455_s1] sm:$0xff]   ;;  %308 = vmatprep.mubr.msk.bf16.mxu0 %vm335_vm0, %v334_v0  ;;  %v326_v2 = vld [vmem:[%s455_s1 + $0x8] sm:$0xff]   ;;  %vm235_vm3 = vcmask 11264  }
   0x2   :  { %312 = vmatprep.subr.bf16.mxu1 %v334_v0  ;;  %316 = vmatprep.mubr.msk.bf16.mxu1 %vm335_vm0, %v334_v0  ;;  %v327_v3 = vld [vmem:[%s456_s0] sm:$0xff]   ;;  %v329_v24 = vld [vmem:[%s458_s5 + $0x8] sm:$0xff]  }
   0x3   :  { %305 = vmatpush3.bf16.msra.mxu0 %v325_v1  ;;  %v273_v4 = vld [vmem:[%s457_s2] ss:$0 sm:$0xff] }
   0x4   :  { %306 = vmatprep.subr.bf16.mxu0 %v334_v0  ;;  %v328_v23 = vld [vmem:[%s458_s5] sm:$0xff]  }
   0x5   :  { %313 = vmatpush3.bf16.msra.mxu1 %v328_v23  ;;  %v278_v32 = vld [vmem:[%s459_s3] ss:$0 sm:$0xff] }
   0x6   :  { %314 = vmatprep.subr.bf16.mxu1 %v334_v0  ;;  %v279_v34 = vld [vmem:[%s460_s4] ss:$0 sm:$0xff] }
   0x7   :  { %307 = vmatpush3.bf16.msra.mxu0 %v326_v2  ;;  %v282_v44 = vld [vmem:[%s462_s6] ss:$0 sm:$0xff] }
   0x9   :  { %315 = vmatpush3.bf16.msra.mxu1 %v329_v24 }
   0xa   :  { %309 = vmatmul.mubr.msk.bf16.vlgmr.msra.gmra.mrb[0].mxu0 %vm59_vm1, %v327_v3 }
  0xdd   :  { %v97_v5 = vpop.f32.mrb[0].mxu0 }
  0xde   :  { %v98_v6 = vadd.f32 %v273_v4, %v97_v5  ;;  %v310_v7 = vpop.f32.mrb[1].mxu0 }
  0xdf   :  { %v100_v8 = vpop.f32.mrb[2].mxu0 }
  0xe0   :  { %v101_v9 = vadd.f32 %v273_v4, %v100_v8  ;;  %v311_v10 = vpop.f32.mrb[3].mxu0  ;;  %v106_v11 = vsel %vm59_vm1, %v98_v6, 0.0 }
  0xe1   :  { %107 = vadd.xlane.f32.xlu0 %v106_v11 }
  0xe2   :  { %v109_v12 = vsel %vm59_vm1, %v101_v9, 0.0 }
  0xe5   :  { %110 = vadd.xlane.f32.xlu0 %v109_v12 }
 0x16e   :  { %v108_v13 = vpop.xlane.xlu0 %107 }
 0x16f   :  { %v113_v14 = vmul.f32 0.03125, %v108_v13 }
 0x171   :  { %v115_v15 = vsub.f32 %v98_v6, %v113_v14 }
 0x172   :  { %v111_v16 = vpop.xlane.xlu0 %110 }
 0x173   :  { %v114_v17 = vmul.f32 0.03125, %v111_v16  ;;  %v117_v18 = vmul.f32 %v115_v15, %v115_v15 }
 0x175   :  { %v116_v19 = vsub.f32 %v101_v9, %v114_v17  ;;  %v119_v20 = vsel %vm59_vm1, %v117_v18, 0.0 }
 0x176   :  { %120 = vadd.xlane.f32.xlu1 %v119_v20 }
 0x177   :  { %v118_v21 = vmul.f32 %v116_v19, %v116_v19 }
 0x179   :  { %v122_v22 = vsel %vm59_vm1, %v118_v21, 0.0 }
 0x17a   :  { %123 = vadd.xlane.f32.xlu1 %v122_v22 }
 0x203   :  { %v121_v25 = vpop.xlane.xlu1 %120 }
 0x204   :  { %v125_v26 = vmul.f32 0.03125, %v121_v25 }
 0x206   :  { %v127_v27 = vadd.f32 1e-12, %v125_v26 }
 0x207   :  { %v124_v28 = vpop.xlane.xlu1 %123 }
 0x208   :  { %330 = vrsqrt.f32 %v127_v27  ;;  %v126_v29 = vmul.f32 0.03125, %v124_v28 }
 0x20a   :  { %v128_v30 = vadd.f32 1e-12, %v126_v29 }
 0x20c   :  { %332 = vrsqrt.f32 %v128_v30 }
 0x212   :  { %v331_v31 = vpop.eup %330 }
 0x213   :  { %v131_v33 = vmul.f32 %v331_v31, %v115_v15 }
 0x215   :  { %v139_v35 = vmul.f32 %v278_v32, %v131_v33 }
 0x216   :  { %v333_v36 = vpop.eup %332 }
 0x217   :  { %v132_v37 = vmul.f32 %v333_v36, %v116_v19  ;;  %v147_v38 = vadd.f32 %v279_v34, %v139_v35 }
 0x219   :  { %v140_v39 = vmul.f32 %v278_v32, %v132_v37  ;;  %v294_v40 = vpack.c.bf16 %v147_v38, %v147_v38 }
 0x21b   :  { %v148_v41 = vadd.f32 %v279_v34, %v140_v39  ;;  %158 = vst.msk [vmem:[%s461_s7] sm:$0xf] %vm157_vm2, %v294_v40 }
 0x21d   :  { %v149_v42 = vpack.c.bf16 %v148_v41, %v147_v38  ;;  %v295_v43 = vpack.c.bf16 %v148_v41, %v148_v41 }
 0x21f   :  { %159 = vst.msk [vmem:[%s461_s7 + $0x4] sm:$0xf] %vm157_vm2, %v295_v43  ;;  %317 = vmatmul.mubr.msk.bf16.vlgmr.msra.gmra.mrb[0].mxu1 %vm59_vm1, %v149_v42  ;;  %s336_s7 = smov 124  }
 0x2f2   :  { %v220_v45 = vpop.f32.mrb[0].mxu1 }
 0x2f3   :  { %v221_v46 = vadd.f32 %v282_v44, %v220_v45  ;;  %v318_v47 = vpop.f32.mrb[1].mxu1 }
 0x2f4   :  { %v223_v48 = vpop.f32.mrb[2].mxu1 }
 0x2f5   :  { %v296_v49 = vpack.c.bf16 %v221_v46, %v221_v46  ;;  %v224_v50 = vadd.f32 %v282_v44, %v223_v48  ;;  %v319_v51 = vpop.f32.mrb[3].mxu1 }
 0x2f7   :  { %236 = vst.msk [vmem:[%s463_s8] sm:$0xf] %vm235_vm3, %v296_v49  ;;  %v297_v52 = vpack.c.bf16 %v224_v50, %v224_v50  ;;  %247 = vrot.lane.b32.xlu1 %v296_v49, %s336_s7  ;;  %238 = vrot.lane.b32.xlu0 %v296_v49, %s337_s23 }
 0x2f9   :  { %237 = vst.msk [vmem:[%s463_s8 + $0x4] sm:$0xf] %vm235_vm3, %v297_v52 }
 0x2fb   :  { %256 = vrot.lane.b32.xlu0 %v296_v49, %s338_s25  ;;  %240 = vrot.lane.b32.xlu1 %v297_v52, %s337_s23 }
 0x2ff   :  { %249 = vrot.lane.b32.xlu1 %v297_v52, %s336_s7 }
 0x303   :  { %258 = vrot.lane.b32.xlu1 %v297_v52, %s338_s25 }
 0x369   :  { %v248_v53 = vpop.permute.xlu1 %247  ;;  %v239_v54 = vpop.permute.xlu0 %238 }
 0x36a   :  { %290 = vst.msk [vmem:[%s463_s8 + $0x10] sm:$0xf] %vm235_vm3, %v248_v53  ;;  %288 = vst.msk [vmem:[%s463_s8 + $0x8] sm:$0xf] %vm235_vm3, %v239_v54 }
 0x36d   :  { %v257_v55 = vpop.permute.xlu0 %256  ;;  %v241_v56 = vpop.permute.xlu1 %240 }
 0x36e   :  { %292 = vst.msk [vmem:[%s463_s8 + $0x18] sm:$0xf] %vm235_vm3, %v257_v55  ;;  %289 = vst.msk [vmem:[%s463_s8 + $0xc] sm:$0xf] %vm235_vm3, %v241_v56 }
 0x371   :  { %v250_v57 = vpop.permute.xlu1 %249 }
 0x372   :  { %291 = vst.msk [vmem:[%s463_s8 + $0x14] sm:$0xf] %vm235_vm3, %v250_v57 }
 0x375   :  { %v259_v58 = vpop.permute.xlu1 %258 }
 0x376   :  { %293 = vst.msk [vmem:[%s463_s8 + $0x1c] sm:$0xf] %vm235_vm3, %v259_v58 }

// kernel: struct_self_attention_forward.10
= control target key start
LH: loop header
LB: loop body
LE: loop exit
PB: predicated region body
PF: predicated region fallthrough
CT: control target
= control target key end

     0   :  { %s1827_s30 = smov 0   ;;  %s1829_s10 = smov 0   ;;  %s2082_s0 = inlined_call_operand.vmem [shape: bf16[3,2,8,8], index: 0, kind: input, shape index: {}]   ;;  %s2083_s1 = inlined_call_operand.vmem [shape: bf16[3,2,8,8], index: 1, kind: input, shape index: {}]   ;;  %s2084_s2 = inlined_call_operand.vmem [shape: bf16[4,2,8,8], index: 2, kind: input, shape index: {}]   ;;  %s2085_s3 = inlined_call_operand.vmem [shape: bf16[2,8,8], index: 3, kind: input, shape index: {}]   ;;  %s2086_s4 = inlined_call_operand.vmem [shape: bf16[2,8,8], index: 4, kind: input, shape index: {}]   ;;  %s2087_s5 = inlined_call_operand.vmem [shape: f32[2,1,8], index: 5, kind: input, shape index: {}]   ;;  %s2088_s6 = inlined_call_operand.vmem [shape: f32[2,8,1], index: 6, kind: input, shape index: {}]   ;;  %s2089_s7 = inlined_call_operand.vmem [shape: f32[2,3,8,8], index: 7, kind: input, shape index: {}]   ;;  %s2090_s8 = inlined_call_operand.vmem [shape: bf16[2,8,32], index: 8, kind: output, shape index: {0}]   ;;  %s2091_s9 = inlined_call_operand.vmem [shape: f32[2,2,128], index: 9, kind: output, shape index: {1}]  }
   0x1   :  { %s1831_s11 = smov 0   ;;  %s1833_s12 = smov 0  }
   0x2   :  { %s1835_s13 = smov 0  }
   0x3 LB: > { %s32_s14 = sadd.s32 1, %s1765_s12  ;;  %p48_p1 = scmp.ne.s32.totalorder %s1757_s10, %s1753_s30  ;;  %s1769_s13 = sphi %s1835_s13, %s20_s13   ;;  %s1765_s12 = sphi %s1833_s12, %s2098_s12   ;;  %s1761_s11 = sphi %s1831_s11, %s2097_s11   ;;  %s1757_s10 = sphi %s1829_s10, %s2096_s10   ;;  %s1753_s30 = sphi %s1827_s30, %s2095_s30  }
   0x4   : > { %p34_p0 = scmp.ge.s32.totalorder %s32_s14, 2  ;;  %p49_p2 = scmp.eq.s32.totalorder %s1769_s13, 0 }
   0x5   : > { %s41_s17 = sadd.s32 1, %s1757_s10  ;;  %p1535_p5 = scmp.ge.s32.totalorder %s1769_s13, 2 }
   0x6   : > { %s2100_s14 = smov (%p34_p0, %s32_s14), 0  ;;  %p1858_p3 = por %p49_p2, %p48_p1 }
   0x7   : > { %s36_s16 = ssub.s32 %s1765_s12, %s2100_s14  ;;  %316 = sbr.rel (%p1535_p5) target bundleno = 35 (0x23), region = 16 }
   0x8   : > { %p39_p4 = scmp.eq.s32.totalorder %s36_s16, 0 }
   0xa   : > { %s1866_s18 = scalar_select %p39_p4, %s1757_s10, %s41_s17  }
   0xe   : > { %319 = sbr.rel (!%p1858_p3) target bundleno = 21 (0x15), region = 20  ;;  %s321_s19 = sand.u32 (%p1858_p3), 1, %s1757_s10  }
   0xf   : > { %s1536_s20 = sshll.u32 (%p1858_p3), %s1765_s12, 2  ;;  %s1632_s21 = smul.u32 (%p1858_p3), 12, %s321_s19 }
  0x10   : > { %s326_s24 = scalar_lea.vmem (%p1858_p3), %s2082_s0, %s1536_s20 }
  0x11   : > { %v342_v0 = vld [vmem:[%s326_s24] sm:$0xf] (%p1858_p3)  ;;  %v344_v1 = vld [vmem:[%s326_s24 + $0x8] sm:$0xf] (%p1858_p3)  ;;  %v346_v2 = vld [vmem:[%s326_s24 + $0x10] sm:$0xf] (%p1858_p3) }
  0x12   : > { %s323_s25 = scalar_lea.vmem (%p1858_p3), [#allocation2], %s1632_s21 }
  0x13   : > { %343 = vst [vmem:[%s323_s25] sm:$0xf] (%p1858_p3), %v342_v0  ;;  %345 = vst [vmem:[%s323_s25 + $0x4] sm:$0xf] (%p1858_p3), %v344_v1 }
  0x14   : > { %347 = vst [vmem:[%s323_s25 + $0x8] sm:$0xf] (%p1858_p3), %v346_v2 }
  0x15 PF: > { %376 = sbr.rel (!%p1858_p3) target bundleno = 28 (0x1c), region = 61  ;;  %s378_s26 = sand.u32 (%p1858_p3), 1, %s1757_s10  }
  0x16   : > { %s1537_s27 = sshll.u32 (%p1858_p3), %s1765_s12, 2  ;;  %s1633_s28 = smul.u32 (%p1858_p3), 12, %s378_s26 }
  0x17   : > { %s382_s17 = scalar_lea.vmem (%p1858_p3), %s2083_s1, %s1537_s27 }
  0x18   : > { %v398_v3 = vld [vmem:[%s382_s17] sm:$0xf] (%p1858_p3)  ;;  %v400_v4 = vld [vmem:[%s382_s17 + $0x8] sm:$0xf] (%p1858_p3)  ;;  %v402_v5 = vld [vmem:[%s382_s17 + $0x10] sm:$0xf] (%p1858_p3) }
  0x19   : > { %s380_s19 = scalar_lea.vmem (%p1858_p3), [#allocation3], %s1633_s28 }
  0x1a   : > { %399 = vst [vmem:[%s380_s19] sm:$0xf] (%p1858_p3), %v398_v3  ;;  %401 = vst [vmem:[%s380_s19 + $0x4] sm:$0xf] (%p1858_p3), %v400_v4 }
  0x1b   : > { %403 = vst [vmem:[%s380_s19 + $0x8] sm:$0xf] (%p1858_p3), %v402_v5 }
  0x1c PF: > { %432 = sbr.rel (!%p1858_p3) target bundleno = 35 (0x23), region = 102  ;;  %s434_s20 = sand.u32 (%p1858_p3), 1, %s1757_s10  }
  0x1d   : > { %s1539_s21 = sshll.u32 (%p1858_p3), %s1765_s12, 2  ;;  %s1538_s22 = sshll.u32 (%p1858_p3), %s434_s20, 4 }
  0x1e   : > { %s438_s25 = scalar_lea.vmem (%p1858_p3), %s2084_s2, %s1539_s21  ;;  %s436_s26 = scalar_lea.vmem (%p1858_p3), [#allocation4], %s1538_s22 }
  0x1f   : > { %v454_v6 = vld [vmem:[%s438_s25] sm:$0xf] (%p1858_p3)  ;;  %v456_v7 = vld [vmem:[%s438_s25 + $0x8] sm:$0xf] (%p1858_p3)  ;;  %v458_v8 = vld [vmem:[%s438_s25 + $0x10] sm:$0xf] (%p1858_p3) }
  0x20   : > { %455 = vst [vmem:[%s436_s26] sm:$0xf] (%p1858_p3), %v454_v6  ;;  %457 = vst [vmem:[%s436_s26 + $0x4] sm:$0xf] (%p1858_p3), %v456_v7  ;;  %v460_v9 = vld [vmem:[%s438_s25 + $0x18] sm:$0xf] (%p1858_p3) }
  0x21   : > { %459 = vst [vmem:[%s436_s26 + $0x8] sm:$0xf] (%p1858_p3), %v458_v8  ;;  %461 = vst [vmem:[%s436_s26 + $0xc] sm:$0xf] (%p1858_p3), %v460_v9 }
  0x23 PF: > { %p1540_p6 = scmp.ge.s32.totalorder %s1769_s13, 1  ;;  %p535_p7 = scmp.lt.s32.totalorder %s1769_s13, 3 }
  0x25   : > { %p536_p8 = pnand %p1540_p6, %p535_p7 }
  0x26   : > { %p634_p9 = scmp.lt.s32.totalorder (!%p536_p8), %s1761_s11, 1  ;;  %v1771_v10 = vmov (!%p536_p8), 0.0   ;;  %vm1772_vm0 = vmmov (!%p536_p8), 0   ;;  %vm713_vm1 = vcmask (!%p536_p8), 64512   ;;  %v685_v14 = vlaneseq (!%p536_p8)  ;;  %s542_s23 = sand.u32 (!%p536_p8), 1, %s1753_s30  }
  0x27   : > { %539 = sbr.rel (%p536_p8) target bundleno = 1477 (0x5c5), region = 163  ;;  %1584 = vmatprep.subr.bf16.mxu0 (!%p536_p8), %v1771_v10  ;;  %1586 = vmatprep.mubr.msk.bf16.mxu0 (!%p536_p8), %vm1772_vm0, %v1771_v10  ;;  %s1541_s24 = sshll.u32 (!%p536_p8), %s542_s23, 4  ;;  %vm783_vm2 = vcmask (!%p536_p8), 1043456   ;;  %vm1293_vm6 = vcmask (!%p536_p8), 130048   ;;  %vm1295_vm7 = vcmask (!%p536_p8), 195584   ;;  %vm1298_vm8 = vcmask (!%p536_p8), 257024  }
  0x28   : > { %1590 = vmatprep.subr.bf16.mxu1 (!%p536_p8), %v1771_v10  ;;  %1592 = vmatprep.mubr.msk.bf16.mxu1 (!%p536_p8), %vm1772_vm0, %v1771_v10  ;;  %v1926_v17 = vshrl.u32 (!%p536_p8), %v685_v14, 7  ;;  %s1937_s25 = scalar_lea.vmem (!%p536_p8), [#allocation4], %s1541_s24  ;;  %s1634_s26 = smul.u32 (!%p536_p8), 12, %s542_s23 }
  0x29   : > { %v712_v33 = vld [vmem:[%s1937_s25] sm:$0xf] (!%p536_p8) }
  0x2a   : > { %v699_v19 = vsub.s32 (!%p536_p8), 0, %v1926_v17  ;;  %v785_v34 = vsel (!%p536_p8), %vm783_vm2, %v712_v33, 0  ;;  %s551_s27 = scalar_lea.vmem (!%p536_p8), [#allocation3], %s1634_s26  ;;  %s544_s30 = scalar_lea.vmem (!%p536_p8), [#allocation2], %s1634_s26 }
  0x2b   : > { %1591 = vmatpush3.bf16.msra.mxu1 (!%p536_p8), %v785_v34  ;;  %v828_v37 = vld [vmem:[%s551_s27] sm:$0xf] (!%p536_p8)  ;;  %v1555_v41 = vld [vmem:[%s551_s27 + $0x4] sm:$0xf] (!%p536_p8)  ;;  %v827_v42 = vld [vmem:[%s544_s30] sm:$0xf] (!%p536_p8) }
  0x2c   : > { %1596 = vmatprep.subr.bf16.mxu1 (!%p536_p8), %v1771_v10  ;;  %v835_v40 = vsel (!%p536_p8), %vm713_vm1, %v828_v37, 0  ;;  %v986_v43 = vsel (!%p536_p8), %vm713_vm1, %v1555_v41, 0  ;;  %v1561_v44 = vld [vmem:[%s551_s27 + $0x8] sm:$0xf] (!%p536_p8)  ;;  %v1554_v45 = vld [vmem:[%s544_s30 + $0x4] sm:$0xf] (!%p536_p8) }
  0x2d   : > { %v1138_v46 = vsel (!%p536_p8), %vm713_vm1, %v1561_v44, 0  ;;  %v1560_v47 = vld [vmem:[%s544_s30 + $0x8] sm:$0xf] (!%p536_p8) }
  0x2e   : > { %s2102_s11 = smov (!%p634_p9, %s1761_s11), 1 }
  0x2f   : > { %s1903_s15 = sshll.u32 %s2102_s11, 2  ;;  %s647_s22 = scalar_lea.vmem %s2087_s5, %s2102_s11 }
  0x30   : > { %s644_s29 = scalar_lea.vmem %s2086_s4, %s1903_s15  ;;  %s640_s19 = scalar_lea.vmem %s2085_s3, %s1903_s15  ;;  %v1922_v15 = vld [vmem:[%s647_s22] sm:$0x1] }
  0x31   : > { %v711_v11 = vld [vmem:[%s644_s29] sm:$0xf]  ;;  %v682_v16 = vsub.f32 1.0, %v1922_v15  ;;  %s1635_s28 = smul.u32 24, %s2102_s11  ;;  %s1547_s23 = sshll.u32 %s2102_s11, 1 }
  0x32   : > { %v718_v12 = vsel %vm713_vm1, %v711_v11, 0  ;;  %v710_v13 = vld [vmem:[%s640_s19] sm:$0xf]  ;;  %s1544_s19 = sshll.u32 %s2102_s11, 3  ;;  %s2053_s26 = scalar_lea.vmem %s2091_s9, %s1547_s23 }
  0x33   : > { %1585 = vmatpush3.bf16.xpose.msra.mxu0 %v718_v12  ;;  %v683_v18 = vmul.f32 -10000.0, %v682_v16  ;;  %s662_s17 = scalar_lea.vmem %s2089_s7, %s1635_s28  ;;  %s654_s22 = scalar_lea.vmem %s2088_s6, %s1544_s19  ;;  %679 = vst [vmem:[%s2053_s26] sm:$0x3] %v1771_v10 }
  0x34   : > { %1602 = vmatprep.subr.bf16.mxu0 %v1771_v10  ;;  %v1963_v49 = vld [vmem:[%s662_s17] sm:$0xff]  ;;  %v1968_v56 = vld [vmem:[%s662_s17 + $0x8] sm:$0xff]  ;;  %v1974_v2 = vld [vmem:[%s662_s17 + $0x10] sm:$0xff]  ;;  %s1774_s11 = smov 8   ;;  %s1775_s29 = smov 16  }
  0x35   : > { %v1931_v20 = vrot.slane %v683_v18, %v699_v19  ;;  %v895_v53 = vsub.f32 1.0, %v1963_v49  ;;  %v1047_v62 = vsub.f32 1.0, %v1968_v56  ;;  %v1199_v8 = vsub.f32 1.0, %v1974_v2  ;;  %s1776_s17 = smov 24   ;;  %s669_s21 = scalar_lea.vmem %s2090_s8, %s1903_s15 }
  0x37   : > { %v915_v54 = vmul.f32 -10000.0, %v895_v53  ;;  %v1067_v0 = vmul.f32 -10000.0, %v1047_v62  ;;  %v1219_v11 = vmul.f32 -10000.0, %v1199_v8 }
  0x3a   : > { %1587 = vmatmul.mubr.msk.bf16.vlgmr.msra.gmra.mrb[0].mxu0 %vm713_vm1, %v710_v13 }
  0x3b   : > { %1604 = vmatprep.mubr.msk.bf16.mxu0 %vm1772_vm0, %v1771_v10 }
 0x10d   : > { %v754_v21 = vpop.f32.mrb[0].mxu0 }
 0x10e   : > { %v760_v22 = vmul.f32 0.35355338, %v754_v21  ;;  %v1588_v23 = vpop.f32.mrb[1].mxu0 }
 0x10f   : > { %v757_v24 = vpop.f32.mrb[2].mxu0 }
 0x110   : > { %v1589_v25 = vpop.f32.mrb[3].mxu0  ;;  %v767_v26 = vadd.f32 %v1931_v20, %v760_v22  ;;  %v1773_v24 = vmov 0  }
 0x111   : > { %1690 = vset.pattern.permute.xlu0 %v1773_v24 }
 0x112   : > { %v768_v27 = vsel %vm713_vm1, %v767_v26, -inf }
 0x113   : > { %769 = vmax.xlane.f32.xlu0 %v768_v27 }
 0x1a0   : > { %v770_v28 = vpop.xlane.xlu0 %769 }
 0x1a1   : > { %v771_v29 = vsub.f32 %v767_v26, %v770_v28 }
 0x1a3   : > { %v772_v30 = vmul.f32 1.442695, %v771_v29 }
 0x1a5   : > { %1691 = vpow2.f32 %v772_v30 }
 0x1af   : > { %v1692_v31 = vpop.eup %1691 }
 0x1b0   : > { %v774_v32 = vsel %vm713_vm1, %v1692_v31, 0.0 }
 0x1b1   : > { %775 = vadd.xlane.f32.xlu0 %v774_v32 }
 0x23e   : > { %v776_v35 = vpop.xlane.xlu0 %775 }
 0x23f   : > { %1693 = vrcp.f32 %v776_v35 }
 0x249   : > { %v1694_v36 = vpop.eup %1693 }
 0x24a   : > { %v778_v38 = vmul.f32 %v1694_v36, %v1692_v31 }
 0x24c   : > { %v779_v39 = vpack.c.bf16 %v778_v38, %v778_v38 }
 0x24e   : > { %1593 = vmatmul.mubr.msk.bf16.vlgmr.msra.gmra.mrb[0].mxu1 %vm713_vm1, %v779_v39 }
 0x24f   : > { %1597 = vmatpush3.bf16.xpose.msra.mxu1 %v835_v40  ;;  %1598 = vmatprep.mubr.msk.bf16.mxu1 %vm1772_vm0, %v1771_v10  ;;  %v1551_v40 = vld [vmem:[%s1937_s25 + $0x4] sm:$0xf] }
 0x250   : > { %1608 = vmatprep.subr.bf16.mxu1 %v1771_v10  ;;  %v934_v41 = vsel %vm783_vm2, %v1551_v40, 0 }
 0x251   : > { %1603 = vmatpush3.bf16.msra.mxu0 %v934_v41 }
 0x252   : > { %1614 = vmatprep.subr.bf16.mxu0 %v1771_v10 }
 0x256   : > { %1599 = vmatmul.mubr.msk.bf16.vlgmr.msra.gmra.mrb[4].mxu1 %vm713_vm1, %v827_v42  ;;  %v681_v42 = vld [vmem:[%s654_s22] sm:$0xff] }
 0x257   : > { %1609 = vmatpush3.bf16.xpose.msra.mxu1 %v986_v43  ;;  %1610 = vmatprep.mubr.msk.bf16.mxu1 %vm1772_vm0, %v1771_v10 }
 0x258   : > { %1620 = vmatprep.subr.bf16.mxu1 %v1771_v10 }
 0x25e   : > { %1611 = vmatmul.mubr.msk.bf16.vlgmr.msra.gmra.mrb[8].mxu1 %vm713_vm1, %v1554_v45 }
 0x25f   : > { %1621 = vmatpush3.bf16.xpose.msra.mxu1 %v1138_v46  ;;  %1622 = vmatprep.mubr.msk.bf16.mxu1 %vm1772_vm0, %v1771_v10 }
 0x266   : > { %1623 = vmatmul.mubr.msk.bf16.vlgmr.msra.gmra.mrb[12].mxu1 %vm713_vm1, %v1560_v47 }
 0x321   : > { %v1961_v48 = vpop.f32.mrb[0].mxu1 }
 0x322   : > { %v1594_v50 = vpop.f32.mrb[1].mxu1 }
 0x323   : > { %v824_v51 = vpop.f32.mrb[2].mxu1 }
 0x324   : > { %v1595_v52 = vpop.f32.mrb[3].mxu1 }
 0x329   : > { %v871_v55 = vpop.f32.mrb[4].mxu1 }
 0x32a   : > { %v916_v57 = vmul.f32 0.35355338, %v871_v55  ;;  %v1600_v58 = vpop.f32.mrb[5].mxu1  ;;  %v877_v43 = vadd.f32 %v871_v55, %v1931_v20 }
 0x32b   : > { %v874_v59 = vpop.f32.mrb[6].mxu1 }
 0x32c   : > { %v1601_v60 = vpop.f32.mrb[7].mxu1  ;;  %v917_v61 = vadd.f32 %v916_v57, %v915_v54  ;;  %v879_v45 = vsub.f32 0.0, %v877_v43 }
 0x32e   : > { %v918_v63 = vsel %vm713_vm1, %v917_v61, -inf  ;;  %v880_v50 = vmul.f32 1.442695, %v879_v45  ;;  %v700_v45 = vrot.slane %v1922_v15, %v699_v19 }
 0x32f   : > { %919 = vmax.xlane.f32.xlu1 %v918_v63 }
 0x331   : > { %v1022_v1 = vpop.f32.mrb[8].mxu1 }
 0x332   : > { %v1068_v3 = vmul.f32 0.35355338, %v1022_v1  ;;  %v1612_v4 = vpop.f32.mrb[9].mxu1  ;;  %v1028_v44 = vadd.f32 %v1022_v1, %v1931_v20 }
 0x333   : > { %v1025_v5 = vpop.f32.mrb[10].mxu1 }
 0x334   : > { %v1613_v6 = vpop.f32.mrb[11].mxu1  ;;  %v1069_v7 = vadd.f32 %v1068_v3, %v1067_v0  ;;  %v1031_v46 = vsub.f32 0.0, %v1028_v44  ;;  %v690_v44 = vand.u32 127, %v685_v14 }
 0x336   : > { %v1070_v9 = vsel %vm713_vm1, %v1069_v7, -inf  ;;  %v1032_v51 = vmul.f32 1.442695, %v1031_v46  ;;  %vm704_vm3 = vcmp.ne.s32.totalorder %v1926_v17, %v690_v44  ;;  %v1315_v17 = vld [vmem:[%s2053_s26 + $0x1] sm:$0x1] }
 0x337   : > { %1071 = vmax.xlane.f32.xlu1 %v1070_v9 }
 0x339   : > { %v1174_v12 = vpop.f32.mrb[12].mxu1 }
 0x33a   : > { %v1220_v13 = vmul.f32 0.35355338, %v1174_v12  ;;  %v1624_v16 = vpop.f32.mrb[13].mxu1  ;;  %v1180_v47 = vadd.f32 %v1174_v12, %v1931_v20 }
 0x33b   : > { %v1177_v18 = vpop.f32.mrb[14].mxu1 }
 0x33c   : > { %v1625_v21 = vpop.f32.mrb[15].mxu1  ;;  %v1221_v22 = vadd.f32 %v1220_v13, %v1219_v11  ;;  %v1183_v52 = vsub.f32 0.0, %v1180_v47 }
 0x33e   : > { %v1222_v23 = vsel %vm713_vm1, %v1221_v22, -inf  ;;  %v1184_v54 = vmul.f32 1.442695, %v1183_v52 }
 0x33f   : > { %1223 = vmax.xlane.f32.xlu0 %v1222_v23 }
 0x3bc   : > { %v920_v25 = vpop.xlane.xlu1 %919 }
 0x3bd   : > { %v921_v26 = vsub.f32 %v917_v61, %v920_v25 }
 0x3bf   : > { %v922_v27 = vmul.f32 1.442695, %v921_v26 }
 0x3c1   : > { %1695 = vpow2.f32 %v922_v27 }
 0x3c4   : > { %v1072_v28 = vpop.xlane.xlu1 %1071 }
 0x3c5   : > { %v1073_v29 = vsub.f32 %v1069_v7, %v1072_v28 }
 0x3c7   : > { %v1074_v30 = vmul.f32 1.442695, %v1073_v29 }
 0x3c9   : > { %1697 = vpow2.f32 %v1074_v30 }
 0x3cb   : > { %v1981_v31 = vpop.eup %1695 }
 0x3cc   : > { %v1224_v32 = vpop.xlane.xlu0 %1223  ;;  %v924_v33 = vsel %vm713_vm1, %v1981_v31, 0.0 }
 0x3cd   : > { %v1225_v34 = vsub.f32 %v1221_v22, %v1224_v32  ;;  %925 = vadd.xlane.f32.xlu1 %v924_v33  ;;  %v1556_v33 = vld [vmem:[%s1937_s25 + $0x8] sm:$0xf] }
 0x3cf   : > { %v1226_v35 = vmul.f32 1.442695, %v1225_v34 }
 0x3d1   : > { %1699 = vpow2.f32 %v1226_v35 }
 0x3d2   : > { %1701 = vpow2.f32 %v880_v50 }
 0x3d3   : > { %v1985_v36 = vpop.eup %1697  ;;  %1703 = vpow2.f32 %v1032_v51 }
 0x3d4   : > { %v1076_v37 = vsel %vm713_vm1, %v1985_v36, 0.0  ;;  %1705 = vpow2.f32 %v1184_v54 }
 0x3d5   : > { %1077 = vadd.xlane.f32.xlu0 %v1076_v37 }
 0x3db   : > { %v1989_v38 = vpop.eup %1699 }
 0x3dc   : > { %v1228_v39 = vsel %vm713_vm1, %v1989_v38, 0.0  ;;  %v1702_v57 = vpop.eup %1701 }
 0x3dd   : > { %1229 = vadd.xlane.f32.xlu1 %v1228_v39  ;;  %v1704_v58 = vpop.eup %1703  ;;  %v882_v59 = vadd.f32 1.0, %v1702_v57 }
 0x3de   : > { %v1034_v60 = vadd.f32 1.0, %v1704_v58  ;;  %v1706_v61 = vpop.eup %1705 }
 0x3df   : > { %1707 = vrcp.f32 %v882_v59  ;;  %v1186_v55 = vadd.f32 1.0, %v1706_v61 }
 0x3e0   : > { %1709 = vrcp.f32 %v1034_v60 }
 0x3e1   : > { %1711 = vrcp.f32 %v1186_v55 }
 0x3e9   : > { %v1708_v63 = vpop.eup %1707 }
 0x3ea   : > { %v1710_v0 = vpop.eup %1709  ;;  %v885_v1 = vsub.f32 1.0, %v1708_v63  ;;  %v889_v5 = vadd.f32 1e-08, %v1708_v63  ;;  %v893_v16 = vmul.f32 0.75, %v1708_v63 }
 0x3eb   : > { %693 = vperm.xlu0 %1690, %v681_v42   ;;  %v1037_v20 = vsub.f32 1.0, %v1710_v0  ;;  %v1712_v3 = vpop.eup %1711  ;;  %v1041_v9 = vadd.f32 1e-08, %v1710_v0  ;;  %v1045_v21 = vmul.f32 0.75, %v1710_v0 }
 0x3ec   : > { %v897_v4 = vadd.f32 1e-08, %v885_v1  ;;  %v1189_v7 = vsub.f32 1.0, %v1712_v3  ;;  %v1193_v13 = vadd.f32 1e-08, %v1712_v3  ;;  %v886_v18 = vmul.f32 -0.25, %v885_v1 }
 0x3ed   : > { %v1049_v6 = vadd.f32 1e-08, %v1037_v20  ;;  %v894_v23 = vmul.f32 %v1708_v63, %v893_v16  ;;  %v1038_v24 = vmul.f32 -0.25, %v1037_v20  ;;  %v1046_v30 = vmul.f32 %v1710_v0, %v1045_v21  ;;  %v1562_v63 = vld [vmem:[%s1937_s25 + $0xc] sm:$0xf] }
 0x3ee   : > { %1713 = vlog2.f32 %v897_v4  ;;  %v1201_v12 = vadd.f32 1e-08, %v1189_v7  ;;  %v887_v28 = vmul.f32 %v886_v18, %v885_v1  ;;  %v1197_v37 = vmul.f32 0.75, %v1712_v3 }
 0x3ef   : > { %1715 = vlog2.f32 %v889_v5  ;;  %v896_v34 = vmul.f32 %v895_v53, %v894_v23  ;;  %v1039_v35 = vmul.f32 %v1038_v24, %v1037_v20  ;;  %v1190_v43 = vmul.f32 -0.25, %v1189_v7 }
 0x3f0   : > { %1717 = vlog2.f32 %v1049_v6  ;;  %v888_v46 = vmul.f32 %v887_v28, %v1963_v49  ;;  %v1086_v53 = vsel %vm783_vm2, %v1556_v33, 0  ;;  %v1048_v52 = vmul.f32 %v1047_v62, %v1046_v30 }
 0x3f1   : > { %v1198_v54 = vmul.f32 %v1712_v3, %v1197_v37  ;;  %v1040_v15 = vmul.f32 %v1968_v56, %v1039_v35  ;;  %v1191_v49 = vmul.f32 %v1190_v43, %v1189_v7 }
 0x3f3   : > { %v1200_v56 = vmul.f32 %v1199_v8, %v1198_v54  ;;  %v1192_v5 = vmul.f32 %v1974_v2, %v1191_v49 }
 0x3f8   : > { %v1714_v22 = vpop.eup %1713 }
 0x3f9   : > { %v1716_v25 = vpop.eup %1715  ;;  %v899_v29 = vmul.f32 0.6931472, %v1714_v22 }
 0x3fa   : > { %v1718_v27 = vpop.eup %1717  ;;  %v891_v41 = vmul.f32 0.6931472, %v1716_v25 }
 0x3fb   : > { %v1051_v42 = vmul.f32 0.6931472, %v1718_v27  ;;  %v900_v51 = vmul.f32 %v899_v29, %v896_v34 }
 0x3fc   : > { %v892_v59 = vmul.f32 %v891_v41, %v888_v46 }
 0x3fd   : > { %v1052_v19 = vmul.f32 %v1051_v42, %v1048_v52 }
 0x3fe   : > { %v901_v61 = vsub.f32 %v892_v59, %v900_v51 }
 0x45a   : > { %v926_v11 = vpop.xlane.xlu1 %925 }
 0x45b   : > { %1719 = vrcp.f32 %v926_v11  ;;  %v1238_v11 = vsel %vm783_vm2, %v1562_v63, 0 }
 0x45c   : > { %1721 = vlog2.f32 %v1041_v9 }
 0x45d   : > { %1723 = vlog2.f32 %v1201_v12 }
 0x45e   : > { %1725 = vlog2.f32 %v1193_v13 }
 0x462   : > { %v1078_v26 = vpop.xlane.xlu0 %1077 }
 0x463   : > { %1727 = vrcp.f32 %v1078_v26 }
 0x465   : > { %v1720_v32 = vpop.eup %1719 }
 0x466   : > { %v1722_v39 = vpop.eup %1721  ;;  %v928_v40 = vmul.f32 %v1720_v32, %v1981_v31 }
 0x467   : > { %v1724_v47 = vpop.eup %1723  ;;  %v1043_v31 = vmul.f32 0.6931472, %v1722_v39 }
 0x468   : > { %v929_v50 = vpack.c.bf16 %v928_v40, %v928_v40  ;;  %v1726_v57 = vpop.eup %1725  ;;  %v1203_v62 = vmul.f32 0.6931472, %v1724_v47 }
 0x469   : > { %v1044_v0 = vmul.f32 %v1043_v31, %v1040_v15  ;;  %v1195_v1 = vmul.f32 0.6931472, %v1726_v57 }
 0x46a   : > { %1605 = vmatmul.mubr.msk.bf16.vlgmr.msra.gmra.mrb[4].mxu0 %vm713_vm1, %v929_v50  ;;  %v1230_v14 = vpop.xlane.xlu1 %1229  ;;  %v694_v58 = vpop.permute.xlu0 %693  ;;  %v1204_v6 = vmul.f32 %v1203_v62, %v1200_v56  ;;  %v1312_v62 = vld [vmem:[%s2053_s26] sm:$0x1] }
 0x46b   : > { %1615 = vmatpush3.bf16.msra.mxu0 %v1086_v53  ;;  %1729 = vrcp.f32 %v1230_v14  ;;  %v702_v60 = vmul.f32 %v700_v45, %v694_v58  ;;  %1616 = vmatprep.mubr.msk.bf16.mxu0 %vm1772_vm0, %v1771_v10  ;;  %v1053_v4 = vsub.f32 %v1044_v0, %v1052_v19 }
 0x46c   : > { %1626 = vmatprep.subr.bf16.mxu0 %v1771_v10 }
 0x46d   : > { %v1728_v55 = vpop.eup %1727  ;;  %vm703_vm4 = vcmp.gt.f32.partialorder %v702_v60, 0.5 }
 0x46e   : > { %v1080_v20 = vmul.f32 %v1728_v55, %v1985_v36  ;;  %vm2025_vm5 = vmand %vm703_vm4, %vm704_vm3  ;;  %v1196_v36 = vmul.f32 %v1195_v1, %v1192_v5 }
 0x46f   : > { %v902_v3 = vsel %vm2025_vm5, %v901_v61, 0.0  ;;  %v1054_v8 = vsel %vm2025_vm5, %v1053_v4, 0.0  ;;  %v1548_v21 = vsel %vm2025_vm5, 1.0, %v1771_v10 }
 0x470   : > { %v903_v7 = vsel %vm713_vm1, %v902_v3, 0.0  ;;  %v1081_v9 = vpack.c.bf16 %v1080_v20, %v1080_v20  ;;  %v1205_v12 = vsub.f32 %v1196_v36, %v1204_v6  ;;  %v1055_v2 = vsel %vm713_vm1, %v1054_v8, 0.0 }
 0x471   : > { %904 = vadd.xlane.f32.xlu1 %v903_v7  ;;  %v1300_v24 = vsel %vm713_vm1, %v1548_v21, 0.0 }
 0x472   : > { %1617 = vmatmul.mubr.msk.bf16.vlgmr.msra.gmra.mrb[8].mxu0 %vm713_vm1, %v1081_v9  ;;  %v1206_v16 = vsel %vm2025_vm5, %v1205_v12, 0.0 }
 0x473   : > { %1627 = vmatpush3.bf16.msra.mxu0 %v1238_v11  ;;  %1628 = vmatprep.mubr.msk.bf16.mxu0 %vm1772_vm0, %v1771_v10  ;;  %v1207_v22 = vsel %vm713_vm1, %v1206_v16, 0.0 }
 0x475   : > { %v1730_v13 = vpop.eup %1729  ;;  %1056 = vadd.xlane.f32.xlu1 %v1055_v2 }
 0x476   : > { %v1232_v18 = vmul.f32 %v1730_v13, %v1989_v38 }
 0x478   : > { %v1233_v23 = vpack.c.bf16 %v1232_v18, %v1232_v18 }
 0x479   : > { %1208 = vadd.xlane.f32.xlu1 %v1207_v22 }
 0x47a   : > { %1629 = vmatmul.mubr.msk.bf16.vlgmr.msra.gmra.mrb[12].mxu0 %vm713_vm1, %v1233_v23 }
 0x47d   : > { %1301 = vadd.xlane.f32.xlu1 %v1300_v24 }
 0x4fe   : > { %v905_v38 = vpop.xlane.xlu1 %904 }
 0x4ff   : > { %v906_v25 = vrot.slane %v905_v38, 4 }
 0x501   : > { %v907_v26 = vadd.f32 %v906_v25, %v905_v38 }
 0x502   : > { %v1057_v27 = vpop.xlane.xlu1 %1056 }
 0x503   : > { %v908_v28 = vrot.slane %v907_v26, 2  ;;  %v1058_v29 = vrot.slane %v1057_v27, 4 }
 0x505   : > { %v1059_v30 = vadd.f32 %v1058_v29, %v1057_v27  ;;  %v909_v32 = vadd.f32 %v908_v28, %v907_v26 }
 0x506   : > { %v1209_v33 = vpop.xlane.xlu1 %1208 }
 0x507   : > { %v1060_v34 = vrot.slane %v1059_v30, 2  ;;  %v1210_v35 = vrot.slane %v1209_v33, 4  ;;  %v910_v37 = vrot.slane %v909_v32, 1 }
 0x509   : > { %v1211_v39 = vadd.f32 %v1210_v35, %v1209_v33  ;;  %v911_v40 = vadd.f32 %v910_v37, %v909_v32  ;;  %v1061_v41 = vadd.f32 %v1060_v34, %v1059_v30 }
 0x50a   : > { %v1302_v42 = vpop.xlane.xlu1 %1301 }
 0x50b   : > { %v1212_v43 = vrot.slane %v1211_v39, 2  ;;  %1636 = vpush %v911_v40  ;;  %v1062_v44 = vrot.slane %v1061_v41, 1  ;;  %v1303_v10 = vrot.slane %v1302_v42, 4 }
 0x50d   : > { %v1063_v45 = vadd.f32 %v1062_v44, %v1061_v41  ;;  %v1213_v46 = vadd.f32 %v1212_v43, %v1211_v39  ;;  %v1304_v47 = vadd.f32 %v1303_v10, %v1302_v42 }
 0x50f   : > { %1638 = vpush %v1063_v45  ;;  %v1214_v50 = vrot.slane %v1213_v46, 1  ;;  %v1305_v53 = vrot.slane %v1304_v47, 2 }
 0x511   : > { %v1215_v51 = vadd.f32 %v1214_v50, %v1213_v46  ;;  %v1306_v52 = vadd.f32 %v1305_v53, %v1304_v47 }
 0x513   : > { %1640 = vpush %v1215_v51  ;;  %v1307_v31 = vrot.slane %v1306_v52, 1 }
 0x515   : > { %v1308_v54 = vadd.f32 %v1307_v31, %v1306_v52 }
 0x517   : > { %1642 = vpush %v1308_v54 }
 0x53c   : > { %s1637_s27 = spop %1636 }
 0x53d   : > { %v970_v57 = vpop.f32.mrb[4].mxu0  ;;  %v913_v19 = vstv %s1637_s27 }
 0x53e   : > { %v1606_v14 = vpop.f32.mrb[5].mxu0  ;;  %1281 = vrot.lane.b32.xlu1 %v970_v57, %s1774_s11 }
 0x53f   : > { %v973_v58 = vpop.f32.mrb[6].mxu0 }
 0x540   : > { %v1607_v59 = vpop.f32.mrb[7].mxu0  ;;  %s1639_s30 = spop %1638 }
 0x541   : > { %v1065_v15 = vstv %s1639_s30 }
 0x542   : > { %v1066_v49 = vadd.f32 %v1065_v15, %v913_v19 }
 0x544   : > { %s1641_s28 = spop %1640 }
 0x545   : > { %v1217_v60 = vstv %s1641_s28  ;;  %v1122_v61 = vpop.f32.mrb[8].mxu0 }
 0x546   : > { %v1218_v55 = vadd.f32 %v1217_v60, %v1066_v49  ;;  %v1618_v63 = vpop.f32.mrb[9].mxu0  ;;  %1285 = vrot.lane.b32.xlu1 %v1122_v61, %s1775_s29 }
 0x547   : > { %v1125_v0 = vpop.f32.mrb[10].mxu0 }
 0x548   : > { %v1313_v1 = vadd.f32 %v1312_v62, %v1218_v55  ;;  %v1619_v56 = vpop.f32.mrb[11].mxu0  ;;  %s1643_s16 = spop %1642 }
 0x549   : > { %v1310_v20 = vstv %s1643_s16 }
 0x54a   : > { %1314 = vst [vmem:[%s2053_s26] sm:$0x1] %v1313_v1  ;;  %v1311_v3 = vmul.f32 3.0, %v1310_v20 }
 0x54c   : > { %v1316_v4 = vadd.f32 %v1315_v17, %v1311_v3 }
 0x54d   : > { %v1274_v5 = vpop.f32.mrb[12].mxu0 }
 0x54e   : > { %v1630_v6 = vpop.f32.mrb[13].mxu0  ;;  %1289 = vrot.lane.b32.xlu1 %v1274_v5, %s1776_s17  ;;  %1317 = vst [vmem:[%s2053_s26 + $0x1] sm:$0x1] %v1316_v4 }
 0x54f   : > { %v1277_v7 = vpop.f32.mrb[14].mxu0 }
 0x550   : > { %v1631_v9 = vpop.f32.mrb[15].mxu0 }
 0x5b0   : > { %v1282_v11 = vpop.permute.xlu1 %1281 }
 0x5b1   : > { %v1292_v36 = vsel %vm713_vm1, %v1961_v48, %v1282_v11 }
 0x5b8   : > { %v1286_v8 = vpop.permute.xlu1 %1285 }
 0x5b9   : > { %v1294_v12 = vsel %vm1293_vm6, %v1292_v36, %v1286_v8 }
 0x5c0   : > { %v1290_v2 = vpop.permute.xlu1 %1289 }
 0x5c1   : > { %v1296_v13 = vsel %vm1295_vm7, %v1294_v12, %v1290_v2 }
 0x5c2   : > { %v1297_v16 = vpack.c.bf16 %v1296_v13, %v1296_v13 }
 0x5c4   : > { %1299 = vst.msk [vmem:[%s669_s21] sm:$0xf] %vm1298_vm8, %v1297_v16 }
 0x5c5 PF: > { %s20_s13 = sadd.s32 1, %s1769_s13   ;;  %s2095_s30 = smov %s1757_s10 }
 0x5c6   : > { %p17_p10 = scmp.ge.s32.totalorder %s20_s13, 4   ;;  %s2096_s10 = smov %s1866_s18 }
 0x5c7   : > { %s2097_s11 = smov %s1765_s12  ;;  %s2098_s12 = smov %s2100_s14 }
 0x5c8   :  { %19 = sbr.rel (!%p17_p10) target bundleno = 3 (0x3), region = 266 }

// kernel: struct_self_attention_forward.12
= control target key start
LH: loop header
LB: loop body
LE: loop exit
PB: predicated region body
PF: predicated region fallthrough
CT: control target
= control target key end

     0   :  { %vm46_vm0 = vcmask 261120   ;;  %vm118_vm1 = vcmask 11264   ;;  %s308_s29 = smov 124   ;;  %s310_s10 = smov 122   ;;  %vm186_vm2 = vcmask 60416   ;;  %s493_s1 = inlined_call_operand.vmem [shape: bf16[32,40], index: 1, kind: input, shape index: {}]   ;;  %s494_s0 = inlined_call_operand.vmem [shape: f32[32,32], index: 0, kind: input, shape index: {}]   ;;  %s495_s2 = inlined_call_operand.vmem [shape: f32[1,40], index: 2, kind: input, shape index: {}]   ;;  %s496_s3 = inlined_call_operand.vmem [shape: bf16[4,32,2], index: 3, kind: output, shape index: {0}]   ;;  %s497_s4 = inlined_call_operand.vmem [shape: bf16[4,32,8], index: 4, kind: output, shape index: {1}]  }
   0x1   :  { %v306_v0 = vld [vmem:[%s493_s1] sm:$0xff]   ;;  %v307_v1 = vld [vmem:[%s493_s1 + $0x8] sm:$0xff]   ;;  %v19_v5 = vld [vmem:[%s494_s0 + $0x10] sm:$0xff]  ;;  %s311_s11 = smov 120   ;;  %s312_s12 = smov 112  }
   0x2   :  { %291 = vmatprep.subr.bf16.mxu0 %v306_v0  ;;  %v17_v2 = vld [vmem:[%s494_s0] sm:$0xff]  ;;  %v18_v3 = vld [vmem:[%s494_s0 + $0x8] sm:$0xff]  ;;  %v20_v6 = vld [vmem:[%s494_s0 + $0x18] sm:$0xff]  ;;  %s313_s13 = smov 104   ;;  %s314_s14 = smov 96  }
   0x3   :  { %292 = vmatpush3.bf16.msra.mxu0 %v306_v0  ;;  %v21_v4 = vpack.c.bf16 %v18_v3, %v17_v2  ;;  %v22_v7 = vpack.c.bf16 %v20_v6, %v19_v5  ;;  %v250_v8 = vld [vmem:[%s495_s2] ss:$0 sm:$0xff]  ;;  %s309_s2 = smov 126  }
   0x4   :  { %293 = vmatprep.subr.bf16.mxu0 %v307_v1 }
   0x5   :  { %295 = vmatprep.mubr.msk.bf16.mxu0 %vm46_vm0, %v21_v4 }
   0x7   :  { %294 = vmatpush3.bf16.msra.mxu0 %v307_v1 }
   0xa   :  { %296 = vmatmul.mubr.msk.bf16.vlgmr.msra.gmra.mrb[0].mxu0 %vm46_vm0, %v22_v7 }
  0xdd   :  { %v297_v9 = vpop.f32.mrb[0].mxu0 }
  0xde   :  { %v96_v10 = vadd.f32 %v297_v9, %v250_v8  ;;  %v87_v11 = vpop.f32.mrb[1].mxu0 }
  0xdf   :  { %v88_v12 = vadd.f32 %v250_v8, %v87_v11  ;;  %v298_v13 = vpop.f32.mrb[2].mxu0 }
  0xe0   :  { %v285_v14 = vpack.c.bf16 %v96_v10, %v96_v10  ;;  %v99_v15 = vadd.f32 %v298_v13, %v250_v8  ;;  %v90_v16 = vpop.f32.mrb[3].mxu0 }
  0xe1   :  { %v283_v17 = vpack.c.bf16 %v88_v12, %v88_v12  ;;  %v91_v18 = vadd.f32 %v250_v8, %v90_v16 }
  0xe2   :  { %121 = vst.msk [vmem:[%s496_s3 + $0x8] sm:$0xf] %vm118_vm1, %v285_v14  ;;  %v286_v19 = vpack.c.bf16 %v99_v15, %v99_v15  ;;  %144 = vrot.lane.b32.xlu0 %v285_v14, %s308_s29  ;;  %127 = vrot.lane.b32.xlu1 %v285_v14, %s309_s2 }
  0xe3   :  { %119 = vst.msk [vmem:[%s496_s3] sm:$0xf] %vm118_vm1, %v283_v17  ;;  %v284_v20 = vpack.c.bf16 %v91_v18, %v91_v18 }
  0xe4   :  { %122 = vst.msk [vmem:[%s496_s3 + $0xc] sm:$0xf] %vm118_vm1, %v286_v19 }
  0xe5   :  { %120 = vst.msk [vmem:[%s496_s3 + $0x4] sm:$0xf] %vm118_vm1, %v284_v20 }
  0xe6   :  { %161 = vrot.lane.b32.xlu0 %v285_v14, %s310_s10  ;;  %129 = vrot.lane.b32.xlu1 %v286_v19, %s309_s2 }
  0xea   :  { %178 = vrot.lane.b32.xlu0 %v285_v14, %s311_s11  ;;  %146 = vrot.lane.b32.xlu1 %v286_v19, %s308_s29 }
  0xee   :  { %195 = vrot.lane.b32.xlu0 %v285_v14, %s312_s12  ;;  %163 = vrot.lane.b32.xlu1 %v286_v19, %s310_s10 }
  0xf2   :  { %212 = vrot.lane.b32.xlu0 %v285_v14, %s313_s13  ;;  %180 = vrot.lane.b32.xlu1 %v286_v19, %s311_s11 }
  0xf6   :  { %197 = vrot.lane.b32.xlu1 %v286_v19, %s312_s12  ;;  %123 = vrot.lane.b32.xlu0 %v283_v17, %s309_s2 }
  0xfa   :  { %214 = vrot.lane.b32.xlu1 %v286_v19, %s313_s13  ;;  %140 = vrot.lane.b32.xlu0 %v283_v17, %s308_s29 }
  0xfe   :  { %142 = vrot.lane.b32.xlu1 %v284_v20, %s308_s29  ;;  %157 = vrot.lane.b32.xlu0 %v283_v17, %s310_s10 }
 0x102   :  { %159 = vrot.lane.b32.xlu1 %v284_v20, %s310_s10  ;;  %174 = vrot.lane.b32.xlu0 %v283_v17, %s311_s11 }
 0x106   :  { %176 = vrot.lane.b32.xlu1 %v284_v20, %s311_s11  ;;  %191 = vrot.lane.b32.xlu0 %v283_v17, %s312_s12 }
 0x10a   :  { %193 = vrot.lane.b32.xlu1 %v284_v20, %s312_s12  ;;  %208 = vrot.lane.b32.xlu0 %v283_v17, %s313_s13 }
 0x10e   :  { %210 = vrot.lane.b32.xlu1 %v284_v20, %s313_s13  ;;  %225 = vrot.lane.b32.xlu0 %v283_v17, %s314_s14 }
 0x112   :  { %227 = vrot.lane.b32.xlu1 %v284_v20, %s314_s14  ;;  %125 = vrot.lane.b32.xlu0 %v284_v20, %s309_s2 }
 0x116   :  { %231 = vrot.lane.b32.xlu1 %v286_v19, %s314_s14  ;;  %229 = vrot.lane.b32.xlu0 %v285_v14, %s314_s14 }
 0x154   :  { %v145_v21 = vpop.permute.xlu0 %144  ;;  %v128_v22 = vpop.permute.xlu1 %127 }
 0x155   :  { %265 = vst.msk [vmem:[%s496_s3 + $0x28] sm:$0xf] %vm118_vm1, %v145_v21  ;;  %261 = vst.msk [vmem:[%s496_s3 + $0x18] sm:$0xf] %vm118_vm1, %v128_v22 }
 0x158   :  { %v162_v23 = vpop.permute.xlu0 %161  ;;  %v130_v24 = vpop.permute.xlu1 %129 }
 0x159   :  { %269 = vst.msk [vmem:[%s496_s3 + $0x38] sm:$0xf] %vm118_vm1, %v162_v23  ;;  %262 = vst.msk [vmem:[%s496_s3 + $0x1c] sm:$0xf] %vm118_vm1, %v130_v24 }
 0x15c   :  { %v179_v25 = vpop.permute.xlu0 %178  ;;  %v147_v26 = vpop.permute.xlu1 %146 }
 0x15d   :  { %189 = vst.msk [vmem:[%s497_s4 + $0x8] sm:$0xf] %vm186_vm2, %v179_v25 }
 0x15e   :  { %266 = vst.msk [vmem:[%s496_s3 + $0x2c] sm:$0xf] %vm118_vm1, %v147_v26 }
 0x160   :  { %v196_v27 = vpop.permute.xlu0 %195  ;;  %v164_v28 = vpop.permute.xlu1 %163 }
 0x161   :  { %273 = vst.msk [vmem:[%s497_s4 + $0x18] sm:$0xf] %vm186_vm2, %v196_v27 }
 0x162   :  { %270 = vst.msk [vmem:[%s496_s3 + $0x3c] sm:$0xf] %vm118_vm1, %v164_v28 }
 0x164   :  { %v213_v29 = vpop.permute.xlu0 %212  ;;  %v181_v30 = vpop.permute.xlu1 %180 }
 0x165   :  { %277 = vst.msk [vmem:[%s497_s4 + $0x28] sm:$0xf] %vm186_vm2, %v213_v29  ;;  %190 = vst.msk [vmem:[%s497_s4 + $0xc] sm:$0xf] %vm186_vm2, %v181_v30 }
 0x168   :  { %v198_v31 = vpop.permute.xlu1 %197  ;;  %v124_v32 = vpop.permute.xlu0 %123 }
 0x169   :  { %274 = vst.msk [vmem:[%s497_s4 + $0x1c] sm:$0xf] %vm186_vm2, %v198_v31 }
 0x16a   :  { %259 = vst.msk [vmem:[%s496_s3 + $0x10] sm:$0xf] %vm118_vm1, %v124_v32 }
 0x16c   :  { %v215_v33 = vpop.permute.xlu1 %214  ;;  %v141_v34 = vpop.permute.xlu0 %140 }
 0x16d   :  { %278 = vst.msk [vmem:[%s497_s4 + $0x2c] sm:$0xf] %vm186_vm2, %v215_v33 }
 0x16e   :  { %263 = vst.msk [vmem:[%s496_s3 + $0x20] sm:$0xf] %vm118_vm1, %v141_v34 }
 0x170   :  { %v143_v35 = vpop.permute.xlu1 %142  ;;  %v158_v36 = vpop.permute.xlu0 %157 }
 0x171   :  { %264 = vst.msk [vmem:[%s496_s3 + $0x24] sm:$0xf] %vm118_vm1, %v143_v35  ;;  %267 = vst.msk [vmem:[%s496_s3 + $0x30] sm:$0xf] %vm118_vm1, %v158_v36 }
 0x174   :  { %v160_v37 = vpop.permute.xlu1 %159  ;;  %v175_v38 = vpop.permute.xlu0 %174 }
 0x175   :  { %268 = vst.msk [vmem:[%s496_s3 + $0x34] sm:$0xf] %vm118_vm1, %v160_v37 }
 0x176   :  { %187 = vst.msk [vmem:[%s497_s4] sm:$0xf] %vm186_vm2, %v175_v38 }
 0x178   :  { %v177_v39 = vpop.permute.xlu1 %176  ;;  %v192_v40 = vpop.permute.xlu0 %191 }
 0x179   :  { %188 = vst.msk [vmem:[%s497_s4 + $0x4] sm:$0xf] %vm186_vm2, %v177_v39  ;;  %271 = vst.msk [vmem:[%s497_s4 + $0x10] sm:$0xf] %vm186_vm2, %v192_v40 }
 0x17c   :  { %v194_v41 = vpop.permute.xlu1 %193  ;;  %v209_v42 = vpop.permute.xlu0 %208 }
 0x17d   :  { %272 = vst.msk [vmem:[%s497_s4 + $0x14] sm:$0xf] %vm186_vm2, %v194_v41  ;;  %275 = vst.msk [vmem:[%s497_s4 + $0x20] sm:$0xf] %vm186_vm2, %v209_v42 }
 0x180   :  { %v211_v43 = vpop.permute.xlu1 %210  ;;  %v226_v44 = vpop.permute.xlu0 %225 }
 0x181   :  { %276 = vst.msk [vmem:[%s497_s4 + $0x24] sm:$0xf] %vm186_vm2, %v211_v43  ;;  %279 = vst.msk [vmem:[%s497_s4 + $0x30] sm:$0xf] %vm186_vm2, %v226_v44 }
 0x184   :  { %v228_v45 = vpop.permute.xlu1 %227  ;;  %v126_v46 = vpop.permute.xlu0 %125 }
 0x185   :  { %280 = vst.msk [vmem:[%s497_s4 + $0x34] sm:$0xf] %vm186_vm2, %v228_v45 }
 0x186   :  { %260 = vst.msk [vmem:[%s496_s3 + $0x14] sm:$0xf] %vm118_vm1, %v126_v46 }
 0x188   :  { %v232_v47 = vpop.permute.xlu1 %231  ;;  %v230_v48 = vpop.permute.xlu0 %229 }
 0x189   :  { %282 = vst.msk [vmem:[%s497_s4 + $0x3c] sm:$0xf] %vm186_vm2, %v232_v47  ;;  %281 = vst.msk [vmem:[%s497_s4 + $0x38] sm:$0xf] %vm186_vm2, %v230_v48 }

// kernel: struct_self_attention_forward.14
= control target key start
LH: loop header
LB: loop body
LE: loop exit
PB: predicated region body
PF: predicated region fallthrough
CT: control target
= control target key end

     0   :  { %v402_v0 = vmov 0.0   ;;  %vm403_vm0 = vmmov 0   ;;  %vm67_vm1 = vcmask 261120   ;;  %vm320_vm2 = vcmask 257024   ;;  %s506_s2 = inlined_call_operand.vmem [shape: bf16[32,32], index: 2, kind: input, shape index: {}]   ;;  %s507_s0 = inlined_call_operand.vmem [shape: bf16[16,32], index: 0, kind: input, shape index: {}]   ;;  %s508_s4 = inlined_call_operand.vmem [shape: bf16[32,32], index: 4, kind: input, shape index: {}]   ;;  %s509_s5 = inlined_call_operand.vmem [shape: bf16[32,32], index: 5, kind: input, shape index: {}]   ;;  %s510_s1 = inlined_call_operand.vmem [shape: bf16[16,32], index: 1, kind: input, shape index: {}]   ;;  %s511_s3 = inlined_call_operand.vmem [shape: f32[1,32], index: 3, kind: input, shape index: {}]   ;;  %s512_s6 = inlined_call_operand.vmem [shape: f32[1,32], index: 6, kind: input, shape index: {}]   ;;  %s513_s7 = inlined_call_operand.vmem [shape: f32[1,32], index: 7, kind: input, shape index: {}]   ;;  %s514_s8 = inlined_call_operand.vmem [shape: f32[1,32], index: 8, kind: input, shape index: {}]   ;;  %s515_s9 = inlined_call_operand.vmem [shape: bf16[16,32], index: 9, kind: output, shape index: {}]  }
   0x1   :  { %355 = vmatprep.subr.bf16.mxu0 %v402_v0  ;;  %v381_v1 = vld [vmem:[%s506_s2] sm:$0xff]   ;;  %359 = vmatprep.mubr.msk.bf16.mxu0 %vm403_vm0, %v402_v0  ;;  %v382_v2 = vld [vmem:[%s506_s2 + $0x8] sm:$0xff]  }
   0x2   :  { %363 = vmatprep.subr.bf16.mxu1 %v402_v0  ;;  %367 = vmatprep.mubr.msk.bf16.mxu1 %vm403_vm0, %v402_v0  ;;  %v383_v3 = vld [vmem:[%s507_s0] sm:$0xff]   ;;  %v386_v6 = vld [vmem:[%s508_s4 + $0x8] sm:$0xff]  }
   0x3   :  { %356 = vmatpush3.bf16.msra.mxu0 %v381_v1  ;;  %v384_v4 = vld [vmem:[%s508_s4] sm:$0xff]   ;;  %v387_v8 = vld [vmem:[%s509_s5 + $0x8] sm:$0xff]  }
   0x4   :  { %357 = vmatprep.subr.bf16.mxu0 %v402_v0  ;;  %v385_v5 = vld [vmem:[%s509_s5] sm:$0xff]  }
   0x5   :  { %364 = vmatpush3.bf16.msra.mxu1 %v385_v5  ;;  %v33_v7 = vld [vmem:[%s510_s1] sm:$0xff]  }
   0x6   :  { %365 = vmatprep.subr.bf16.mxu1 %v402_v0  ;;  %v327_v9 = vld [vmem:[%s511_s3] ss:$0 sm:$0xff]  ;;  %v35_v38 = vunpack.c.l.bf16 %v33_v7  ;;  %v36_v41 = vunpack.c.h.bf16 %v33_v7 }
   0x7   :  { %358 = vmatpush3.bf16.msra.mxu0 %v382_v2  ;;  %v339_v22 = vld [vmem:[%s512_s6] ss:$0 sm:$0xff] }
   0x8   :  { %371 = vmatprep.subr.bf16.mxu0 %v402_v0  ;;  %v340_v5 = vld [vmem:[%s513_s7] ss:$0 sm:$0xff] }
   0x9   :  { %366 = vmatpush3.bf16.msra.mxu1 %v387_v8 }
   0xa   :  { %360 = vmatmul.mubr.msk.bf16.vlgmr.msra.gmra.mrb[0].mxu0 %vm67_vm1, %v383_v3 }
   0xb   :  { %372 = vmatpush3.bf16.msra.mxu0 %v384_v4  ;;  %375 = vmatprep.mubr.msk.bf16.mxu0 %vm403_vm0, %v402_v0 }
   0xc   :  { %373 = vmatprep.subr.bf16.mxu0 %v402_v0 }
   0xf   :  { %374 = vmatpush3.bf16.msra.mxu0 %v386_v6 }
  0x12   :  { %376 = vmatmul.mubr.msk.bf16.vlgmr.msra.gmra.mrb[4].mxu0 %vm67_vm1, %v33_v7  ;;  %v341_v7 = vld [vmem:[%s514_s8] ss:$0 sm:$0xff] }
  0xdd   :  { %v105_v10 = vpop.f32.mrb[0].mxu0 }
  0xde   :  { %v361_v11 = vpop.f32.mrb[1].mxu0  ;;  %v106_v13 = vadd.f32 %v327_v9, %v105_v10 }
  0xdf   :  { %v108_v12 = vpop.f32.mrb[2].mxu0 }
  0xe0   :  { %v109_v14 = vadd.f32 %v327_v9, %v108_v12  ;;  %v362_v15 = vpop.f32.mrb[3].mxu0 }
  0xe2   :  { %v116_v16 = vpack.c.bf16 %v109_v14, %v106_v13 }
  0xe4   :  { %368 = vmatmul.mubr.msk.bf16.vlgmr.msra.gmra.mrb[0].mxu1 %vm67_vm1, %v116_v16 }
  0xe5   :  { %v231_v17 = vpop.f32.mrb[4].mxu0 }
  0xe6   :  { %v377_v18 = vpop.f32.mrb[5].mxu0 }
  0xe7   :  { %v234_v19 = vpop.f32.mrb[6].mxu0 }
  0xe8   :  { %v378_v20 = vpop.f32.mrb[7].mxu0 }
 0x1b7   :  { %v170_v21 = vpop.f32.mrb[0].mxu1 }
 0x1b8   :  { %v232_v23 = vadd.f32 %v231_v17, %v170_v21  ;;  %v369_v24 = vpop.f32.mrb[1].mxu1 }
 0x1b9   :  { %v173_v25 = vpop.f32.mrb[2].mxu1 }
 0x1ba   :  { %v245_v26 = vadd.f32 %v339_v22, %v232_v23  ;;  %v235_v27 = vadd.f32 %v234_v19, %v173_v25  ;;  %v370_v28 = vpop.f32.mrb[3].mxu1 }
 0x1bc   :  { %v247_v29 = vsub.f32 0.0, %v245_v26  ;;  %v246_v30 = vadd.f32 %v339_v22, %v235_v27 }
 0x1be   :  { %v249_v31 = vmul.f32 1.442695, %v247_v29  ;;  %v248_v32 = vsub.f32 0.0, %v246_v30 }
 0x1c0   :  { %390 = vpow2.f32 %v249_v31  ;;  %v251_v33 = vmul.f32 1.442695, %v248_v32 }
 0x1c2   :  { %392 = vpow2.f32 %v251_v33 }
 0x1ca   :  { %v391_v34 = vpop.eup %390 }
 0x1cb   :  { %v253_v35 = vadd.f32 1.0, %v391_v34 }
 0x1cc   :  { %v393_v36 = vpop.eup %392 }
 0x1cd   :  { %394 = vrcp.f32 %v253_v35  ;;  %v254_v37 = vadd.f32 1.0, %v393_v36 }
 0x1cf   :  { %396 = vrcp.f32 %v254_v37 }
 0x1d7   :  { %v395_v39 = vpop.eup %394 }
 0x1d8   :  { %v261_v40 = vsub.f32 1.0, %v395_v39  ;;  %v259_v43 = vmul.f32 %v395_v39, %v106_v13 }
 0x1d9   :  { %v397_v42 = vpop.eup %396 }
 0x1da   :  { %v263_v44 = vmul.f32 %v261_v40, %v35_v38  ;;  %v262_v45 = vsub.f32 1.0, %v397_v42  ;;  %v260_v47 = vmul.f32 %v397_v42, %v109_v14 }
 0x1dc   :  { %v265_v46 = vadd.f32 %v263_v44, %v259_v43  ;;  %v264_v48 = vmul.f32 %v262_v45, %v36_v41 }
 0x1de   :  { %v269_v49 = vsel %vm67_vm1, %v265_v46, 0.0  ;;  %v266_v50 = vadd.f32 %v264_v48, %v260_v47 }
 0x1df   :  { %270 = vadd.xlane.f32.xlu0 %v269_v49 }
 0x1e0   :  { %v272_v51 = vsel %vm67_vm1, %v266_v50, 0.0 }
 0x1e3   :  { %273 = vadd.xlane.f32.xlu0 %v272_v51 }
 0x26c   :  { %v271_v52 = vpop.xlane.xlu0 %270 }
 0x26d   :  { %v276_v53 = vmul.f32 0.03125, %v271_v52 }
 0x26f   :  { %v278_v54 = vsub.f32 %v265_v46, %v276_v53 }
 0x270   :  { %v274_v55 = vpop.xlane.xlu0 %273 }
 0x271   :  { %v277_v56 = vmul.f32 0.03125, %v274_v55  ;;  %v280_v57 = vmul.f32 %v278_v54, %v278_v54 }
 0x273   :  { %v279_v58 = vsub.f32 %v266_v50, %v277_v56  ;;  %v282_v59 = vsel %vm67_vm1, %v280_v57, 0.0 }
 0x274   :  { %283 = vadd.xlane.f32.xlu1 %v282_v59 }
 0x275   :  { %v281_v60 = vmul.f32 %v279_v58, %v279_v58 }
 0x277   :  { %v285_v61 = vsel %vm67_vm1, %v281_v60, 0.0 }
 0x278   :  { %286 = vadd.xlane.f32.xlu1 %v285_v61 }
 0x301   :  { %v284_v62 = vpop.xlane.xlu1 %283 }
 0x302   :  { %v288_v63 = vmul.f32 0.03125, %v284_v62 }
 0x304   :  { %v290_v0 = vadd.f32 1e-12, %v288_v63 }
 0x305   :  { %v287_v1 = vpop.xlane.xlu1 %286 }
 0x306   :  { %398 = vrsqrt.f32 %v290_v0  ;;  %v289_v2 = vmul.f32 0.03125, %v287_v1 }
 0x308   :  { %v291_v3 = vadd.f32 1e-12, %v289_v2 }
 0x30a   :  { %400 = vrsqrt.f32 %v291_v3 }
 0x310   :  { %v399_v4 = vpop.eup %398 }
 0x311   :  { %v294_v6 = vmul.f32 %v399_v4, %v278_v54 }
 0x313   :  { %v302_v8 = vmul.f32 %v340_v5, %v294_v6 }
 0x314   :  { %v401_v9 = vpop.eup %400 }
 0x315   :  { %v310_v10 = vadd.f32 %v341_v7, %v302_v8  ;;  %v295_v11 = vmul.f32 %v401_v9, %v279_v58 }
 0x317   :  { %v344_v12 = vpack.c.bf16 %v310_v10, %v310_v10  ;;  %v303_v13 = vmul.f32 %v340_v5, %v295_v11 }
 0x319   :  { %321 = vst.msk [vmem:[%s515_s9] sm:$0xf] %vm320_vm2, %v344_v12  ;;  %v311_v14 = vadd.f32 %v341_v7, %v303_v13 }
 0x31b   :  { %v345_v15 = vpack.c.bf16 %v311_v14, %v311_v14 }
 0x31d   :  { %322 = vst.msk [vmem:[%s515_s9 + $0x4] sm:$0xf] %vm320_vm2, %v345_v15 }

// kernel: struct_self_attention_forward.13
= control target key start
LH: loop header
LB: loop body
LE: loop exit
PB: predicated region body
PF: predicated region fallthrough
CT: control target
= control target key end

     0   :  { %s1539_s15 = smov 0   ;;  %s1541_s16 = smov 0   ;;  %s1774_s0 = inlined_call_operand.vmem [shape: bf16[4,2,8,2], index: 0, kind: input, shape index: {}]   ;;  %s1775_s1 = inlined_call_operand.vmem [shape: bf16[4,2,16,2], index: 1, kind: input, shape index: {}]   ;;  %s1776_s2 = inlined_call_operand.vmem [shape: bf16[4,2,16,8], index: 2, kind: input, shape index: {}]   ;;  %s1777_s3 = inlined_call_operand.vmem [shape: f32[2,1,8,16], index: 3, kind: input, shape index: {}]   ;;  %s1778_s4 = inlined_call_operand.vmem [shape: bf16[2,8,32], index: 4, kind: output, shape index: {}]  }
   0x1   :  { %s1543_s17 = smov 0   ;;  %s1545_s18 = smov 0  }
   0x2   :  { %s1547_s19 = smov 0  }
   0x3 LB: > { %s26_s20 = sadd.s32 1, %s1501_s18  ;;  %p40_p1 = scmp.ne.s32.totalorder %s1493_s16, %s1489_s15  ;;  %s1505_s19 = sphi %s1547_s19, %s14_s19   ;;  %s1501_s18 = sphi %s1545_s18, %s1783_s18   ;;  %s1497_s17 = sphi %s1543_s17, %s1782_s17   ;;  %s1493_s16 = sphi %s1541_s16, %s1781_s16   ;;  %s1489_s15 = sphi %s1539_s15, %s1780_s15  }
   0x4   : > { %p28_p0 = scmp.ge.s32.totalorder %s26_s20, 2  ;;  %p41_p2 = scmp.eq.s32.totalorder %s1505_s19, 0 }
   0x5   : > { %s33_s23 = sadd.s32 1, %s1493_s16  ;;  %p1272_p5 = scmp.ge.s32.totalorder %s1505_s19, 2 }
   0x6   : > { %s1785_s20 = smov (%p28_p0, %s26_s20), 0  ;;  %p1570_p3 = por %p41_p2, %p40_p1 }
   0x7   : > { %s30_s22 = ssub.s32 %s1501_s18, %s1785_s20  ;;  %176 = sbr.rel (%p1272_p5) target bundleno = 35 (0x23), region = 16 }
   0x8   : > { %p31_p4 = scmp.eq.s32.totalorder %s30_s22, 0 }
   0xa   : > { %s1578_s24 = scalar_select %p31_p4, %s1493_s16, %s33_s23  }
   0xe   : > { %179 = sbr.rel (!%p1570_p3) target bundleno = 21 (0x15), region = 20  ;;  %s181_s25 = sand.u32 (%p1570_p3), 1, %s1493_s16  }
   0xf   : > { %s1274_s26 = sshll.u32 (%p1570_p3), %s1501_s18, 2  ;;  %s1273_s27 = sshll.u32 (%p1570_p3), %s181_s25, 4 }
  0x10   : > { %s185_s30 = scalar_lea.vmem (%p1570_p3), %s1774_s0, %s1274_s26  ;;  %s183_s5 = scalar_lea.vmem (%p1570_p3), [#allocation5], %s1273_s27 }
  0x11   : > { %v201_v0 = vld [vmem:[%s185_s30] sm:$0xf] (%p1570_p3)  ;;  %v203_v1 = vld [vmem:[%s185_s30 + $0x8] sm:$0xf] (%p1570_p3)  ;;  %v205_v2 = vld [vmem:[%s185_s30 + $0x10] sm:$0xf] (%p1570_p3) }
  0x12   : > { %202 = vst [vmem:[%s183_s5] sm:$0xf] (%p1570_p3), %v201_v0  ;;  %204 = vst [vmem:[%s183_s5 + $0x4] sm:$0xf] (%p1570_p3), %v203_v1  ;;  %v207_v3 = vld [vmem:[%s185_s30 + $0x18] sm:$0xf] (%p1570_p3) }
  0x13   : > { %206 = vst [vmem:[%s183_s5 + $0x8] sm:$0xf] (%p1570_p3), %v205_v2  ;;  %208 = vst [vmem:[%s183_s5 + $0xc] sm:$0xf] (%p1570_p3), %v207_v3 }
  0x15 PF: > { %239 = sbr.rel (!%p1570_p3) target bundleno = 28 (0x1c), region = 61  ;;  %s241_s6 = sand.u32 (%p1570_p3), 1, %s1493_s16  }
  0x16   : > { %s1320_s7 = sshll.u32 (%p1570_p3), %s1501_s18, 3  ;;  %s1275_s8 = sshll.u32 (%p1570_p3), %s241_s6, 5 }
  0x17   : > { %s248_s11 = scalar_lea.vmem (%p1570_p3), %s1775_s1, %s1320_s7  ;;  %s243_s12 = scalar_lea.vmem (%p1570_p3), [#allocation6], %s1275_s8 }
  0x18   : > { %v264_v4 = vld [vmem:[%s248_s11] sm:$0xff] (%p1570_p3)   ;;  %v268_v5 = vld [vmem:[%s248_s11 + $0x10] sm:$0xff] (%p1570_p3)  }
  0x19   : > { %v272_v6 = vld [vmem:[%s248_s11 + $0x20] sm:$0xff] (%p1570_p3)   ;;  %265 = vst [vmem:[%s243_s12] sm:$0xff] (%p1570_p3), %v264_v4   ;;  %269 = vst [vmem:[%s243_s12 + $0x8] sm:$0xff] (%p1570_p3), %v268_v5   ;;  %v276_v7 = vld [vmem:[%s248_s11 + $0x30] sm:$0xff] (%p1570_p3)  }
  0x1a   : > { %273 = vst [vmem:[%s243_s12 + $0x10] sm:$0xff] (%p1570_p3), %v272_v6   ;;  %277 = vst [vmem:[%s243_s12 + $0x18] sm:$0xff] (%p1570_p3), %v276_v7  }
  0x1c PF: > { %318 = sbr.rel (!%p1570_p3) target bundleno = 35 (0x23), region = 102  ;;  %s320_s13 = sand.u32 (%p1570_p3), 1, %s1493_s16  }
  0x1d   : > { %s1321_s14 = sshll.u32 (%p1570_p3), %s1501_s18, 3  ;;  %s1278_s22 = sshll.u32 (%p1570_p3), %s320_s13, 5 }
  0x1e   : > { %s327_s26 = scalar_lea.vmem (%p1570_p3), %s1776_s2, %s1321_s14  ;;  %s322_s27 = scalar_lea.vmem (%p1570_p3), [#allocation7], %s1278_s22 }
  0x1f   : > { %v343_v8 = vld [vmem:[%s327_s26] sm:$0xff] (%p1570_p3)   ;;  %v347_v9 = vld [vmem:[%s327_s26 + $0x10] sm:$0xff] (%p1570_p3)  }
  0x20   : > { %v351_v10 = vld [vmem:[%s327_s26 + $0x20] sm:$0xff] (%p1570_p3)   ;;  %344 = vst [vmem:[%s322_s27] sm:$0xff] (%p1570_p3), %v343_v8   ;;  %348 = vst [vmem:[%s322_s27 + $0x8] sm:$0xff] (%p1570_p3), %v347_v9   ;;  %v355_v11 = vld [vmem:[%s327_s26 + $0x30] sm:$0xff] (%p1570_p3)  }
  0x21   : > { %352 = vst [vmem:[%s322_s27 + $0x10] sm:$0xff] (%p1570_p3), %v351_v10   ;;  %356 = vst [vmem:[%s322_s27 + $0x18] sm:$0xff] (%p1570_p3), %v355_v11  }
  0x23 PF: > { %p1281_p6 = scmp.ge.s32.totalorder %s1505_s19, 1  ;;  %p406_p7 = scmp.lt.s32.totalorder %s1505_s19, 3 }
  0x25   : > { %p407_p8 = pnand %p1281_p6, %p406_p7 }
  0x26   : > { %s413_s21 = sand.u32 (!%p407_p8), 1, %s1489_s15   ;;  %v1507_v12 = vmov (!%p407_p8), 0.0   ;;  %vm1508_vm0 = vmmov (!%p407_p8), 0   ;;  %vm511_vm1 = vcmask (!%p407_p8), 15360   ;;  %vm484_vm2 = vcmask (!%p407_p8), 7168   ;;  %p468_p9 = scmp.lt.s32.totalorder (!%p407_p8), %s1497_s17, 1 }
  0x27   : > { %410 = sbr.rel (%p407_p8) target bundleno = 1497 (0x5d9), region = 147  ;;  %1338 = vmatprep.subr.bf16.mxu0 (!%p407_p8), %v1507_v12  ;;  %s1606_s28 = sshll.u32 (!%p407_p8), %s413_s21, 5  ;;  %1340 = vmatprep.mubr.msk.bf16.mxu0 (!%p407_p8), %vm1508_vm0, %v1507_v12  ;;  %v1509_v16 = vmov (!%p407_p8), -1e+30   ;;  %489 = vst.msk [vmem:[#allocation3] sm:$0xff] (!%p407_p8), %vm484_vm2, %v1507_v12  ;;  %490 = vst.msk [vmem:[#allocation3 + $0x8] sm:$0xff] (!%p407_p8), %vm484_vm2, %v1507_v12 }
  0x28   : > { %1344 = vmatprep.subr.bf16.mxu1 (!%p407_p8), %v1507_v12  ;;  %1346 = vmatprep.mubr.msk.bf16.mxu1 (!%p407_p8), %vm1508_vm0, %v1507_v12  ;;  %s1614_s29 = scalar_lea.vmem (!%p407_p8), [#allocation6], %s1606_s28  ;;  %s1282_s15 = sshll.u32 (!%p407_p8), %s413_s21, 4  ;;  %485 = vst.msk [vmem:[#allocation2] sm:$0xff] (!%p407_p8), %vm484_vm2, %v1509_v16  ;;  %486 = vst.msk [vmem:[#allocation2 + $0x8] sm:$0xff] (!%p407_p8), %vm484_vm2, %v1509_v16  ;;  %vm561_vm3 = vcmask (!%p407_p8), 130048   ;;  %v1510_v27 = vmov (!%p407_p8), 0  }
  0x29   : > { %v1435_v13 = vld [vmem:[%s1614_s29] sm:$0xff] (!%p407_p8)   ;;  %s1619_s30 = scalar_lea.vmem (!%p407_p8), [#allocation5], %s1282_s15  ;;  %487 = vst.msk [vmem:[#allocation2 + $0x10] sm:$0xff] (!%p407_p8), %vm484_vm2, %v1509_v16  ;;  %488 = vst.msk [vmem:[#allocation2 + $0x18] sm:$0xff] (!%p407_p8), %vm484_vm2, %v1509_v16  ;;  %1433 = vset.pattern.permute.xlu0 (!%p407_p8), %v1510_v27  ;;  %1434 = vset.pattern.permute.xlu1 (!%p407_p8), %v1510_v27  ;;  %s1660_s9 = scalar_lea.vmem (!%p407_p8), [#allocation7], %s1606_s28  ;;  %v1437_v36 = vld [vmem:[%s1614_s29 + $0x8] sm:$0xff] (!%p407_p8)  }
  0x2a   : > { %v516_v14 = vsel (!%p407_p8), %vm511_vm1, %v1435_v13, 0  ;;  %v501_v15 = vld [vmem:[%s1619_s30] sm:$0xf] (!%p407_p8)  ;;  %491 = vst.msk [vmem:[#allocation3 + $0x10] sm:$0xff] (!%p407_p8), %vm484_vm2, %v1507_v12  ;;  %492 = vst.msk [vmem:[#allocation3 + $0x18] sm:$0xff] (!%p407_p8), %vm484_vm2, %v1507_v12  ;;  %v663_v39 = vsel (!%p407_p8), %vm511_vm1, %v1437_v36, 0 }
  0x2b   : > { %1339 = vmatpush3.bf16.xpose.msra.mxu0 (!%p407_p8), %v516_v14  ;;  %v1436_v32 = vld [vmem:[%s1660_s9] sm:$0xff] (!%p407_p8)   ;;  %v1438_v40 = vld [vmem:[%s1614_s29 + $0x10] sm:$0xff] (!%p407_p8)   ;;  %v1439_v43 = vld [vmem:[%s1614_s29 + $0x18] sm:$0xff] (!%p407_p8)   ;;  %vm493_vm4 = vcmask (!%p407_p8), 64512   ;;  %s1511_s10 = smov (!%p407_p8), 8   ;;  %s1512_s11 = smov (!%p407_p8), 16  }
  0x2c   : > { %1356 = vmatprep.subr.bf16.mxu0 (!%p407_p8), %v1507_v12  ;;  %1345 = vmatpush3.bf16.msra.mxu1 (!%p407_p8), %v1436_v32  ;;  %v1291_v41 = vld [vmem:[%s1619_s30 + $0x4] sm:$0xf] (!%p407_p8)  ;;  %v810_v42 = vsel (!%p407_p8), %vm511_vm1, %v1438_v40, 0  ;;  %v1300_v44 = vld [vmem:[%s1619_s30 + $0x8] sm:$0xf] (!%p407_p8)  ;;  %v957_v45 = vsel (!%p407_p8), %vm511_vm1, %v1439_v43, 0 }
  0x2d   : > { %1350 = vmatprep.subr.bf16.mxu1 (!%p407_p8), %v1507_v12  ;;  %v1309_v46 = vld [vmem:[%s1619_s30 + $0xc] sm:$0xf] (!%p407_p8)  ;;  %494 = vst.msk [vmem:[#allocation4] sm:$0xff] (!%p407_p8), %vm493_vm4, %v1507_v12  ;;  %495 = vst.msk [vmem:[#allocation4 + $0x8] sm:$0xff] (!%p407_p8), %vm493_vm4, %v1507_v12  ;;  %s1513_s12 = smov (!%p407_p8), 24   ;;  %vm1140_vm5 = vcmask (!%p407_p8), 195584  }
  0x2e   : > { %s1787_s17 = smov (!%p468_p9, %s1497_s17), 1  ;;  %v1442_v40 = vld [vmem:[%s1660_s9 + $0x18] sm:$0xff]   ;;  %496 = vst.msk [vmem:[#allocation4 + $0x10] sm:$0xff] %vm493_vm4, %v1507_v12  ;;  %497 = vst.msk [vmem:[#allocation4 + $0x18] sm:$0xff] %vm493_vm4, %v1507_v12  ;;  %vm1143_vm6 = vcmask 257024  }
  0x2f   : > { %s1285_s5 = sshll.u32 %s1787_s17, 3  ;;  %v1649_v28 = vld [vmem:[#allocation2] sm:$0xff]  ;;  %v1697_v8 = vld [vmem:[#allocation2 + $0x8] sm:$0xff]  ;;  %s1286_s13 = sshll.u32 %s1787_s17, 2 }
  0x30   : > { %s474_s8 = scalar_lea.vmem %s1777_s3, %s1285_s5  ;;  %v1707_v13 = vld [vmem:[#allocation2 + $0x10] sm:$0xff]  ;;  %s478_s23 = scalar_lea.vmem %s1778_s4, %s1286_s13 }
  0x31   : > { %v498_v17 = vld [vmem:[%s474_s8] sm:$0xff] }
  0x32   : > { %1341 = vmatmul.mubr.msk.bf16.vlgmr.msra.gmra.mrb[0].mxu0 %vm511_vm1, %v501_v15  ;;  %v499_v18 = vsub.f32 1.0, %v498_v17  ;;  %v1002_v17 = vld [vmem:[#allocation2 + $0x18] sm:$0xff] }
  0x33   : > { %1358 = vmatprep.mubr.msk.bf16.mxu0 %vm1508_vm0, %v1507_v12 }
  0x34   : > { %v1645_v19 = vmul.f32 -10000.0, %v499_v18  ;;  %v1440_v18 = vld [vmem:[%s1660_s9 + $0x8] sm:$0xff]  }
  0x35   : > { %1357 = vmatpush3.bf16.msra.mxu0 %v1440_v18 }
  0x36   : > { %1368 = vmatprep.subr.bf16.mxu0 %v1507_v12 }
 0x105   : > { %v552_v20 = vpop.f32.mrb[0].mxu0 }
 0x106   : > { %v558_v21 = vmul.f32 0.70710677, %v552_v20  ;;  %v1342_v22 = vpop.f32.mrb[1].mxu0 }
 0x107   : > { %v555_v23 = vpop.f32.mrb[2].mxu0 }
 0x108   : > { %v1343_v24 = vpop.f32.mrb[3].mxu0  ;;  %v559_v25 = vadd.f32 %v558_v21, %v1645_v19 }
 0x10a   : > { %v562_v26 = vsel %vm561_vm3, %v559_v25, -inf }
 0x10b   : > { %563 = vmax.xlane.f32.xlu0 %v562_v26 }
 0x198   : > { %v564_v29 = vpop.xlane.xlu0 %563 }
 0x199   : > { %v1652_v30 = vmax.f32 %v1649_v28, %v564_v29 }
 0x19b   : > { %v566_v31 = vsub.f32 %v1649_v28, %v1652_v30  ;;  %645 = vst.msk [vmem:[#allocation2] sm:$0xff] %vm484_vm2, %v1652_v30  ;;  %571 = vperm.xlu0 %1433, %v1652_v30  }
 0x21a   : > { %v572_v33 = vpop.permute.xlu0 %571 }
 0x21b   : > { %v574_v34 = vsub.f32 %v559_v25, %v572_v33  ;;  %v1441_v33 = vld [vmem:[%s1660_s9 + $0x10] sm:$0xff]  }
 0x21d   : > { %v575_v35 = vmul.f32 1.442695, %v574_v34 }
 0x21f   : > { %1443 = vpow2.f32 %v575_v35 }
 0x229   : > { %v1665_v37 = vpop.eup %1443 }
 0x22a   : > { %v592_v38 = vpack.c.bf16 %v1665_v37, %v1665_v37  ;;  %v579_v22 = vsel %vm561_vm3, %v1665_v37, 0.0 }
 0x22c   : > { %1347 = vmatmul.mubr.msk.bf16.vlgmr.msra.gmra.mrb[0].mxu1 %vm561_vm3, %v592_v38 }
 0x22d   : > { %1351 = vmatpush3.bf16.xpose.msra.mxu1 %v663_v39  ;;  %1352 = vmatprep.mubr.msk.bf16.mxu1 %vm1508_vm0, %v1507_v12 }
 0x22e   : > { %1362 = vmatprep.subr.bf16.mxu1 %v1507_v12 }
 0x234   : > { %1353 = vmatmul.mubr.msk.bf16.vlgmr.msra.gmra.mrb[4].mxu1 %vm511_vm1, %v1291_v41  ;;  %v567_v41 = vmul.f32 1.442695, %v566_v31 }
 0x235   : > { %1363 = vmatpush3.bf16.xpose.msra.mxu1 %v810_v42  ;;  %1364 = vmatprep.mubr.msk.bf16.mxu1 %vm1508_vm0, %v1507_v12 }
 0x236   : > { %1374 = vmatprep.subr.bf16.mxu1 %v1507_v12 }
 0x23c   : > { %1365 = vmatmul.mubr.msk.bf16.vlgmr.msra.gmra.mrb[8].mxu1 %vm511_vm1, %v1300_v44 }
 0x23d   : > { %1375 = vmatpush3.bf16.xpose.msra.mxu1 %v957_v45  ;;  %1376 = vmatprep.mubr.msk.bf16.mxu1 %vm1508_vm0, %v1507_v12 }
 0x244   : > { %1377 = vmatmul.mubr.msk.bf16.vlgmr.msra.gmra.mrb[12].mxu1 %vm511_vm1, %v1309_v46 }
 0x2ff   : > { %v1689_v47 = vpop.f32.mrb[0].mxu1 }
 0x300   : > { %v1348_v48 = vpop.f32.mrb[1].mxu1 }
 0x301   : > { %v639_v49 = vpop.f32.mrb[2].mxu1 }
 0x302   : > { %v1349_v50 = vpop.f32.mrb[3].mxu1 }
 0x307   : > { %v699_v51 = vpop.f32.mrb[4].mxu1 }
 0x308   : > { %v705_v52 = vmul.f32 0.70710677, %v699_v51  ;;  %v1354_v53 = vpop.f32.mrb[5].mxu1  ;;  %v577_v51 = vld [vmem:[#allocation3] sm:$0xff] }
 0x309   : > { %v702_v54 = vpop.f32.mrb[6].mxu1 }
 0x30a   : > { %v1355_v55 = vpop.f32.mrb[7].mxu1  ;;  %v706_v56 = vadd.f32 %v705_v52, %v1645_v19 }
 0x30c   : > { %v709_v57 = vsel %vm561_vm3, %v706_v56, -inf }
 0x30d   : > { %710 = vmax.xlane.f32.xlu1 %v709_v57  ;;  %v725_v57 = vld [vmem:[#allocation3 + $0x8] sm:$0xff] }
 0x30f   : > { %v846_v58 = vpop.f32.mrb[8].mxu1 }
 0x310   : > { %v852_v59 = vmul.f32 0.70710677, %v846_v58  ;;  %v1366_v60 = vpop.f32.mrb[9].mxu1 }
 0x311   : > { %v849_v61 = vpop.f32.mrb[10].mxu1 }
 0x312   : > { %v1367_v62 = vpop.f32.mrb[11].mxu1  ;;  %v853_v63 = vadd.f32 %v852_v59, %v1645_v19  ;;  %v872_v61 = vld [vmem:[#allocation3 + $0x10] sm:$0xff] }
 0x313   : > { %v585_v62 = vld [vmem:[#allocation4] sm:$0xff] }
 0x314   : > { %v856_v0 = vsel %vm561_vm3, %v853_v63, -inf }
 0x315   : > { %857 = vmax.xlane.f32.xlu1 %v856_v0 }
 0x317   : > { %v993_v1 = vpop.f32.mrb[12].mxu1 }
 0x318   : > { %v999_v2 = vmul.f32 0.70710677, %v993_v1  ;;  %v1378_v3 = vpop.f32.mrb[13].mxu1 }
 0x319   : > { %v996_v4 = vpop.f32.mrb[14].mxu1 }
 0x31a   : > { %v1379_v5 = vpop.f32.mrb[15].mxu1  ;;  %v1000_v6 = vadd.f32 %v999_v2, %v1645_v19 }
 0x31c   : > { %v1003_v7 = vsel %vm561_vm3, %v1000_v6, -inf }
 0x31d   : > { %1004 = vmax.xlane.f32.xlu1 %v1003_v7 }
 0x39a   : > { %v711_v9 = vpop.xlane.xlu1 %710 }
 0x39b   : > { %v1700_v10 = vmax.f32 %v1697_v8, %v711_v9 }
 0x39d   : > { %v713_v11 = vsub.f32 %v1697_v8, %v1700_v10  ;;  %792 = vst.msk [vmem:[#allocation2 + $0x8] sm:$0xff] %vm484_vm2, %v1700_v10  ;;  %718 = vperm.xlu1 %1434, %v1700_v10  }
 0x39f   : > { %v714_v31 = vmul.f32 1.442695, %v713_v11 }
 0x3a2   : > { %v858_v14 = vpop.xlane.xlu1 %857 }
 0x3a3   : > { %v859_v15 = vmax.f32 %v1707_v13, %v858_v14 }
 0x3a5   : > { %v860_v16 = vsub.f32 %v1707_v13, %v859_v15  ;;  %939 = vst.msk [vmem:[#allocation2 + $0x10] sm:$0xff] %vm484_vm2, %v859_v15  ;;  %865 = vperm.xlu1 %1434, %v859_v15  }
 0x3a7   : > { %v861_v48 = vmul.f32 1.442695, %v860_v16 }
 0x3aa   : > { %v1005_v19 = vpop.xlane.xlu1 %1004 }
 0x3ab   : > { %v1006_v20 = vmax.f32 %v1002_v17, %v1005_v19 }
 0x3ad   : > { %v1007_v21 = vsub.f32 %v1002_v17, %v1006_v20  ;;  %1086 = vst.msk [vmem:[#allocation2 + $0x18] sm:$0xff] %vm484_vm2, %v1006_v20  ;;  %1012 = vperm.xlu1 %1434, %v1006_v20  }
 0x3af   : > { %v1008_v44 = vmul.f32 1.442695, %v1007_v21 }
 0x3d1   : > { %580 = vadd.xlane.f32.xlu1 %v579_v22 }
 0x41c   : > { %v719_v23 = vpop.permute.xlu1 %718 }
 0x41d   : > { %v721_v24 = vsub.f32 %v706_v56, %v719_v23  ;;  %v880_v23 = vld [vmem:[#allocation4 + $0x10] sm:$0xff] }
 0x41f   : > { %v722_v25 = vmul.f32 1.442695, %v721_v24 }
 0x421   : > { %1445 = vpow2.f32 %v722_v25 }
 0x424   : > { %v866_v26 = vpop.permute.xlu1 %865 }
 0x425   : > { %v868_v27 = vsub.f32 %v853_v63, %v866_v26 }
 0x427   : > { %v869_v29 = vmul.f32 1.442695, %v868_v27 }
 0x429   : > { %1447 = vpow2.f32 %v869_v29 }
 0x42b   : > { %v1446_v32 = vpop.eup %1445 }
 0x42c   : > { %v1013_v34 = vpop.permute.xlu1 %1012  ;;  %v727_v35 = vsel %vm561_vm3, %v1446_v32, 0.0  ;;  %v740_v36 = vpack.c.bf16 %v1446_v32, %v1446_v32 }
 0x42d   : > { %v1015_v38 = vsub.f32 %v1000_v6, %v1013_v34  ;;  %728 = vadd.xlane.f32.xlu0 %v727_v35  ;;  %v1019_v6 = vld [vmem:[#allocation3 + $0x18] sm:$0xff] }
 0x42e   : > { %1359 = vmatmul.mubr.msk.bf16.vlgmr.msra.gmra.mrb[4].mxu0 %vm561_vm3, %v740_v36  ;;  %v1027_v34 = vld [vmem:[#allocation4 + $0x18] sm:$0xff] }
 0x42f   : > { %v1016_v37 = vmul.f32 1.442695, %v1015_v38  ;;  %1369 = vmatpush3.bf16.msra.mxu0 %v1441_v33  ;;  %1370 = vmatprep.mubr.msk.bf16.mxu0 %vm1508_vm0, %v1507_v12 }
 0x430   : > { %1380 = vmatprep.subr.bf16.mxu0 %v1507_v12 }
 0x431   : > { %1449 = vpow2.f32 %v1016_v37 }
 0x432   : > { %1451 = vpow2.f32 %v567_v41 }
 0x433   : > { %v1448_v39 = vpop.eup %1447  ;;  %1453 = vpow2.f32 %v1008_v44 }
 0x434   : > { %v874_v42 = vsel %vm561_vm3, %v1448_v39, 0.0  ;;  %v887_v43 = vpack.c.bf16 %v1448_v39, %v1448_v39  ;;  %1455 = vpow2.f32 %v714_v31 }
 0x435   : > { %875 = vadd.xlane.f32.xlu1 %v874_v42  ;;  %1457 = vpow2.f32 %v861_v48 }
 0x436   : > { %1371 = vmatmul.mubr.msk.bf16.vlgmr.msra.gmra.mrb[8].mxu0 %vm561_vm3, %v887_v43 }
 0x437   : > { %1381 = vmatpush3.bf16.msra.mxu0 %v1442_v40  ;;  %1382 = vmatprep.mubr.msk.bf16.mxu0 %vm1508_vm0, %v1507_v12 }
 0x43b   : > { %v1450_v45 = vpop.eup %1449 }
 0x43c   : > { %v1021_v28 = vsel %vm561_vm3, %v1450_v45, 0.0  ;;  %v1034_v30 = vpack.c.bf16 %v1450_v45, %v1450_v45  ;;  %v1452_v46 = vpop.eup %1451 }
 0x43d   : > { %1022 = vadd.xlane.f32.xlu1 %v1021_v28  ;;  %v1454_v49 = vpop.eup %1453  ;;  %v578_v52 = vmul.f32 %v1452_v46, %v577_v51 }
 0x43e   : > { %1383 = vmatmul.mubr.msk.bf16.vlgmr.msra.gmra.mrb[12].mxu0 %vm561_vm3, %v1034_v30  ;;  %v1456_v50 = vpop.eup %1455  ;;  %v1020_v7 = vmul.f32 %v1454_v49, %v1019_v6 }
 0x43f   : > { %v1458_v12 = vpop.eup %1457  ;;  %v726_v58 = vmul.f32 %v1456_v50, %v725_v57 }
 0x440   : > { %v873_v63 = vmul.f32 %v1458_v12, %v872_v61 }
 0x443   : > { %588 = vperm.xlu0 %1433, %v1452_v46  }
 0x447   : > { %1030 = vperm.xlu0 %1433, %v1454_v49  }
 0x44e   : > { %736 = vperm.xlu1 %1434, %v1456_v50  }
 0x452   : > { %883 = vperm.xlu1 %1434, %v1458_v12  }
 0x45e   : > { %v581_v53 = vpop.xlane.xlu1 %580 }
 0x45f   : > { %v582_v54 = vadd.f32 %v581_v53, %v578_v52 }
 0x461   : > { %584 = vst.msk [vmem:[#allocation3] sm:$0xff] %vm484_vm2, %v582_v54 }
 0x468   : > { %v1091_v55 = vld [vmem:[#allocation3] sm:$0xff] }
 0x469   : > { %1459 = vrcp.f32 %v1091_v55 }
 0x473   : > { %v1460_v56 = vpop.eup %1459 }
 0x474   : > { %1095 = vperm.xlu1 %1434, %v1460_v56  }
 0x4ba   : > { %v729_v59 = vpop.xlane.xlu0 %728 }
 0x4bb   : > { %v730_v60 = vadd.f32 %v729_v59, %v726_v58 }
 0x4bd   : > { %731 = vst.msk [vmem:[#allocation3 + $0x8] sm:$0xff] %vm484_vm2, %v730_v60 }
 0x4c2   : > { %v876_v0 = vpop.xlane.xlu1 %875  ;;  %v589_v1 = vpop.permute.xlu0 %588 }
 0x4c3   : > { %v877_v2 = vadd.f32 %v876_v0, %v873_v63  ;;  %v591_v3 = vmul.f32 %v589_v1, %v585_v62 }
 0x4c4   : > { %v1100_v4 = vld [vmem:[#allocation3 + $0x8] sm:$0xff] }
 0x4c5   : > { %878 = vst.msk [vmem:[#allocation3 + $0x10] sm:$0xff] %vm484_vm2, %v877_v2  ;;  %v642_v5 = vadd.f32 %v1689_v47, %v591_v3  ;;  %1461 = vrcp.f32 %v1100_v4  ;;  %v733_v47 = vld [vmem:[#allocation4 + $0x8] sm:$0xff] }
 0x4c6   : > { %v1031_v35 = vpop.permute.xlu0 %1030 }
 0x4c7   : > { %644 = vst.msk [vmem:[#allocation4] sm:$0xff] %vm493_vm4, %v642_v5  ;;  %v1033_v36 = vmul.f32 %v1031_v35, %v1027_v34 }
 0x4ca   : > { %v1023_v8 = vpop.xlane.xlu1 %1022 }
 0x4cb   : > { %v1024_v9 = vadd.f32 %v1023_v8, %v1020_v7 }
 0x4cc   : > { %v1109_v10 = vld [vmem:[#allocation3 + $0x10] sm:$0xff] }
 0x4cd   : > { %1025 = vst.msk [vmem:[#allocation3 + $0x18] sm:$0xff] %vm484_vm2, %v1024_v9  ;;  %1463 = vrcp.f32 %v1109_v10 }
 0x4ce   : > { %v737_v16 = vpop.permute.xlu1 %736  ;;  %v1090_v50 = vld [vmem:[#allocation4] sm:$0xff] }
 0x4cf   : > { %v1462_v11 = vpop.eup %1461  ;;  %v739_v17 = vmul.f32 %v737_v16, %v733_v47 }
 0x4d0   : > { %1104 = vperm.xlu0 %1433, %v1462_v11  }
 0x4d2   : > { %v884_v24 = vpop.permute.xlu1 %883 }
 0x4d3   : > { %v886_v25 = vmul.f32 %v884_v24, %v880_v23 }
 0x4d4   : > { %v1118_v13 = vld [vmem:[#allocation3 + $0x18] sm:$0xff] }
 0x4d5   : > { %1465 = vrcp.f32 %v1118_v13 }
 0x4d7   : > { %v1464_v14 = vpop.eup %1463 }
 0x4d8   : > { %1113 = vperm.xlu1 %1434, %v1464_v14  }
 0x4df   : > { %v1466_v15 = vpop.eup %1465 }
 0x4e0   : > { %1122 = vperm.xlu0 %1433, %v1466_v15  }
 0x4f3   : > { %v1096_v45 = vpop.permute.xlu1 %1095 }
 0x4f4   : > { %v1098_v51 = vmul.f32 %v1096_v45, %v1090_v50 }
 0x501   : > { %v784_v18 = vpop.f32.mrb[4].mxu0 }
 0x502   : > { %v790_v19 = vadd.f32 %v784_v18, %v739_v17  ;;  %v1360_v20 = vpop.f32.mrb[5].mxu0 }
 0x503   : > { %v787_v21 = vpop.f32.mrb[6].mxu0 }
 0x504   : > { %791 = vst.msk [vmem:[#allocation4 + $0x8] sm:$0xff] %vm493_vm4, %v790_v19  ;;  %v1361_v22 = vpop.f32.mrb[7].mxu0 }
 0x509   : > { %v931_v26 = vpop.f32.mrb[8].mxu0 }
 0x50a   : > { %v937_v27 = vadd.f32 %v931_v26, %v886_v25  ;;  %v1372_v29 = vpop.f32.mrb[9].mxu0 }
 0x50b   : > { %v934_v32 = vpop.f32.mrb[10].mxu0  ;;  %v1099_v43 = vld [vmem:[#allocation4 + $0x8] sm:$0xff] }
 0x50c   : > { %938 = vst.msk [vmem:[#allocation4 + $0x10] sm:$0xff] %vm493_vm4, %v937_v27  ;;  %v1373_v33 = vpop.f32.mrb[11].mxu0 }
 0x511   : > { %v1078_v38 = vpop.f32.mrb[12].mxu0 }
 0x512   : > { %v1084_v37 = vadd.f32 %v1078_v38, %v1033_v36  ;;  %v1384_v39 = vpop.f32.mrb[13].mxu0 }
 0x513   : > { %v1081_v40 = vpop.f32.mrb[14].mxu0  ;;  %v1108_v30 = vld [vmem:[#allocation4 + $0x10] sm:$0xff] }
 0x514   : > { %1085 = vst.msk [vmem:[#allocation4 + $0x18] sm:$0xff] %vm493_vm4, %v1084_v37  ;;  %v1385_v41 = vpop.f32.mrb[15].mxu0 }
 0x51b   : > { %v1117_v48 = vld [vmem:[#allocation4 + $0x18] sm:$0xff] }
 0x54f   : > { %v1105_v42 = vpop.permute.xlu0 %1104 }
 0x550   : > { %v1107_v44 = vmul.f32 %v1105_v42, %v1099_v43 }
 0x552   : > { %1127 = vrot.lane.b32.xlu1 %v1107_v44, %s1511_s10 }
 0x557   : > { %v1114_v28 = vpop.permute.xlu1 %1113 }
 0x558   : > { %v1116_v31 = vmul.f32 %v1114_v28, %v1108_v30 }
 0x55a   : > { %1131 = vrot.lane.b32.xlu0 %v1116_v31, %s1512_s11 }
 0x55f   : > { %v1123_v46 = vpop.permute.xlu0 %1122 }
 0x560   : > { %v1125_v49 = vmul.f32 %v1123_v46, %v1117_v48 }
 0x562   : > { %1135 = vrot.lane.b32.xlu1 %v1125_v49, %s1513_s12 }
 0x5c4   : > { %v1128_v12 = vpop.permute.xlu1 %1127 }
 0x5c5   : > { %v1138_v53 = vsel %vm493_vm4, %v1098_v51, %v1128_v12 }
 0x5cc   : > { %v1132_v52 = vpop.permute.xlu0 %1131 }
 0x5cd   : > { %v1139_v54 = vsel %vm561_vm3, %v1138_v53, %v1132_v52 }
 0x5d4   : > { %v1136_v55 = vpop.permute.xlu1 %1135 }
 0x5d5   : > { %v1141_v56 = vsel %vm1140_vm5, %v1139_v54, %v1136_v55 }
 0x5d6   : > { %v1142_v57 = vpack.c.bf16 %v1141_v56, %v1141_v56 }
 0x5d8   : > { %1144 = vst.msk [vmem:[%s478_s23] sm:$0xf] %vm1143_vm6, %v1142_v57 }
 0x5d9 PF: > { %s14_s19 = sadd.s32 1, %s1505_s19   ;;  %s1780_s15 = smov %s1493_s16 }
 0x5da   : > { %p11_p10 = scmp.ge.s32.totalorder %s14_s19, 4   ;;  %s1781_s16 = smov %s1578_s24 }
 0x5db   : > { %s1782_s17 = smov %s1501_s18  ;;  %s1783_s18 = smov %s1785_s20 }
 0x5dc   :  { %13 = sbr.rel (!%p11_p10) target bundleno = 3 (0x3), region = 239 }

// kernel: struct_self_attention_forward.15
= control target key start
LH: loop header
LB: loop body
LE: loop exit
PB: predicated region body
PF: predicated region fallthrough
CT: control target
= control target key end

     0   :  { %v550_v1 = vmov 0.0   ;;  %vm551_vm0 = vmmov 0   ;;  %vm73_vm1 = vcmask 261120   ;;  %s717_s0 = inlined_call_operand.vmem [shape: bf16[16,32], index: 0, kind: input, shape index: {}]   ;;  %s718_s1 = inlined_call_operand.vmem [shape: f32[16,32], index: 1, kind: input, shape index: {}]   ;;  %s719_s2 = inlined_call_operand.vmem [shape: bf16[32,32], index: 2, kind: input, shape index: {}]   ;;  %s720_s3 = inlined_call_operand.vmem [shape: f32[1,32], index: 3, kind: input, shape index: {}]   ;;  %s721_s4 = inlined_call_operand.vmem [shape: f32[1,32], index: 4, kind: input, shape index: {}]   ;;  %s722_s5 = inlined_call_operand.vmem [shape: f32[1,32], index: 5, kind: input, shape index: {}]   ;;  %s723_s6 = inlined_call_operand.vmem [shape: bf16[32,64], index: 6, kind: input, shape index: {}]   ;;  %s724_s7 = inlined_call_operand.vmem [shape: f32[1,64], index: 7, kind: input, shape index: {}]   ;;  %s725_s8 = inlined_call_operand.vmem [shape: bf16[64,32], index: 8, kind: input, shape index: {}]   ;;  %s726_s9 = inlined_call_operand.vmem [shape: f32[1,32], index: 9, kind: input, shape index: {}]   ;;  %s727_s10 = inlined_call_operand.vmem [shape: f32[1,32], index: 10, kind: input, shape index: {}]   ;;  %s728_s11 = inlined_call_operand.vmem [shape: f32[1,32], index: 11, kind: input, shape index: {}]   ;;  %s729_s12 = inlined_call_operand.hbm [shape: f32[16,32], index: 12, kind: output, shape index: {}]  }
   0x1   :  { %v501_v0 = vld [vmem:[%s719_s2] sm:$0xff]   ;;  %468 = vmatprep.subr.bf16.mxu1 %v550_v1  ;;  %484 = vmatprep.subr.bf16.mxu0 %v550_v1  ;;  %v502_v2 = vld [vmem:[%s719_s2 + $0x8] sm:$0xff]  }
   0x2   :  { %469 = vmatpush3.bf16.msra.mxu1 %v501_v0  ;;  %472 = vmatprep.mubr.msk.bf16.mxu1 %vm551_vm0, %v550_v1  ;;  %v503_v3 = vld [vmem:[%s717_s0] sm:$0xff]  }
   0x3   :  { %470 = vmatprep.subr.bf16.mxu1 %v550_v1  ;;  %492 = vmatprep.mubr.msk.bf16.mxu0 %vm551_vm0, %v550_v1 }
   0x6   :  { %471 = vmatpush3.bf16.msra.mxu1 %v502_v2 }
   0x7   :  { %476 = vmatprep.subr.bf16.mxu1 %v550_v1 }
   0x8   :  { %17 = vsyncpa [#allocation3], 0  ;;  %v438_v4 = vld [vmem:[%s720_s3] ss:$0 sm:$0xff]  ;;  %v119_v10 = vld [vmem:[%s718_s1 + $0x8] sm:$0xff]  ;;  %vm329_vm4 = vcmask 523264  }
   0x9   :  { %473 = vmatmul.mubr.msk.bf16.vlgmr.msra.gmra.mrb[0].mxu1 %vm73_vm1, %v503_v3  ;;  %v118_v6 = vld [vmem:[%s718_s1] sm:$0xff]  ;;  %v505_v28 = vld [vmem:[%s723_s6 + $0x8] sm:$0xff]   ;;  %v508_v48 = vld [vmem:[%s725_s8 + $0x10] sm:$0xff]   ;;  %s552_s28 = smov [#allocation2]  }
   0xa   :  { %480 = vmatprep.mubr.msk.bf16.mxu1 %vm551_vm0, %v550_v1  ;;  %v504_v27 = vld [vmem:[%s723_s6] sm:$0xff]   ;;  %v507_v47 = vld [vmem:[%s725_s8 + $0x8] sm:$0xff]   ;;  %v509_v49 = vld [vmem:[%s725_s8 + $0x18] sm:$0xff]   ;;  %s427_s29 = sshll.u32 %s552_s28, 4  ;;  %s428_s29 = int_to_ptr.vmem [resolvable:$true] %s427_s29 }
   0xb   :  { %477 = vmatpush3.bf16.msra.mxu1 %v504_v27  ;;  %v443_v37 = vld [vmem:[%s721_s4] ss:$0 sm:$0xff]  ;;  %s526_s0 = scalar_lea.vmem %s428_s29, 256  ;;  %p531_p1 = scmp.lt.s32.totalorder %s428_s29, %s428_s29 }
   0xc   :  { %478 = vmatprep.subr.bf16.mxu1 %v550_v1  ;;  %v444_v41 = vld [vmem:[%s722_s5] ss:$0 sm:$0xff]  ;;  %p527_p0 = scmp.ne.s32.totalorder %s428_s29, %s526_s0  ;;  %p532_p2 = scmp.lt.s32.totalorder %s526_s0, %s526_s0 }
   0xd   :  { %v506_v46 = vld [vmem:[%s725_s8] sm:$0xff]  }
   0xe   :  { %485 = vmatpush3.bf16.msra.mxu0 %v506_v46  ;;  %v445_v50 = vld [vmem:[%s724_s7] ss:$0 sm:$0xff]  ;;  %p533_p3 = por %p532_p2, %p531_p1 }
   0xf   :  { %479 = vmatpush3.bf16.msra.mxu1 %v505_v28  ;;  %486 = vmatprep.subr.bf16.mxu0 %v550_v1  ;;  %v449_v46 = vld [vmem:[%s726_s9] ss:$0 sm:$0xff] }
  0x10   :  { %p534_p4 = pnand %p533_p3, %p527_p0 }
  0x12   :  { %487 = vmatpush3.bf16.msra.mxu0 %v507_v47 }
  0x13   :  { %488 = vmatprep.subr.bf16.mxu0 %v550_v1 }
  0x16   :  { %489 = vmatpush3.bf16.msra.mxu0 %v508_v48 }
  0x17   :  { %490 = vmatprep.subr.bf16.mxu0 %v550_v1 }
  0x1a   :  { %491 = vmatpush3.bf16.msra.mxu0 %v509_v49 }
  0xdc   :  { %v111_v5 = vpop.f32.mrb[0].mxu1 }
  0xdd   :  { %v112_v7 = vadd.f32 %v438_v4, %v111_v5  ;;  %v474_v8 = vpop.f32.mrb[1].mxu1 }
  0xde   :  { %v114_v9 = vpop.f32.mrb[2].mxu1 }
  0xdf   :  { %v115_v11 = vadd.f32 %v438_v4, %v114_v9  ;;  %v475_v12 = vpop.f32.mrb[3].mxu1  ;;  %v120_v13 = vadd.f32 %v118_v6, %v112_v7 }
  0xe1   :  { %v124_v14 = vsel %vm73_vm1, %v120_v13, 0.0  ;;  %v121_v15 = vadd.f32 %v119_v10, %v115_v11 }
  0xe2   :  { %125 = vadd.xlane.f32.xlu0 %v124_v14 }
  0xe3   :  { %v127_v16 = vsel %vm73_vm1, %v121_v15, 0.0 }
  0xe6   :  { %128 = vadd.xlane.f32.xlu0 %v127_v16 }
 0x16f   :  { %v126_v17 = vpop.xlane.xlu0 %125 }
 0x170   :  { %v131_v18 = vmul.f32 0.03125, %v126_v17 }
 0x172   :  { %v133_v19 = vsub.f32 %v120_v13, %v131_v18 }
 0x173   :  { %v129_v20 = vpop.xlane.xlu0 %128 }
 0x174   :  { %v132_v21 = vmul.f32 0.03125, %v129_v20  ;;  %v135_v22 = vmul.f32 %v133_v19, %v133_v19 }
 0x176   :  { %v134_v23 = vsub.f32 %v121_v15, %v132_v21  ;;  %v137_v24 = vsel %vm73_vm1, %v135_v22, 0.0 }
 0x177   :  { %138 = vadd.xlane.f32.xlu1 %v137_v24 }
 0x178   :  { %v136_v25 = vmul.f32 %v134_v23, %v134_v23 }
 0x17a   :  { %v140_v26 = vsel %vm73_vm1, %v136_v25, 0.0 }
 0x17b   :  { %141 = vadd.xlane.f32.xlu1 %v140_v26 }
 0x204   :  { %v139_v29 = vpop.xlane.xlu1 %138 }
 0x205   :  { %v143_v30 = vmul.f32 0.03125, %v139_v29 }
 0x207   :  { %v145_v31 = vadd.f32 1e-12, %v143_v30 }
 0x208   :  { %v142_v32 = vpop.xlane.xlu1 %141 }
 0x209   :  { %510 = vrsqrt.f32 %v145_v31  ;;  %v144_v33 = vmul.f32 0.03125, %v142_v32 }
 0x20b   :  { %v146_v34 = vadd.f32 1e-12, %v144_v33 }
 0x20d   :  { %512 = vrsqrt.f32 %v146_v34 }
 0x213   :  { %v511_v35 = vpop.eup %510 }
 0x214   :  { %v149_v36 = vmul.f32 %v511_v35, %v133_v19 }
 0x216   :  { %v157_v39 = vmul.f32 %v443_v37, %v149_v36 }
 0x217   :  { %v513_v38 = vpop.eup %512 }
 0x218   :  { %v150_v40 = vmul.f32 %v513_v38, %v134_v23  ;;  %v663_v43 = vadd.f32 %v444_v41, %v157_v39 }
 0x21a   :  { %v158_v42 = vmul.f32 %v443_v37, %v150_v40 }
 0x21c   :  { %v665_v44 = vadd.f32 %v444_v41, %v158_v42 }
 0x21e   :  { %v167_v45 = vpack.c.bf16 %v665_v44, %v663_v43 }
 0x220   :  { %481 = vmatmul.mubr.msk.bf16.vlgmr.msra.gmra.mrb[4].mxu1 %vm73_vm1, %v167_v45 }
 0x2f3   :  { %v228_v51 = vpop.f32.mrb[4].mxu1 }
 0x2f4   :  { %v229_v52 = vadd.f32 %v445_v50, %v228_v51  ;;  %v482_v53 = vpop.f32.mrb[5].mxu1 }
 0x2f5   :  { %v231_v54 = vpop.f32.mrb[6].mxu1 }
 0x2f6   :  { %v237_v55 = vmul.f32 0.70710677, %v229_v52  ;;  %v232_v56 = vadd.f32 %v445_v50, %v231_v54  ;;  %v483_v57 = vpop.f32.mrb[7].mxu1  ;;  %v235_v38 = vmul.f32 0.5, %v229_v52 }
 0x2f8   :  { %v239_v58 = vand.u32 2147483647, %v237_v55  ;;  %v238_v59 = vmul.f32 0.70710677, %v232_v56  ;;  %vm279_vm2 = vcmp.ge.f32.partialorder %v237_v55, 0.0  ;;  %v236_v39 = vmul.f32 0.5, %v232_v56 }
 0x2fa   :  { %v241_v60 = vmul.f32 0.3275911, %v239_v58  ;;  %v240_v61 = vand.u32 2147483647, %v238_v59  ;;  %v267_v1 = vsub.f32 0.0, %v239_v58  ;;  %vm280_vm3 = vcmp.ge.f32.partialorder %v238_v59, 0.0 }
 0x2fc   :  { %v243_v62 = vadd.f32 1.0, %v241_v60  ;;  %v242_v63 = vmul.f32 0.3275911, %v240_v61  ;;  %v268_v2 = vsub.f32 0.0, %v240_v61  ;;  %v269_v4 = vmul.f32 %v267_v1, %v239_v58 }
 0x2fe   :  { %514 = vrcp.f32 %v243_v62  ;;  %v244_v0 = vadd.f32 1.0, %v242_v63  ;;  %v270_v8 = vmul.f32 %v268_v2, %v240_v61  ;;  %v271_v9 = vmul.f32 1.442695, %v269_v4 }
 0x300   :  { %516 = vrcp.f32 %v244_v0  ;;  %v273_v14 = vmul.f32 1.442695, %v270_v8  ;;  %v455_v8 = vld [vmem:[%s727_s10] ss:$0 sm:$0xff] }
 0x301   :  { %518 = vpow2.f32 %v271_v9 }
 0x302   :  { %520 = vpow2.f32 %v273_v14 }
 0x308   :  { %v515_v3 = vpop.eup %514 }
 0x309   :  { %v249_v5 = vmul.f32 1.0614054, %v515_v3 }
 0x30a   :  { %v517_v6 = vpop.eup %516 }
 0x30b   :  { %v251_v7 = vadd.f32 -1.4531521, %v249_v5  ;;  %v250_v10 = vmul.f32 1.0614054, %v517_v6  ;;  %v519_v25 = vpop.eup %518 }
 0x30c   :  { %v521_v29 = vpop.eup %520 }
 0x30d   :  { %v253_v11 = vmul.f32 %v515_v3, %v251_v7  ;;  %v252_v12 = vadd.f32 -1.4531521, %v250_v10 }
 0x30f   :  { %v255_v13 = vadd.f32 1.4214138, %v253_v11  ;;  %v254_v15 = vmul.f32 %v517_v6, %v252_v12  ;;  %v456_v11 = vld [vmem:[%s728_s11] ss:$0 sm:$0xff] }
 0x311   :  { %v257_v16 = vmul.f32 %v515_v3, %v255_v13  ;;  %v256_v17 = vadd.f32 1.4214138, %v254_v15 }
 0x313   :  { %v259_v18 = vadd.f32 -0.28449672, %v257_v16  ;;  %v258_v19 = vmul.f32 %v517_v6, %v256_v17 }
 0x315   :  { %v261_v20 = vmul.f32 %v515_v3, %v259_v18  ;;  %v260_v21 = vadd.f32 -0.28449672, %v258_v19 }
 0x317   :  { %v263_v22 = vadd.f32 0.2548296, %v261_v20  ;;  %v262_v23 = vmul.f32 %v517_v6, %v260_v21 }
 0x319   :  { %v265_v24 = vmul.f32 %v515_v3, %v263_v22  ;;  %v264_v26 = vadd.f32 0.2548296, %v262_v23 }
 0x31b   :  { %v275_v27 = vmul.f32 %v519_v25, %v265_v24  ;;  %v266_v28 = vmul.f32 %v517_v6, %v264_v26 }
 0x31d   :  { %v277_v30 = vsub.f32 1.0, %v275_v27  ;;  %v276_v31 = vmul.f32 %v521_v29, %v266_v28 }
 0x31f   :  { %v281_v32 = vsub.f32 0.0, %v277_v30  ;;  %v278_v33 = vsub.f32 1.0, %v276_v31 }
 0x321   :  { %v283_v34 = vsel %vm279_vm2, %v277_v30, %v281_v32  ;;  %v282_v35 = vsub.f32 0.0, %v278_v33 }
 0x322   :  { %v285_v36 = vadd.f32 1.0, %v283_v34 }
 0x323   :  { %v284_v37 = vsel %vm280_vm3, %v278_v33, %v282_v35 }
 0x324   :  { %v286_v40 = vadd.f32 1.0, %v284_v37  ;;  %v287_v41 = vmul.f32 %v285_v36, %v235_v38 }
 0x326   :  { %v288_v42 = vmul.f32 %v286_v40, %v236_v39 }
 0x328   :  { %v289_v45 = vpack.c.bf16 %v288_v42, %v287_v41 }
 0x32a   :  { %493 = vmatmul.mubr.msk.bf16.vlgmr.msra.gmra.mrb[0].mxu0 %vm329_vm4, %v289_v45 }
 0x3fd   :  { %v367_v47 = vpop.f32.mrb[0].mxu0 }
 0x3fe   :  { %v368_v48 = vadd.f32 %v449_v46, %v367_v47  ;;  %v494_v49 = vpop.f32.mrb[1].mxu0 }
 0x3ff   :  { %v370_v50 = vpop.f32.mrb[2].mxu0 }
 0x400   :  { %v371_v51 = vadd.f32 %v449_v46, %v370_v50  ;;  %v495_v53 = vpop.f32.mrb[3].mxu0  ;;  %v374_v54 = vadd.f32 %v368_v48, %v663_v43 }
 0x402   :  { %v378_v52 = vsel %vm73_vm1, %v374_v54, 0.0  ;;  %v375_v55 = vadd.f32 %v371_v51, %v665_v44 }
 0x403   :  { %379 = vadd.xlane.f32.xlu0 %v378_v52 }
 0x404   :  { %v381_v56 = vsel %vm73_vm1, %v375_v55, 0.0 }
 0x405   :  { %382 = vadd.xlane.f32.xlu1 %v381_v56 }
 0x490   :  { %v380_v57 = vpop.xlane.xlu0 %379 }
 0x491   :  { %v384_v58 = vmul.f32 0.03125, %v380_v57 }
 0x492   :  { %v383_v59 = vpop.xlane.xlu1 %382 }
 0x493   :  { %v386_v60 = vsub.f32 %v374_v54, %v384_v58  ;;  %v385_v61 = vmul.f32 0.03125, %v383_v59 }
 0x495   :  { %v387_v62 = vsub.f32 %v375_v55, %v385_v61  ;;  %v388_v63 = vmul.f32 %v386_v60, %v386_v60 }
 0x497   :  { %v390_v0 = vsel %vm73_vm1, %v388_v63, 0.0  ;;  %v389_v1 = vmul.f32 %v387_v62, %v387_v62 }
 0x498   :  { %391 = vadd.xlane.f32.xlu0 %v390_v0 }
 0x499   :  { %v393_v43 = vsel %vm73_vm1, %v389_v1, 0.0 }
 0x49a   :  { %394 = vadd.xlane.f32.xlu1 %v393_v43 }
 0x525   :  { %v392_v2 = vpop.xlane.xlu0 %391 }
 0x526   :  { %v396_v44 = vmul.f32 0.03125, %v392_v2 }
 0x527   :  { %v395_v3 = vpop.xlane.xlu1 %394 }
 0x528   :  { %v398_v4 = vadd.f32 1e-12, %v396_v44  ;;  %v397_v5 = vmul.f32 0.03125, %v395_v3 }
 0x52a   :  { %522 = vrsqrt.f32 %v398_v4  ;;  %v399_v6 = vadd.f32 1e-12, %v397_v5 }
 0x52c   :  { %524 = vrsqrt.f32 %v399_v6 }
 0x534   :  { %v523_v7 = vpop.eup %522 }
 0x535   :  { %v402_v9 = vmul.f32 %v523_v7, %v386_v60 }
 0x536   :  { %v525_v10 = vpop.eup %524 }
 0x537   :  { %v403_v12 = vmul.f32 %v525_v10, %v387_v62  ;;  %v410_v13 = vmul.f32 %v455_v8, %v402_v9 }
 0x539   :  { %v411_v14 = vmul.f32 %v455_v8, %v403_v12  ;;  %v418_v15 = vadd.f32 %v456_v11, %v410_v13 }
 0x53b   :  { %v419_v16 = vadd.f32 %v456_v11, %v411_v14  ;;  %420 = vst.msk [vmem:[#allocation2] sm:$0xff] %vm73_vm1, %v418_v15 }
 0x53d   :  { %421 = vst.msk [vmem:[#allocation2 + $0x8] sm:$0xff] %vm73_vm1, %v419_v16 }
 0x53e   :  { %537 = shalt.err (!%p534_p4)
}
 0x53f   :  { %s538_s30 = scalar_lea.hbm %s729_s12, 256 }
 0x540   :  { %p539_p5 = scmp.ne.s32.totalorder %s729_s12, %s538_s30  ;;  %p542_p6 = scmp.lt.u32.totalorder %s538_s30, %s729_s12 }
 0x542   :  { %p544_p7 = pnand %p542_p6, %p539_p5 }
 0x544   :  { %547 = shalt.err (!%p544_p7)
}
 0x545   :  { %s553_s15 = smov 128   ;;  %s554_s16 = smov 8  }
 0x546   :  { %433 = dma.vmem_to_hbm [thread:$0]  %s428_s29, 256, %s729_s12, [#allocation3], %s553_s15, %s553_s15, %s554_s16  }
 0x547   :  { %548 = dma.done.wait [#allocation3], 256  }
 0x548   :  { %549 = vsyncadd [#allocation3], 4294967040 }
 0x549   :  { %437 = vsyncpa [#allocation3], 1 }

</bundles_post_ra>
